<compile_context>
chip_gen: v7x
topology: tpu7x:2x2x1
jax: 0.10.0
libtpu: 0.0.40
codegen_flags: <defaults>
</compile_context>

<pallas_src>
import math

import numpy as np
import jax
import jax.numpy as jnp
from jax.experimental import pallas as pl
from jax.experimental.pallas import tpu as pltpu

# ----------------------------- configuration --------------------------------
B = 2                      # batch
S = 16                     # sequence length
HID = 128                  # hidden size (BERT: 768) -> one full TPU lane group
NUM_HEADS = 4
HEAD_DIM = HID // NUM_HEADS
FFN = 256                  # intermediate size
LAYERS = 2
VOCAB = 50
TYPE_VOCAB = 2
MAX_POS = 32
Y = 4                      # number of labels
LN_EPS = 1e-12
ATTN_SCALE = 1.0 / math.sqrt(HEAD_DIM)

_LAYER_PARAM_NAMES = ("wqkv", "bqkv", "wo", "bo", "ln1_g", "ln1_b",
                      "w1", "b1", "w2", "b2", "ln2_g", "ln2_b")


# --------------------------- shared forward math -----------------------------
# Pure jnp/lax helpers: the exact same code runs (a) inside the Pallas kernel on
# VMEM-resident values and (b) as the plain-JAX reference used for the check.

def _layernorm(x, gamma, beta):
    mu = jnp.mean(x, axis=-1, keepdims=True)
    xc = x - mu
    var = jnp.mean(xc * xc, axis=-1, keepdims=True)
    return xc * jax.lax.rsqrt(var + LN_EPS) * gamma + beta


def _gelu(x):
    # TODO(synk): HF BERT uses the exact erf GELU; erf has no Mosaic lowering,
    # so the standard tanh approximation is used here.
    c = 0.7978845608028654  # sqrt(2/pi)
    return 0.5 * x * (1.0 + jnp.tanh(c * (x + 0.044715 * x * x * x)))


def _dense(x_f32, w_bf16, bias_f32):
    """x @ w + b with bf16 MXU operands and f32 accumulation."""
    return jnp.dot(x_f32.astype(jnp.bfloat16), w_bf16,
                   preferred_element_type=jnp.float32) + bias_f32


def _bce_with_logits_mean(logits, targets):
    """Numerically stable mean BCE-with-logits, returned as a (1, 1) array."""
    per = (jnp.maximum(logits, 0.0) - logits * targets
           + jnp.log(1.0 + jnp.exp(-jnp.abs(logits))))
    s = jnp.sum(per, axis=1, keepdims=True)
    s = jnp.sum(s, axis=0, keepdims=True)
    return s / float(logits.shape[0] * logits.shape[1])


def _transformer_math(emb_sum, mask_bias, emb_g, emb_b, layer_params, wf, bf_bias):
    """emb_sum: (B*S, H) summed embeddings, mask_bias: (B, S) additive mask,
    layer_params: list of per-layer 2-D weight tuples (matmul weights in bf16).
    Returns logits (B, Y) in f32."""
    h = _layernorm(emb_sum, emb_g, emb_b)                        # (B*S, H)
    for (wqkv, bqkv, wo, bo, ln1_g, ln1_b,
         w1, b1, w2, b2, ln2_g, ln2_b) in layer_params:
        # ---- multi-head self attention (fused QKV projection) ----
        qkv = _dense(h, wqkv, bqkv)                              # (B*S, 3H)
        q = qkv[:, 0 * HID:1 * HID]
        k = qkv[:, 1 * HID:2 * HID]
        v = qkv[:, 2 * HID:3 * HID]
        batch_ctx = []
        for bi in range(B):
            rows = slice(bi * S, (bi + 1) * S)
            bias_row = mask_bias[bi:bi + 1, :]                   # (1, S)
            head_ctx = []
            for hi in range(NUM_HEADS):
                cols = slice(hi * HEAD_DIM, (hi + 1) * HEAD_DIM)
                qh = q[rows, cols].astype(jnp.bfloat16)          # (S, Dh)
                kh = k[rows, cols].astype(jnp.bfloat16)
                vh = v[rows, cols].astype(jnp.bfloat16)
                sc = jax.lax.dot_general(                        # q @ k^T
                    qh, kh, (((1,), (1,)), ((), ())),
                    preferred_element_type=jnp.float32)          # (S, S)
                sc = sc * ATTN_SCALE + bias_row
                sc = sc - jnp.max(sc, axis=-1, keepdims=True)
                p = jnp.exp(sc)
                p = p / jnp.sum(p, axis=-1, keepdims=True)
                head_ctx.append(jnp.dot(p.astype(jnp.bfloat16), vh,
                                        preferred_element_type=jnp.float32))
            batch_ctx.append(jnp.concatenate(head_ctx, axis=1))  # (S, H)
        ctx = jnp.concatenate(batch_ctx, axis=0)                 # (B*S, H)
        attn_out = _dense(ctx, wo, bo)
        h = _layernorm(attn_out + h, ln1_g, ln1_b)               # post-LN residual
        # ---- feed-forward ----
        inter = _gelu(_dense(h, w1, b1))                         # (B*S, F)
        ffn = _dense(inter, w2, b2)                              # (B*S, H)
        h = _layernorm(ffn + h, ln2_g, ln2_b)
    # ---- CLS head: y = h[:, 0, :] @ Wf^T + bf ----
    cls = jnp.concatenate([h[bi * S:bi * S + 1, :] for bi in range(B)], axis=0)
    logits = jax.lax.dot_general(                                # cls @ wf^T
        cls.astype(jnp.bfloat16), wf, (((1,), (1,)), ((), ())),
        preferred_element_type=jnp.float32) + bf_bias            # (B, Y)
    return logits


# ------------------------------ Pallas kernel --------------------------------
def _bert_kernel(emb_ref, mask_ref, eg_ref, eb_ref,
                 wqkv_ref, bqkv_ref, wo_ref, bo_ref, l1g_ref, l1b_ref,
                 w1_ref, b1_ref, w2_ref, b2_ref, l2g_ref, l2b_ref,
                 wf_ref, bfb_ref, labels_ref,
                 logits_ref, loss_ref):
    layer_refs = (wqkv_ref, bqkv_ref, wo_ref, bo_ref, l1g_ref, l1b_ref,
                  w1_ref, b1_ref, w2_ref, b2_ref, l2g_ref, l2b_ref)
    # Per-layer weights stacked on the leading axis; static leading-index loads.
    layer_params = [tuple(r[l] for r in layer_refs) for l in range(LAYERS)]
    logits = _transformer_math(emb_ref[...], mask_ref[...],
                               eg_ref[...], eb_ref[...],
                               layer_params, wf_ref[...], bfb_ref[...])
    logits_ref[...] = logits.astype(logits_ref.dtype)
    loss_ref[...] = _bce_with_logits_mean(
        logits, labels_ref[...]).astype(loss_ref.dtype)


def _full_spec(a):
    """Whole-array VMEM block at grid position 0 (single grid step)."""
    index_map = {2: lambda i: (0, 0), 3: lambda i: (0, 0, 0)}[a.ndim]
    return pl.BlockSpec(tuple(a.shape), index_map)


def _prepare_inputs(params, input_ids, token_type_ids, attention_mask):
    """Embedding-table gathers + additive mask bias.  Plain JAX glue: gather
    has no clean Pallas TPU form at these shapes."""
    emb = (params["word_emb"][input_ids]
           + params["pos_emb"][jnp.arange(S)][None, :, :]
           + params["type_emb"][token_type_ids])                 # (B, S, H)
    emb_sum = emb.reshape(B * S, HID).astype(jnp.float32)
    mask_bias = (1.0 - attention_mask.astype(jnp.float32)) * -10000.0   # (B, S)
    return emb_sum, mask_bias


@jax.jit
def bert_forward(params, input_ids, token_type_ids, attention_mask, labels):
    emb_sum, mask_bias = _prepare_inputs(params, input_ids, token_type_ids,
                                         attention_mask)
    args = (emb_sum, mask_bias,
            params["emb_ln_g"], params["emb_ln_b"],
            params["wqkv"], params["bqkv"], params["wo"], params["bo"],
            params["ln1_g"], params["ln1_b"],
            params["w1"], params["b1"], params["w2"], params["b2"],
            params["ln2_g"], params["ln2_b"],
            params["wf"], params["bf"],
            labels.astype(jnp.float32))
    logits, loss = pl.pallas_call(
        _bert_kernel,
        out_shape=(jax.ShapeDtypeStruct((B, Y), jnp.float32),
                   jax.ShapeDtypeStruct((1, 1), jnp.float32)),
        grid=(1,),
        in_specs=[_full_spec(a) for a in args],
        out_specs=(pl.BlockSpec((B, Y), lambda i: (0, 0)),
                   pl.BlockSpec((1, 1), lambda i: (0, 0))),
        compiler_params=pltpu.CompilerParams(
            dimension_semantics=("arbitrary",)),
    )(*args)
    return logits, loss[0, 0]


def bert_forward_reference(params, input_ids, token_type_ids, attention_mask,
                           labels):
    """Pure-JAX (no Pallas) reference with identical math, for the check."""
    emb_sum, mask_bias = _prepare_inputs(params, input_ids, token_type_ids,
                                         attention_mask)
    layer_params = [tuple(params[n][l] for n in _LAYER_PARAM_NAMES)
                    for l in range(LAYERS)]
    logits = _transformer_math(emb_sum, mask_bias,
                               params["emb_ln_g"], params["emb_ln_b"],
                               layer_params, params["wf"], params["bf"])
    loss = _bce_with_logits_mean(logits, labels.astype(jnp.float32))
    return logits, loss[0, 0]


# ------------------------------- parameters ----------------------------------
def init_params(key):
    """Random small-BERT weights matching init_bert_weights (normal(0, 0.02),
    zero biases).  Matmul weights are stored pre-transposed as (in, out) and in
    bf16 for the MXU; LayerNorm / bias parameters stay f32."""
    std = 0.02
    keys = iter(jax.random.split(key, 16))

    def normal(shape, dtype=jnp.float32):
        return (std * jax.random.normal(next(keys), shape, jnp.float32)).astype(dtype)

    return {
        "word_emb": normal((VOCAB, HID)),
        "pos_emb": normal((MAX_POS, HID)),
        "type_emb": normal((TYPE_VOCAB, HID)),
        "emb_ln_g": jnp.ones((1, HID), jnp.float32),
        "emb_ln_b": jnp.zeros((1, HID), jnp.float32),
        # per-layer weights stacked along a leading LAYERS axis
        "wqkv": normal((LAYERS, HID, 3 * HID), jnp.bfloat16),
        "bqkv": jnp.zeros((LAYERS, 1, 3 * HID), jnp.float32),
        "wo": normal((LAYERS, HID, HID), jnp.bfloat16),
        "bo": jnp.zeros((LAYERS, 1, HID), jnp.float32),
        "ln1_g": jnp.ones((LAYERS, 1, HID), jnp.float32),
        "ln1_b": jnp.zeros((LAYERS, 1, HID), jnp.float32),
        "w1": normal((LAYERS, HID, FFN), jnp.bfloat16),
        "b1": jnp.zeros((LAYERS, 1, FFN), jnp.float32),
        "w2": normal((LAYERS, FFN, HID), jnp.bfloat16),
        "b2": jnp.zeros((LAYERS, 1, HID), jnp.float32),
        "ln2_g": jnp.ones((LAYERS, 1, HID), jnp.float32),
        "ln2_b": jnp.zeros((LAYERS, 1, HID), jnp.float32),
        # final classifier: nn.Linear(HID, Y).weight layout (Y, HID), zero bias
        "wf": normal((Y, HID), jnp.bfloat16),
        "bf": jnp.zeros((1, Y), jnp.float32),
    }


# ----------------------------------- main -------------------------------------
if __name__ == "__main__":
    root = jax.random.PRNGKey(0)
    kp, kid, klab = jax.random.split(root, 3)
    params = init_params(kp)

    input_ids = jax.random.randint(kid, (B, S), 1, VOCAB, dtype=jnp.int32)
    token_type_ids = jnp.concatenate(
        [jnp.zeros((B, S // 2), jnp.int32), jnp.ones((B, S // 2), jnp.int32)],
        axis=1)
    attention_mask = jnp.ones((B, S), jnp.float32).at[1, S - 3:].set(0.0)
    labels = jax.random.bernoulli(klab, 0.5, (B, Y)).astype(jnp.float32)

    logits, loss = bert_forward(params, input_ids, token_type_ids,
                                attention_mask, labels)
    jax.block_until_ready((logits, loss))

    ref_logits, ref_loss = bert_forward_reference(params, input_ids,
                                                  token_type_ids,
                                                  attention_mask, labels)
    np.testing.assert_allclose(np.asarray(logits), np.asarray(ref_logits),
                               rtol=2e-2, atol=2e-2)
    np.testing.assert_allclose(float(loss), float(ref_loss),
                               rtol=2e-2, atol=2e-2)

    assert logits.shape == (B, Y)
    assert loss.shape == ()
    print("KERNEL_OK")
</pallas_src>

<mosaic_0001>
module attributes {stable_mosaic.version = 11 : i64} {
  func.func @_bert_kernel(%arg0: i32, %arg1: memref<32x128xf32, #tpu.memory_space<vmem>>, %arg2: memref<2x16xf32, #tpu.memory_space<vmem>>, %arg3: memref<1x128xf32, #tpu.memory_space<vmem>>, %arg4: memref<1x128xf32, #tpu.memory_space<vmem>>, %arg5: memref<2x128x384xbf16, #tpu.memory_space<vmem>>, %arg6: memref<2x1x384xf32, #tpu.memory_space<vmem>>, %arg7: memref<2x128x128xbf16, #tpu.memory_space<vmem>>, %arg8: memref<2x1x128xf32, #tpu.memory_space<vmem>>, %arg9: memref<2x1x128xf32, #tpu.memory_space<vmem>>, %arg10: memref<2x1x128xf32, #tpu.memory_space<vmem>>, %arg11: memref<2x128x256xbf16, #tpu.memory_space<vmem>>, %arg12: memref<2x1x256xf32, #tpu.memory_space<vmem>>, %arg13: memref<2x256x128xbf16, #tpu.memory_space<vmem>>, %arg14: memref<2x1x128xf32, #tpu.memory_space<vmem>>, %arg15: memref<2x1x128xf32, #tpu.memory_space<vmem>>, %arg16: memref<2x1x128xf32, #tpu.memory_space<vmem>>, %arg17: memref<4x128xbf16, #tpu.memory_space<vmem>>, %arg18: memref<1x4xf32, #tpu.memory_space<vmem>>, %arg19: memref<2x4xf32, #tpu.memory_space<vmem>>, %arg20: memref<2x4xf32, #tpu.memory_space<vmem>>, %arg21: memref<1x1xf32, #tpu.memory_space<vmem>>) attributes {dimension_semantics = [#tpu.dimension_semantics<arbitrary>], iteration_bounds = array<i64: 1>, scalar_prefetch = 0 : i64, scratch_operands = 0 : i64, tpu.core_type = #tpu.core_type<tc>, window_params = [{pipeline_mode = #tpu.pipeline_mode<synchronous>, transform_indices = @transform_0, window_bounds = array<i64: 32, 128>}, {pipeline_mode = #tpu.pipeline_mode<synchronous>, transform_indices = @transform_1, window_bounds = array<i64: 2, 16>}, {pipeline_mode = #tpu.pipeline_mode<synchronous>, transform_indices = @transform_2, window_bounds = array<i64: 1, 128>}, {pipeline_mode = #tpu.pipeline_mode<synchronous>, transform_indices = @transform_3, window_bounds = array<i64: 1, 128>}, {pipeline_mode = #tpu.pipeline_mode<synchronous>, transform_indices = @transform_4, window_bounds = array<i64: 2, 128, 384>}, {pipeline_mode = #tpu.pipeline_mode<synchronous>, transform_indices = @transform_5, window_bounds = array<i64: 2, 1, 384>}, {pipeline_mode = #tpu.pipeline_mode<synchronous>, transform_indices = @transform_6, window_bounds = array<i64: 2, 128, 128>}, {pipeline_mode = #tpu.pipeline_mode<synchronous>, transform_indices = @transform_7, window_bounds = array<i64: 2, 1, 128>}, {pipeline_mode = #tpu.pipeline_mode<synchronous>, transform_indices = @transform_8, window_bounds = array<i64: 2, 1, 128>}, {pipeline_mode = #tpu.pipeline_mode<synchronous>, transform_indices = @transform_9, window_bounds = array<i64: 2, 1, 128>}, {pipeline_mode = #tpu.pipeline_mode<synchronous>, transform_indices = @transform_10, window_bounds = array<i64: 2, 128, 256>}, {pipeline_mode = #tpu.pipeline_mode<synchronous>, transform_indices = @transform_11, window_bounds = array<i64: 2, 1, 256>}, {pipeline_mode = #tpu.pipeline_mode<synchronous>, transform_indices = @transform_12, window_bounds = array<i64: 2, 256, 128>}, {pipeline_mode = #tpu.pipeline_mode<synchronous>, transform_indices = @transform_13, window_bounds = array<i64: 2, 1, 128>}, {pipeline_mode = #tpu.pipeline_mode<synchronous>, transform_indices = @transform_14, window_bounds = array<i64: 2, 1, 128>}, {pipeline_mode = #tpu.pipeline_mode<synchronous>, transform_indices = @transform_15, window_bounds = array<i64: 2, 1, 128>}, {pipeline_mode = #tpu.pipeline_mode<synchronous>, transform_indices = @transform_16, window_bounds = array<i64: 4, 128>}, {pipeline_mode = #tpu.pipeline_mode<synchronous>, transform_indices = @transform_17, window_bounds = array<i64: 1, 4>}, {pipeline_mode = #tpu.pipeline_mode<synchronous>, transform_indices = @transform_18, window_bounds = array<i64: 2, 4>}, {pipeline_mode = #tpu.pipeline_mode<synchronous>, transform_indices = @transform_19, window_bounds = array<i64: 2, 4>}, {pipeline_mode = #tpu.pipeline_mode<synchronous>, transform_indices = @transform_20, window_bounds = array<i64: 1, 1>}]} {
    %c0 = arith.constant 0 : index
    %c0_0 = arith.constant 0 : index
    %c0_1 = arith.constant 0 : index
    %0 = vector.load %arg5[%c0, %c0_0, %c0_1] : memref<2x128x384xbf16, #tpu.memory_space<vmem>>, vector<1x128x384xbf16>
    %1 = vector.shape_cast %0 : vector<1x128x384xbf16> to vector<128x384xbf16>
    %c0_2 = arith.constant 0 : index
    %c0_3 = arith.constant 0 : index
    %c0_4 = arith.constant 0 : index
    %2 = vector.load %arg6[%c0_2, %c0_3, %c0_4] : memref<2x1x384xf32, #tpu.memory_space<vmem>>, vector<1x1x384xf32>
    %3 = vector.shape_cast %2 : vector<1x1x384xf32> to vector<1x384xf32>
    %c0_5 = arith.constant 0 : index
    %c0_6 = arith.constant 0 : index
    %c0_7 = arith.constant 0 : index
    %4 = vector.load %arg7[%c0_5, %c0_6, %c0_7] : memref<2x128x128xbf16, #tpu.memory_space<vmem>>, vector<1x128x128xbf16>
    %5 = vector.shape_cast %4 : vector<1x128x128xbf16> to vector<128x128xbf16>
    %c0_8 = arith.constant 0 : index
    %c0_9 = arith.constant 0 : index
    %c0_10 = arith.constant 0 : index
    %6 = vector.load %arg8[%c0_8, %c0_9, %c0_10] : memref<2x1x128xf32, #tpu.memory_space<vmem>>, vector<1x1x128xf32>
    %7 = vector.shape_cast %6 : vector<1x1x128xf32> to vector<1x128xf32>
    %c0_11 = arith.constant 0 : index
    %c0_12 = arith.constant 0 : index
    %c0_13 = arith.constant 0 : index
    %8 = vector.load %arg9[%c0_11, %c0_12, %c0_13] : memref<2x1x128xf32, #tpu.memory_space<vmem>>, vector<1x1x128xf32>
    %9 = vector.shape_cast %8 : vector<1x1x128xf32> to vector<1x128xf32>
    %c0_14 = arith.constant 0 : index
    %c0_15 = arith.constant 0 : index
    %c0_16 = arith.constant 0 : index
    %10 = vector.load %arg10[%c0_14, %c0_15, %c0_16] : memref<2x1x128xf32, #tpu.memory_space<vmem>>, vector<1x1x128xf32>
    %11 = vector.shape_cast %10 : vector<1x1x128xf32> to vector<1x128xf32>
    %c0_17 = arith.constant 0 : index
    %c0_18 = arith.constant 0 : index
    %c0_19 = arith.constant 0 : index
    %12 = vector.load %arg11[%c0_17, %c0_18, %c0_19] : memref<2x128x256xbf16, #tpu.memory_space<vmem>>, vector<1x128x256xbf16>
    %13 = vector.shape_cast %12 : vector<1x128x256xbf16> to vector<128x256xbf16>
    %c0_20 = arith.constant 0 : index
    %c0_21 = arith.constant 0 : index
    %c0_22 = arith.constant 0 : index
    %14 = vector.load %arg12[%c0_20, %c0_21, %c0_22] : memref<2x1x256xf32, #tpu.memory_space<vmem>>, vector<1x1x256xf32>
    %15 = vector.shape_cast %14 : vector<1x1x256xf32> to vector<1x256xf32>
    %c0_23 = arith.constant 0 : index
    %c0_24 = arith.constant 0 : index
    %c0_25 = arith.constant 0 : index
    %16 = vector.load %arg13[%c0_23, %c0_24, %c0_25] : memref<2x256x128xbf16, #tpu.memory_space<vmem>>, vector<1x256x128xbf16>
    %17 = vector.shape_cast %16 : vector<1x256x128xbf16> to vector<256x128xbf16>
    %c0_26 = arith.constant 0 : index
    %c0_27 = arith.constant 0 : index
    %c0_28 = arith.constant 0 : index
    %18 = vector.load %arg14[%c0_26, %c0_27, %c0_28] : memref<2x1x128xf32, #tpu.memory_space<vmem>>, vector<1x1x128xf32>
    %19 = vector.shape_cast %18 : vector<1x1x128xf32> to vector<1x128xf32>
    %c0_29 = arith.constant 0 : index
    %c0_30 = arith.constant 0 : index
    %c0_31 = arith.constant 0 : index
    %20 = vector.load %arg15[%c0_29, %c0_30, %c0_31] : memref<2x1x128xf32, #tpu.memory_space<vmem>>, vector<1x1x128xf32>
    %21 = vector.shape_cast %20 : vector<1x1x128xf32> to vector<1x128xf32>
    %c0_32 = arith.constant 0 : index
    %c0_33 = arith.constant 0 : index
    %c0_34 = arith.constant 0 : index
    %22 = vector.load %arg16[%c0_32, %c0_33, %c0_34] : memref<2x1x128xf32, #tpu.memory_space<vmem>>, vector<1x1x128xf32>
    %23 = vector.shape_cast %22 : vector<1x1x128xf32> to vector<1x128xf32>
    %c1 = arith.constant 1 : index
    %c0_35 = arith.constant 0 : index
    %c0_36 = arith.constant 0 : index
    %24 = vector.load %arg5[%c1, %c0_35, %c0_36] : memref<2x128x384xbf16, #tpu.memory_space<vmem>>, vector<1x128x384xbf16>
    %25 = vector.shape_cast %24 : vector<1x128x384xbf16> to vector<128x384xbf16>
    %c1_37 = arith.constant 1 : index
    %c0_38 = arith.constant 0 : index
    %c0_39 = arith.constant 0 : index
    %26 = vector.load %arg6[%c1_37, %c0_38, %c0_39] : memref<2x1x384xf32, #tpu.memory_space<vmem>>, vector<1x1x384xf32>
    %27 = vector.shape_cast %26 : vector<1x1x384xf32> to vector<1x384xf32>
    %c1_40 = arith.constant 1 : index
    %c0_41 = arith.constant 0 : index
    %c0_42 = arith.constant 0 : index
    %28 = vector.load %arg7[%c1_40, %c0_41, %c0_42] : memref<2x128x128xbf16, #tpu.memory_space<vmem>>, vector<1x128x128xbf16>
    %29 = vector.shape_cast %28 : vector<1x128x128xbf16> to vector<128x128xbf16>
    %c1_43 = arith.constant 1 : index
    %c0_44 = arith.constant 0 : index
    %c0_45 = arith.constant 0 : index
    %30 = vector.load %arg8[%c1_43, %c0_44, %c0_45] : memref<2x1x128xf32, #tpu.memory_space<vmem>>, vector<1x1x128xf32>
    %31 = vector.shape_cast %30 : vector<1x1x128xf32> to vector<1x128xf32>
    %c1_46 = arith.constant 1 : index
    %c0_47 = arith.constant 0 : index
    %c0_48 = arith.constant 0 : index
    %32 = vector.load %arg9[%c1_46, %c0_47, %c0_48] : memref<2x1x128xf32, #tpu.memory_space<vmem>>, vector<1x1x128xf32>
    %33 = vector.shape_cast %32 : vector<1x1x128xf32> to vector<1x128xf32>
    %c1_49 = arith.constant 1 : index
    %c0_50 = arith.constant 0 : index
    %c0_51 = arith.constant 0 : index
    %34 = vector.load %arg10[%c1_49, %c0_50, %c0_51] : memref<2x1x128xf32, #tpu.memory_space<vmem>>, vector<1x1x128xf32>
    %35 = vector.shape_cast %34 : vector<1x1x128xf32> to vector<1x128xf32>
    %c1_52 = arith.constant 1 : index
    %c0_53 = arith.constant 0 : index
    %c0_54 = arith.constant 0 : index
    %36 = vector.load %arg11[%c1_52, %c0_53, %c0_54] : memref<2x128x256xbf16, #tpu.memory_space<vmem>>, vector<1x128x256xbf16>
    %37 = vector.shape_cast %36 : vector<1x128x256xbf16> to vector<128x256xbf16>
    %c1_55 = arith.constant 1 : index
    %c0_56 = arith.constant 0 : index
    %c0_57 = arith.constant 0 : index
    %38 = vector.load %arg12[%c1_55, %c0_56, %c0_57] : memref<2x1x256xf32, #tpu.memory_space<vmem>>, vector<1x1x256xf32>
    %39 = vector.shape_cast %38 : vector<1x1x256xf32> to vector<1x256xf32>
    %c1_58 = arith.constant 1 : index
    %c0_59 = arith.constant 0 : index
    %c0_60 = arith.constant 0 : index
    %40 = vector.load %arg13[%c1_58, %c0_59, %c0_60] : memref<2x256x128xbf16, #tpu.memory_space<vmem>>, vector<1x256x128xbf16>
    %41 = vector.shape_cast %40 : vector<1x256x128xbf16> to vector<256x128xbf16>
    %c1_61 = arith.constant 1 : index
    %c0_62 = arith.constant 0 : index
    %c0_63 = arith.constant 0 : index
    %42 = vector.load %arg14[%c1_61, %c0_62, %c0_63] : memref<2x1x128xf32, #tpu.memory_space<vmem>>, vector<1x1x128xf32>
    %43 = vector.shape_cast %42 : vector<1x1x128xf32> to vector<1x128xf32>
    %c1_64 = arith.constant 1 : index
    %c0_65 = arith.constant 0 : index
    %c0_66 = arith.constant 0 : index
    %44 = vector.load %arg15[%c1_64, %c0_65, %c0_66] : memref<2x1x128xf32, #tpu.memory_space<vmem>>, vector<1x1x128xf32>
    %45 = vector.shape_cast %44 : vector<1x1x128xf32> to vector<1x128xf32>
    %c1_67 = arith.constant 1 : index
    %c0_68 = arith.constant 0 : index
    %c0_69 = arith.constant 0 : index
    %46 = vector.load %arg16[%c1_67, %c0_68, %c0_69] : memref<2x1x128xf32, #tpu.memory_space<vmem>>, vector<1x1x128xf32>
    %47 = vector.shape_cast %46 : vector<1x1x128xf32> to vector<1x128xf32>
    %c0_70 = arith.constant 0 : index
    %c0_71 = arith.constant 0 : index
    %48 = vector.load %arg1[%c0_70, %c0_71] : memref<32x128xf32, #tpu.memory_space<vmem>>, vector<32x128xf32>
    %c0_72 = arith.constant 0 : index
    %c0_73 = arith.constant 0 : index
    %49 = vector.load %arg2[%c0_72, %c0_73] : memref<2x16xf32, #tpu.memory_space<vmem>>, vector<2x16xf32>
    %c0_74 = arith.constant 0 : index
    %c0_75 = arith.constant 0 : index
    %50 = vector.load %arg3[%c0_74, %c0_75] : memref<1x128xf32, #tpu.memory_space<vmem>>, vector<1x128xf32>
    %c0_76 = arith.constant 0 : index
    %c0_77 = arith.constant 0 : index
    %51 = vector.load %arg4[%c0_76, %c0_77] : memref<1x128xf32, #tpu.memory_space<vmem>>, vector<1x128xf32>
    %c0_78 = arith.constant 0 : index
    %c0_79 = arith.constant 0 : index
    %52 = vector.load %arg17[%c0_78, %c0_79] : memref<4x128xbf16, #tpu.memory_space<vmem>>, vector<4x128xbf16>
    %c0_80 = arith.constant 0 : index
    %c0_81 = arith.constant 0 : index
    %53 = vector.load %arg18[%c0_80, %c0_81] : memref<1x4xf32, #tpu.memory_space<vmem>>, vector<1x4xf32>
    %cst = arith.constant dense<0.000000e+00> : vector<32xf32>
    %54 = vector.multi_reduction <add>, %48, %cst [1] : vector<32x128xf32> to vector<32xf32>
    %55 = vector.shape_cast %54 : vector<32xf32> to vector<32x1xf32>
    %cst_82 = arith.constant 1.280000e+02 : f32
    %56 = vector.broadcast %cst_82 : f32 to vector<32x1xf32>
    %57 = arith.divf %55, %56 : vector<32x1xf32>
    %58 = vector.broadcast %57 : vector<32x1xf32> to vector<32x128xf32>
    %59 = arith.subf %48, %58 : vector<32x128xf32>
    %60 = arith.mulf %59, %59 : vector<32x128xf32>
    %cst_83 = arith.constant dense<0.000000e+00> : vector<32xf32>
    %61 = vector.multi_reduction <add>, %60, %cst_83 [1] : vector<32x128xf32> to vector<32xf32>
    %62 = vector.shape_cast %61 : vector<32xf32> to vector<32x1xf32>
    %cst_84 = arith.constant 1.280000e+02 : f32
    %63 = vector.broadcast %cst_84 : f32 to vector<32x1xf32>
    %64 = arith.divf %62, %63 : vector<32x1xf32>
    %cst_85 = arith.constant 9.99999996E-13 : f32
    %65 = vector.broadcast %cst_85 : f32 to vector<32x1xf32>
    %66 = arith.addf %64, %65 : vector<32x1xf32>
    %67 = math.rsqrt %66 : vector<32x1xf32>
    %68 = vector.broadcast %67 : vector<32x1xf32> to vector<32x128xf32>
    %69 = arith.mulf %59, %68 : vector<32x128xf32>
    %70 = vector.broadcast %50 : vector<1x128xf32> to vector<32x128xf32>
    %71 = arith.mulf %69, %70 : vector<32x128xf32>
    %72 = vector.broadcast %51 : vector<1x128xf32> to vector<32x128xf32>
    %73 = arith.addf %71, %72 : vector<32x128xf32>
    %74 = arith.truncf %73 : vector<32x128xf32> to vector<32x128xbf16>
    %cst_86 = arith.constant dense<0.000000e+00> : vector<32x384xf32>
    %75 = tpu.matmul %74, %1, %cst_86 {dimension_numbers = #tpu.dot_dimension_numbers<[1], [0], [0], [1], [0, 0, 1, 1], [], []>} : vector<32x128xbf16>, vector<128x384xbf16>, vector<32x384xf32> -> vector<32x384xf32>
    %76 = vector.broadcast %3 : vector<1x384xf32> to vector<32x384xf32>
    %77 = arith.addf %75, %76 : vector<32x384xf32>
    %78 = vector.extract_strided_slice %77 {offsets = [0, 0], sizes = [32, 128], strides = [1, 1]} : vector<32x384xf32> to vector<32x128xf32>
    %79 = vector.extract_strided_slice %77 {offsets = [0, 128], sizes = [32, 128], strides = [1, 1]} : vector<32x384xf32> to vector<32x128xf32>
    %80 = vector.extract_strided_slice %77 {offsets = [0, 256], sizes = [32, 128], strides = [1, 1]} : vector<32x384xf32> to vector<32x128xf32>
    %81 = vector.extract_strided_slice %49 {offsets = [0, 0], sizes = [1, 16], strides = [1, 1]} : vector<2x16xf32> to vector<1x16xf32>
    %82 = vector.extract_strided_slice %78 {offsets = [0, 0], sizes = [16, 32], strides = [1, 1]} : vector<32x128xf32> to vector<16x32xf32>
    %83 = arith.truncf %82 : vector<16x32xf32> to vector<16x32xbf16>
    %84 = vector.extract_strided_slice %79 {offsets = [0, 0], sizes = [16, 32], strides = [1, 1]} : vector<32x128xf32> to vector<16x32xf32>
    %85 = arith.truncf %84 : vector<16x32xf32> to vector<16x32xbf16>
    %86 = vector.extract_strided_slice %80 {offsets = [0, 0], sizes = [16, 32], strides = [1, 1]} : vector<32x128xf32> to vector<16x32xf32>
    %87 = arith.truncf %86 : vector<16x32xf32> to vector<16x32xbf16>
    %cst_87 = arith.constant dense<0.000000e+00> : vector<16x16xf32>
    %88 = tpu.matmul %83, %85, %cst_87 {dimension_numbers = #tpu.dot_dimension_numbers<[1], [1], [0], [0], [0, 0, 1, 0], [], []>} : vector<16x32xbf16>, vector<16x32xbf16>, vector<16x16xf32> -> vector<16x16xf32>
    %cst_88 = arith.constant 0.176776692 : f32
    %89 = vector.broadcast %cst_88 : f32 to vector<16x16xf32>
    %90 = arith.mulf %88, %89 : vector<16x16xf32>
    %91 = vector.broadcast %81 : vector<1x16xf32> to vector<16x16xf32>
    %92 = arith.addf %90, %91 : vector<16x16xf32>
    %cst_89 = arith.constant dense<0xFF800000> : vector<16xf32>
    %93 = vector.multi_reduction <maximumf>, %92, %cst_89 [1] : vector<16x16xf32> to vector<16xf32>
    %94 = vector.shape_cast %93 : vector<16xf32> to vector<16x1xf32>
    %95 = vector.broadcast %94 : vector<16x1xf32> to vector<16x16xf32>
    %96 = arith.subf %92, %95 : vector<16x16xf32>
    %97 = math.exp %96 : vector<16x16xf32>
    %cst_90 = arith.constant dense<0.000000e+00> : vector<16xf32>
    %98 = vector.multi_reduction <add>, %97, %cst_90 [1] : vector<16x16xf32> to vector<16xf32>
    %99 = vector.shape_cast %98 : vector<16xf32> to vector<16x1xf32>
    %100 = vector.broadcast %99 : vector<16x1xf32> to vector<16x16xf32>
    %101 = arith.divf %97, %100 : vector<16x16xf32>
    %102 = arith.truncf %101 : vector<16x16xf32> to vector<16x16xbf16>
    %cst_91 = arith.constant dense<0.000000e+00> : vector<16x32xf32>
    %103 = tpu.matmul %102, %87, %cst_91 {dimension_numbers = #tpu.dot_dimension_numbers<[1], [0], [0], [1], [0, 0, 1, 1], [], []>} : vector<16x16xbf16>, vector<16x32xbf16>, vector<16x32xf32> -> vector<16x32xf32>
    %104 = vector.extract_strided_slice %78 {offsets = [0, 32], sizes = [16, 32], strides = [1, 1]} : vector<32x128xf32> to vector<16x32xf32>
    %105 = arith.truncf %104 : vector<16x32xf32> to vector<16x32xbf16>
    %106 = vector.extract_strided_slice %79 {offsets = [0, 32], sizes = [16, 32], strides = [1, 1]} : vector<32x128xf32> to vector<16x32xf32>
    %107 = arith.truncf %106 : vector<16x32xf32> to vector<16x32xbf16>
    %108 = vector.extract_strided_slice %80 {offsets = [0, 32], sizes = [16, 32], strides = [1, 1]} : vector<32x128xf32> to vector<16x32xf32>
    %109 = arith.truncf %108 : vector<16x32xf32> to vector<16x32xbf16>
    %cst_92 = arith.constant dense<0.000000e+00> : vector<16x16xf32>
    %110 = tpu.matmul %105, %107, %cst_92 {dimension_numbers = #tpu.dot_dimension_numbers<[1], [1], [0], [0], [0, 0, 1, 0], [], []>} : vector<16x32xbf16>, vector<16x32xbf16>, vector<16x16xf32> -> vector<16x16xf32>
    %cst_93 = arith.constant 0.176776692 : f32
    %111 = vector.broadcast %cst_93 : f32 to vector<16x16xf32>
    %112 = arith.mulf %110, %111 : vector<16x16xf32>
    %113 = vector.broadcast %81 : vector<1x16xf32> to vector<16x16xf32>
    %114 = arith.addf %112, %113 : vector<16x16xf32>
    %cst_94 = arith.constant dense<0xFF800000> : vector<16xf32>
    %115 = vector.multi_reduction <maximumf>, %114, %cst_94 [1] : vector<16x16xf32> to vector<16xf32>
    %116 = vector.shape_cast %115 : vector<16xf32> to vector<16x1xf32>
    %117 = vector.broadcast %116 : vector<16x1xf32> to vector<16x16xf32>
    %118 = arith.subf %114, %117 : vector<16x16xf32>
    %119 = math.exp %118 : vector<16x16xf32>
    %cst_95 = arith.constant dense<0.000000e+00> : vector<16xf32>
    %120 = vector.multi_reduction <add>, %119, %cst_95 [1] : vector<16x16xf32> to vector<16xf32>
    %121 = vector.shape_cast %120 : vector<16xf32> to vector<16x1xf32>
    %122 = vector.broadcast %121 : vector<16x1xf32> to vector<16x16xf32>
    %123 = arith.divf %119, %122 : vector<16x16xf32>
    %124 = arith.truncf %123 : vector<16x16xf32> to vector<16x16xbf16>
    %cst_96 = arith.constant dense<0.000000e+00> : vector<16x32xf32>
    %125 = tpu.matmul %124, %109, %cst_96 {dimension_numbers = #tpu.dot_dimension_numbers<[1], [0], [0], [1], [0, 0, 1, 1], [], []>} : vector<16x16xbf16>, vector<16x32xbf16>, vector<16x32xf32> -> vector<16x32xf32>
    %126 = vector.extract_strided_slice %78 {offsets = [0, 64], sizes = [16, 32], strides = [1, 1]} : vector<32x128xf32> to vector<16x32xf32>
    %127 = arith.truncf %126 : vector<16x32xf32> to vector<16x32xbf16>
    %128 = vector.extract_strided_slice %79 {offsets = [0, 64], sizes = [16, 32], strides = [1, 1]} : vector<32x128xf32> to vector<16x32xf32>
    %129 = arith.truncf %128 : vector<16x32xf32> to vector<16x32xbf16>
    %130 = vector.extract_strided_slice %80 {offsets = [0, 64], sizes = [16, 32], strides = [1, 1]} : vector<32x128xf32> to vector<16x32xf32>
    %131 = arith.truncf %130 : vector<16x32xf32> to vector<16x32xbf16>
    %cst_97 = arith.constant dense<0.000000e+00> : vector<16x16xf32>
    %132 = tpu.matmul %127, %129, %cst_97 {dimension_numbers = #tpu.dot_dimension_numbers<[1], [1], [0], [0], [0, 0, 1, 0], [], []>} : vector<16x32xbf16>, vector<16x32xbf16>, vector<16x16xf32> -> vector<16x16xf32>
    %cst_98 = arith.constant 0.176776692 : f32
    %133 = vector.broadcast %cst_98 : f32 to vector<16x16xf32>
    %134 = arith.mulf %132, %133 : vector<16x16xf32>
    %135 = vector.broadcast %81 : vector<1x16xf32> to vector<16x16xf32>
    %136 = arith.addf %134, %135 : vector<16x16xf32>
    %cst_99 = arith.constant dense<0xFF800000> : vector<16xf32>
    %137 = vector.multi_reduction <maximumf>, %136, %cst_99 [1] : vector<16x16xf32> to vector<16xf32>
    %138 = vector.shape_cast %137 : vector<16xf32> to vector<16x1xf32>
    %139 = vector.broadcast %138 : vector<16x1xf32> to vector<16x16xf32>
    %140 = arith.subf %136, %139 : vector<16x16xf32>
    %141 = math.exp %140 : vector<16x16xf32>
    %cst_100 = arith.constant dense<0.000000e+00> : vector<16xf32>
    %142 = vector.multi_reduction <add>, %141, %cst_100 [1] : vector<16x16xf32> to vector<16xf32>
    %143 = vector.shape_cast %142 : vector<16xf32> to vector<16x1xf32>
    %144 = vector.broadcast %143 : vector<16x1xf32> to vector<16x16xf32>
    %145 = arith.divf %141, %144 : vector<16x16xf32>
    %146 = arith.truncf %145 : vector<16x16xf32> to vector<16x16xbf16>
    %cst_101 = arith.constant dense<0.000000e+00> : vector<16x32xf32>
    %147 = tpu.matmul %146, %131, %cst_101 {dimension_numbers = #tpu.dot_dimension_numbers<[1], [0], [0], [1], [0, 0, 1, 1], [], []>} : vector<16x16xbf16>, vector<16x32xbf16>, vector<16x32xf32> -> vector<16x32xf32>
    %148 = vector.extract_strided_slice %78 {offsets = [0, 96], sizes = [16, 32], strides = [1, 1]} : vector<32x128xf32> to vector<16x32xf32>
    %149 = arith.truncf %148 : vector<16x32xf32> to vector<16x32xbf16>
    %150 = vector.extract_strided_slice %79 {offsets = [0, 96], sizes = [16, 32], strides = [1, 1]} : vector<32x128xf32> to vector<16x32xf32>
    %151 = arith.truncf %150 : vector<16x32xf32> to vector<16x32xbf16>
    %152 = vector.extract_strided_slice %80 {offsets = [0, 96], sizes = [16, 32], strides = [1, 1]} : vector<32x128xf32> to vector<16x32xf32>
    %153 = arith.truncf %152 : vector<16x32xf32> to vector<16x32xbf16>
    %cst_102 = arith.constant dense<0.000000e+00> : vector<16x16xf32>
    %154 = tpu.matmul %149, %151, %cst_102 {dimension_numbers = #tpu.dot_dimension_numbers<[1], [1], [0], [0], [0, 0, 1, 0], [], []>} : vector<16x32xbf16>, vector<16x32xbf16>, vector<16x16xf32> -> vector<16x16xf32>
    %cst_103 = arith.constant 0.176776692 : f32
    %155 = vector.broadcast %cst_103 : f32 to vector<16x16xf32>
    %156 = arith.mulf %154, %155 : vector<16x16xf32>
    %157 = vector.broadcast %81 : vector<1x16xf32> to vector<16x16xf32>
    %158 = arith.addf %156, %157 : vector<16x16xf32>
    %cst_104 = arith.constant dense<0xFF800000> : vector<16xf32>
    %159 = vector.multi_reduction <maximumf>, %158, %cst_104 [1] : vector<16x16xf32> to vector<16xf32>
    %160 = vector.shape_cast %159 : vector<16xf32> to vector<16x1xf32>
    %161 = vector.broadcast %160 : vector<16x1xf32> to vector<16x16xf32>
    %162 = arith.subf %158, %161 : vector<16x16xf32>
    %163 = math.exp %162 : vector<16x16xf32>
    %cst_105 = arith.constant dense<0.000000e+00> : vector<16xf32>
    %164 = vector.multi_reduction <add>, %163, %cst_105 [1] : vector<16x16xf32> to vector<16xf32>
    %165 = vector.shape_cast %164 : vector<16xf32> to vector<16x1xf32>
    %166 = vector.broadcast %165 : vector<16x1xf32> to vector<16x16xf32>
    %167 = arith.divf %163, %166 : vector<16x16xf32>
    %168 = arith.truncf %167 : vector<16x16xf32> to vector<16x16xbf16>
    %cst_106 = arith.constant dense<0.000000e+00> : vector<16x32xf32>
    %169 = tpu.matmul %168, %153, %cst_106 {dimension_numbers = #tpu.dot_dimension_numbers<[1], [0], [0], [1], [0, 0, 1, 1], [], []>} : vector<16x16xbf16>, vector<16x32xbf16>, vector<16x32xf32> -> vector<16x32xf32>
    %170 = tpu.concatenate %103, %125, %147, %169 in 1 : vector<16x32xf32>, vector<16x32xf32>, vector<16x32xf32>, vector<16x32xf32> -> vector<16x128xf32>
    %171 = vector.extract_strided_slice %49 {offsets = [1, 0], sizes = [1, 16], strides = [1, 1]} : vector<2x16xf32> to vector<1x16xf32>
    %172 = vector.extract_strided_slice %78 {offsets = [16, 0], sizes = [16, 32], strides = [1, 1]} : vector<32x128xf32> to vector<16x32xf32>
    %173 = arith.truncf %172 : vector<16x32xf32> to vector<16x32xbf16>
    %174 = vector.extract_strided_slice %79 {offsets = [16, 0], sizes = [16, 32], strides = [1, 1]} : vector<32x128xf32> to vector<16x32xf32>
    %175 = arith.truncf %174 : vector<16x32xf32> to vector<16x32xbf16>
    %176 = vector.extract_strided_slice %80 {offsets = [16, 0], sizes = [16, 32], strides = [1, 1]} : vector<32x128xf32> to vector<16x32xf32>
    %177 = arith.truncf %176 : vector<16x32xf32> to vector<16x32xbf16>
    %cst_107 = arith.constant dense<0.000000e+00> : vector<16x16xf32>
    %178 = tpu.matmul %173, %175, %cst_107 {dimension_numbers = #tpu.dot_dimension_numbers<[1], [1], [0], [0], [0, 0, 1, 0], [], []>} : vector<16x32xbf16>, vector<16x32xbf16>, vector<16x16xf32> -> vector<16x16xf32>
    %cst_108 = arith.constant 0.176776692 : f32
    %179 = vector.broadcast %cst_108 : f32 to vector<16x16xf32>
    %180 = arith.mulf %178, %179 : vector<16x16xf32>
    %181 = vector.broadcast %171 : vector<1x16xf32> to vector<16x16xf32>
    %182 = arith.addf %180, %181 : vector<16x16xf32>
    %cst_109 = arith.constant dense<0xFF800000> : vector<16xf32>
    %183 = vector.multi_reduction <maximumf>, %182, %cst_109 [1] : vector<16x16xf32> to vector<16xf32>
    %184 = vector.shape_cast %183 : vector<16xf32> to vector<16x1xf32>
    %185 = vector.broadcast %184 : vector<16x1xf32> to vector<16x16xf32>
    %186 = arith.subf %182, %185 : vector<16x16xf32>
    %187 = math.exp %186 : vector<16x16xf32>
    %cst_110 = arith.constant dense<0.000000e+00> : vector<16xf32>
    %188 = vector.multi_reduction <add>, %187, %cst_110 [1] : vector<16x16xf32> to vector<16xf32>
    %189 = vector.shape_cast %188 : vector<16xf32> to vector<16x1xf32>
    %190 = vector.broadcast %189 : vector<16x1xf32> to vector<16x16xf32>
    %191 = arith.divf %187, %190 : vector<16x16xf32>
    %192 = arith.truncf %191 : vector<16x16xf32> to vector<16x16xbf16>
    %cst_111 = arith.constant dense<0.000000e+00> : vector<16x32xf32>
    %193 = tpu.matmul %192, %177, %cst_111 {dimension_numbers = #tpu.dot_dimension_numbers<[1], [0], [0], [1], [0, 0, 1, 1], [], []>} : vector<16x16xbf16>, vector<16x32xbf16>, vector<16x32xf32> -> vector<16x32xf32>
    %194 = vector.extract_strided_slice %78 {offsets = [16, 32], sizes = [16, 32], strides = [1, 1]} : vector<32x128xf32> to vector<16x32xf32>
    %195 = arith.truncf %194 : vector<16x32xf32> to vector<16x32xbf16>
    %196 = vector.extract_strided_slice %79 {offsets = [16, 32], sizes = [16, 32], strides = [1, 1]} : vector<32x128xf32> to vector<16x32xf32>
    %197 = arith.truncf %196 : vector<16x32xf32> to vector<16x32xbf16>
    %198 = vector.extract_strided_slice %80 {offsets = [16, 32], sizes = [16, 32], strides = [1, 1]} : vector<32x128xf32> to vector<16x32xf32>
    %199 = arith.truncf %198 : vector<16x32xf32> to vector<16x32xbf16>
    %cst_112 = arith.constant dense<0.000000e+00> : vector<16x16xf32>
    %200 = tpu.matmul %195, %197, %cst_112 {dimension_numbers = #tpu.dot_dimension_numbers<[1], [1], [0], [0], [0, 0, 1, 0], [], []>} : vector<16x32xbf16>, vector<16x32xbf16>, vector<16x16xf32> -> vector<16x16xf32>
    %cst_113 = arith.constant 0.176776692 : f32
    %201 = vector.broadcast %cst_113 : f32 to vector<16x16xf32>
    %202 = arith.mulf %200, %201 : vector<16x16xf32>
    %203 = vector.broadcast %171 : vector<1x16xf32> to vector<16x16xf32>
    %204 = arith.addf %202, %203 : vector<16x16xf32>
    %cst_114 = arith.constant dense<0xFF800000> : vector<16xf32>
    %205 = vector.multi_reduction <maximumf>, %204, %cst_114 [1] : vector<16x16xf32> to vector<16xf32>
    %206 = vector.shape_cast %205 : vector<16xf32> to vector<16x1xf32>
    %207 = vector.broadcast %206 : vector<16x1xf32> to vector<16x16xf32>
    %208 = arith.subf %204, %207 : vector<16x16xf32>
    %209 = math.exp %208 : vector<16x16xf32>
    %cst_115 = arith.constant dense<0.000000e+00> : vector<16xf32>
    %210 = vector.multi_reduction <add>, %209, %cst_115 [1] : vector<16x16xf32> to vector<16xf32>
    %211 = vector.shape_cast %210 : vector<16xf32> to vector<16x1xf32>
    %212 = vector.broadcast %211 : vector<16x1xf32> to vector<16x16xf32>
    %213 = arith.divf %209, %212 : vector<16x16xf32>
    %214 = arith.truncf %213 : vector<16x16xf32> to vector<16x16xbf16>
    %cst_116 = arith.constant dense<0.000000e+00> : vector<16x32xf32>
    %215 = tpu.matmul %214, %199, %cst_116 {dimension_numbers = #tpu.dot_dimension_numbers<[1], [0], [0], [1], [0, 0, 1, 1], [], []>} : vector<16x16xbf16>, vector<16x32xbf16>, vector<16x32xf32> -> vector<16x32xf32>
    %216 = vector.extract_strided_slice %78 {offsets = [16, 64], sizes = [16, 32], strides = [1, 1]} : vector<32x128xf32> to vector<16x32xf32>
    %217 = arith.truncf %216 : vector<16x32xf32> to vector<16x32xbf16>
    %218 = vector.extract_strided_slice %79 {offsets = [16, 64], sizes = [16, 32], strides = [1, 1]} : vector<32x128xf32> to vector<16x32xf32>
    %219 = arith.truncf %218 : vector<16x32xf32> to vector<16x32xbf16>
    %220 = vector.extract_strided_slice %80 {offsets = [16, 64], sizes = [16, 32], strides = [1, 1]} : vector<32x128xf32> to vector<16x32xf32>
    %221 = arith.truncf %220 : vector<16x32xf32> to vector<16x32xbf16>
    %cst_117 = arith.constant dense<0.000000e+00> : vector<16x16xf32>
    %222 = tpu.matmul %217, %219, %cst_117 {dimension_numbers = #tpu.dot_dimension_numbers<[1], [1], [0], [0], [0, 0, 1, 0], [], []>} : vector<16x32xbf16>, vector<16x32xbf16>, vector<16x16xf32> -> vector<16x16xf32>
    %cst_118 = arith.constant 0.176776692 : f32
    %223 = vector.broadcast %cst_118 : f32 to vector<16x16xf32>
    %224 = arith.mulf %222, %223 : vector<16x16xf32>
    %225 = vector.broadcast %171 : vector<1x16xf32> to vector<16x16xf32>
    %226 = arith.addf %224, %225 : vector<16x16xf32>
    %cst_119 = arith.constant dense<0xFF800000> : vector<16xf32>
    %227 = vector.multi_reduction <maximumf>, %226, %cst_119 [1] : vector<16x16xf32> to vector<16xf32>
    %228 = vector.shape_cast %227 : vector<16xf32> to vector<16x1xf32>
    %229 = vector.broadcast %228 : vector<16x1xf32> to vector<16x16xf32>
    %230 = arith.subf %226, %229 : vector<16x16xf32>
    %231 = math.exp %230 : vector<16x16xf32>
    %cst_120 = arith.constant dense<0.000000e+00> : vector<16xf32>
    %232 = vector.multi_reduction <add>, %231, %cst_120 [1] : vector<16x16xf32> to vector<16xf32>
    %233 = vector.shape_cast %232 : vector<16xf32> to vector<16x1xf32>
    %234 = vector.broadcast %233 : vector<16x1xf32> to vector<16x16xf32>
    %235 = arith.divf %231, %234 : vector<16x16xf32>
    %236 = arith.truncf %235 : vector<16x16xf32> to vector<16x16xbf16>
    %cst_121 = arith.constant dense<0.000000e+00> : vector<16x32xf32>
    %237 = tpu.matmul %236, %221, %cst_121 {dimension_numbers = #tpu.dot_dimension_numbers<[1], [0], [0], [1], [0, 0, 1, 1], [], []>} : vector<16x16xbf16>, vector<16x32xbf16>, vector<16x32xf32> -> vector<16x32xf32>
    %238 = vector.extract_strided_slice %78 {offsets = [16, 96], sizes = [16, 32], strides = [1, 1]} : vector<32x128xf32> to vector<16x32xf32>
    %239 = arith.truncf %238 : vector<16x32xf32> to vector<16x32xbf16>
    %240 = vector.extract_strided_slice %79 {offsets = [16, 96], sizes = [16, 32], strides = [1, 1]} : vector<32x128xf32> to vector<16x32xf32>
    %241 = arith.truncf %240 : vector<16x32xf32> to vector<16x32xbf16>
    %242 = vector.extract_strided_slice %80 {offsets = [16, 96], sizes = [16, 32], strides = [1, 1]} : vector<32x128xf32> to vector<16x32xf32>
    %243 = arith.truncf %242 : vector<16x32xf32> to vector<16x32xbf16>
    %cst_122 = arith.constant dense<0.000000e+00> : vector<16x16xf32>
    %244 = tpu.matmul %239, %241, %cst_122 {dimension_numbers = #tpu.dot_dimension_numbers<[1], [1], [0], [0], [0, 0, 1, 0], [], []>} : vector<16x32xbf16>, vector<16x32xbf16>, vector<16x16xf32> -> vector<16x16xf32>
    %cst_123 = arith.constant 0.176776692 : f32
    %245 = vector.broadcast %cst_123 : f32 to vector<16x16xf32>
    %246 = arith.mulf %244, %245 : vector<16x16xf32>
    %247 = vector.broadcast %171 : vector<1x16xf32> to vector<16x16xf32>
    %248 = arith.addf %246, %247 : vector<16x16xf32>
    %cst_124 = arith.constant dense<0xFF800000> : vector<16xf32>
    %249 = vector.multi_reduction <maximumf>, %248, %cst_124 [1] : vector<16x16xf32> to vector<16xf32>
    %250 = vector.shape_cast %249 : vector<16xf32> to vector<16x1xf32>
    %251 = vector.broadcast %250 : vector<16x1xf32> to vector<16x16xf32>
    %252 = arith.subf %248, %251 : vector<16x16xf32>
    %253 = math.exp %252 : vector<16x16xf32>
    %cst_125 = arith.constant dense<0.000000e+00> : vector<16xf32>
    %254 = vector.multi_reduction <add>, %253, %cst_125 [1] : vector<16x16xf32> to vector<16xf32>
    %255 = vector.shape_cast %254 : vector<16xf32> to vector<16x1xf32>
    %256 = vector.broadcast %255 : vector<16x1xf32> to vector<16x16xf32>
    %257 = arith.divf %253, %256 : vector<16x16xf32>
    %258 = arith.truncf %257 : vector<16x16xf32> to vector<16x16xbf16>
    %cst_126 = arith.constant dense<0.000000e+00> : vector<16x32xf32>
    %259 = tpu.matmul %258, %243, %cst_126 {dimension_numbers = #tpu.dot_dimension_numbers<[1], [0], [0], [1], [0, 0, 1, 1], [], []>} : vector<16x16xbf16>, vector<16x32xbf16>, vector<16x32xf32> -> vector<16x32xf32>
    %260 = tpu.concatenate %193, %215, %237, %259 in 1 : vector<16x32xf32>, vector<16x32xf32>, vector<16x32xf32>, vector<16x32xf32> -> vector<16x128xf32>
    %261 = tpu.concatenate %170, %260 in 0 : vector<16x128xf32>, vector<16x128xf32> -> vector<32x128xf32>
    %262 = arith.truncf %261 : vector<32x128xf32> to vector<32x128xbf16>
    %cst_127 = arith.constant dense<0.000000e+00> : vector<32x128xf32>
    %263 = tpu.matmul %262, %5, %cst_127 {dimension_numbers = #tpu.dot_dimension_numbers<[1], [0], [0], [1], [0, 0, 1, 1], [], []>} : vector<32x128xbf16>, vector<128x128xbf16>, vector<32x128xf32> -> vector<32x128xf32>
    %264 = vector.broadcast %7 : vector<1x128xf32> to vector<32x128xf32>
    %265 = arith.addf %263, %264 : vector<32x128xf32>
    %266 = arith.addf %265, %73 : vector<32x128xf32>
    %cst_128 = arith.constant dense<0.000000e+00> : vector<32xf32>
    %267 = vector.multi_reduction <add>, %266, %cst_128 [1] : vector<32x128xf32> to vector<32xf32>
    %268 = vector.shape_cast %267 : vector<32xf32> to vector<32x1xf32>
    %cst_129 = arith.constant 1.280000e+02 : f32
    %269 = vector.broadcast %cst_129 : f32 to vector<32x1xf32>
    %270 = arith.divf %268, %269 : vector<32x1xf32>
    %271 = vector.broadcast %270 : vector<32x1xf32> to vector<32x128xf32>
    %272 = arith.subf %266, %271 : vector<32x128xf32>
    %273 = arith.mulf %272, %272 : vector<32x128xf32>
    %cst_130 = arith.constant dense<0.000000e+00> : vector<32xf32>
    %274 = vector.multi_reduction <add>, %273, %cst_130 [1] : vector<32x128xf32> to vector<32xf32>
    %275 = vector.shape_cast %274 : vector<32xf32> to vector<32x1xf32>
    %cst_131 = arith.constant 1.280000e+02 : f32
    %276 = vector.broadcast %cst_131 : f32 to vector<32x1xf32>
    %277 = arith.divf %275, %276 : vector<32x1xf32>
    %cst_132 = arith.constant 9.99999996E-13 : f32
    %278 = vector.broadcast %cst_132 : f32 to vector<32x1xf32>
    %279 = arith.addf %277, %278 : vector<32x1xf32>
    %280 = math.rsqrt %279 : vector<32x1xf32>
    %281 = vector.broadcast %280 : vector<32x1xf32> to vector<32x128xf32>
    %282 = arith.mulf %272, %281 : vector<32x128xf32>
    %283 = vector.broadcast %9 : vector<1x128xf32> to vector<32x128xf32>
    %284 = arith.mulf %282, %283 : vector<32x128xf32>
    %285 = vector.broadcast %11 : vector<1x128xf32> to vector<32x128xf32>
    %286 = arith.addf %284, %285 : vector<32x128xf32>
    %287 = arith.truncf %286 : vector<32x128xf32> to vector<32x128xbf16>
    %cst_133 = arith.constant dense<0.000000e+00> : vector<32x256xf32>
    %288 = tpu.matmul %287, %13, %cst_133 {dimension_numbers = #tpu.dot_dimension_numbers<[1], [0], [0], [1], [0, 0, 1, 1], [], []>} : vector<32x128xbf16>, vector<128x256xbf16>, vector<32x256xf32> -> vector<32x256xf32>
    %289 = vector.broadcast %15 : vector<1x256xf32> to vector<32x256xf32>
    %290 = arith.addf %288, %289 : vector<32x256xf32>
    %cst_134 = arith.constant 5.000000e-01 : f32
    %291 = vector.broadcast %cst_134 : f32 to vector<32x256xf32>
    %292 = arith.mulf %291, %290 : vector<32x256xf32>
    %cst_135 = arith.constant 4.471500e-02 : f32
    %293 = vector.broadcast %cst_135 : f32 to vector<32x256xf32>
    %294 = arith.mulf %293, %290 : vector<32x256xf32>
    %295 = arith.mulf %294, %290 : vector<32x256xf32>
    %296 = arith.mulf %295, %290 : vector<32x256xf32>
    %297 = arith.addf %290, %296 : vector<32x256xf32>
    %cst_136 = arith.constant 0.797884583 : f32
    %298 = vector.broadcast %cst_136 : f32 to vector<32x256xf32>
    %299 = arith.mulf %298, %297 : vector<32x256xf32>
    %300 = math.tanh %299 : vector<32x256xf32>
    %cst_137 = arith.constant 1.000000e+00 : f32
    %301 = vector.broadcast %cst_137 : f32 to vector<32x256xf32>
    %302 = arith.addf %301, %300 : vector<32x256xf32>
    %303 = arith.mulf %292, %302 : vector<32x256xf32>
    %304 = arith.truncf %303 : vector<32x256xf32> to vector<32x256xbf16>
    %cst_138 = arith.constant dense<0.000000e+00> : vector<32x128xf32>
    %305 = tpu.matmul %304, %17, %cst_138 {dimension_numbers = #tpu.dot_dimension_numbers<[1], [0], [0], [1], [0, 0, 1, 1], [], []>} : vector<32x256xbf16>, vector<256x128xbf16>, vector<32x128xf32> -> vector<32x128xf32>
    %306 = vector.broadcast %19 : vector<1x128xf32> to vector<32x128xf32>
    %307 = arith.addf %305, %306 : vector<32x128xf32>
    %308 = arith.addf %307, %286 : vector<32x128xf32>
    %cst_139 = arith.constant dense<0.000000e+00> : vector<32xf32>
    %309 = vector.multi_reduction <add>, %308, %cst_139 [1] : vector<32x128xf32> to vector<32xf32>
    %310 = vector.shape_cast %309 : vector<32xf32> to vector<32x1xf32>
    %cst_140 = arith.constant 1.280000e+02 : f32
    %311 = vector.broadcast %cst_140 : f32 to vector<32x1xf32>
    %312 = arith.divf %310, %311 : vector<32x1xf32>
    %313 = vector.broadcast %312 : vector<32x1xf32> to vector<32x128xf32>
    %314 = arith.subf %308, %313 : vector<32x128xf32>
    %315 = arith.mulf %314, %314 : vector<32x128xf32>
    %cst_141 = arith.constant dense<0.000000e+00> : vector<32xf32>
    %316 = vector.multi_reduction <add>, %315, %cst_141 [1] : vector<32x128xf32> to vector<32xf32>
    %317 = vector.shape_cast %316 : vector<32xf32> to vector<32x1xf32>
    %cst_142 = arith.constant 1.280000e+02 : f32
    %318 = vector.broadcast %cst_142 : f32 to vector<32x1xf32>
    %319 = arith.divf %317, %318 : vector<32x1xf32>
    %cst_143 = arith.constant 9.99999996E-13 : f32
    %320 = vector.broadcast %cst_143 : f32 to vector<32x1xf32>
    %321 = arith.addf %319, %320 : vector<32x1xf32>
    %322 = math.rsqrt %321 : vector<32x1xf32>
    %323 = vector.broadcast %322 : vector<32x1xf32> to vector<32x128xf32>
    %324 = arith.mulf %314, %323 : vector<32x128xf32>
    %325 = vector.broadcast %21 : vector<1x128xf32> to vector<32x128xf32>
    %326 = arith.mulf %324, %325 : vector<32x128xf32>
    %327 = vector.broadcast %23 : vector<1x128xf32> to vector<32x128xf32>
    %328 = arith.addf %326, %327 : vector<32x128xf32>
    %329 = arith.truncf %328 : vector<32x128xf32> to vector<32x128xbf16>
    %cst_144 = arith.constant dense<0.000000e+00> : vector<32x384xf32>
    %330 = tpu.matmul %329, %25, %cst_144 {dimension_numbers = #tpu.dot_dimension_numbers<[1], [0], [0], [1], [0, 0, 1, 1], [], []>} : vector<32x128xbf16>, vector<128x384xbf16>, vector<32x384xf32> -> vector<32x384xf32>
    %331 = vector.broadcast %27 : vector<1x384xf32> to vector<32x384xf32>
    %332 = arith.addf %330, %331 : vector<32x384xf32>
    %333 = vector.extract_strided_slice %332 {offsets = [0, 0], sizes = [32, 128], strides = [1, 1]} : vector<32x384xf32> to vector<32x128xf32>
    %334 = vector.extract_strided_slice %332 {offsets = [0, 128], sizes = [32, 128], strides = [1, 1]} : vector<32x384xf32> to vector<32x128xf32>
    %335 = vector.extract_strided_slice %332 {offsets = [0, 256], sizes = [32, 128], strides = [1, 1]} : vector<32x384xf32> to vector<32x128xf32>
    %336 = vector.extract_strided_slice %49 {offsets = [0, 0], sizes = [1, 16], strides = [1, 1]} : vector<2x16xf32> to vector<1x16xf32>
    %337 = vector.extract_strided_slice %333 {offsets = [0, 0], sizes = [16, 32], strides = [1, 1]} : vector<32x128xf32> to vector<16x32xf32>
    %338 = arith.truncf %337 : vector<16x32xf32> to vector<16x32xbf16>
    %339 = vector.extract_strided_slice %334 {offsets = [0, 0], sizes = [16, 32], strides = [1, 1]} : vector<32x128xf32> to vector<16x32xf32>
    %340 = arith.truncf %339 : vector<16x32xf32> to vector<16x32xbf16>
    %341 = vector.extract_strided_slice %335 {offsets = [0, 0], sizes = [16, 32], strides = [1, 1]} : vector<32x128xf32> to vector<16x32xf32>
    %342 = arith.truncf %341 : vector<16x32xf32> to vector<16x32xbf16>
    %cst_145 = arith.constant dense<0.000000e+00> : vector<16x16xf32>
    %343 = tpu.matmul %338, %340, %cst_145 {dimension_numbers = #tpu.dot_dimension_numbers<[1], [1], [0], [0], [0, 0, 1, 0], [], []>} : vector<16x32xbf16>, vector<16x32xbf16>, vector<16x16xf32> -> vector<16x16xf32>
    %cst_146 = arith.constant 0.176776692 : f32
    %344 = vector.broadcast %cst_146 : f32 to vector<16x16xf32>
    %345 = arith.mulf %343, %344 : vector<16x16xf32>
    %346 = vector.broadcast %336 : vector<1x16xf32> to vector<16x16xf32>
    %347 = arith.addf %345, %346 : vector<16x16xf32>
    %cst_147 = arith.constant dense<0xFF800000> : vector<16xf32>
    %348 = vector.multi_reduction <maximumf>, %347, %cst_147 [1] : vector<16x16xf32> to vector<16xf32>
    %349 = vector.shape_cast %348 : vector<16xf32> to vector<16x1xf32>
    %350 = vector.broadcast %349 : vector<16x1xf32> to vector<16x16xf32>
    %351 = arith.subf %347, %350 : vector<16x16xf32>
    %352 = math.exp %351 : vector<16x16xf32>
    %cst_148 = arith.constant dense<0.000000e+00> : vector<16xf32>
    %353 = vector.multi_reduction <add>, %352, %cst_148 [1] : vector<16x16xf32> to vector<16xf32>
    %354 = vector.shape_cast %353 : vector<16xf32> to vector<16x1xf32>
    %355 = vector.broadcast %354 : vector<16x1xf32> to vector<16x16xf32>
    %356 = arith.divf %352, %355 : vector<16x16xf32>
    %357 = arith.truncf %356 : vector<16x16xf32> to vector<16x16xbf16>
    %cst_149 = arith.constant dense<0.000000e+00> : vector<16x32xf32>
    %358 = tpu.matmul %357, %342, %cst_149 {dimension_numbers = #tpu.dot_dimension_numbers<[1], [0], [0], [1], [0, 0, 1, 1], [], []>} : vector<16x16xbf16>, vector<16x32xbf16>, vector<16x32xf32> -> vector<16x32xf32>
    %359 = vector.extract_strided_slice %333 {offsets = [0, 32], sizes = [16, 32], strides = [1, 1]} : vector<32x128xf32> to vector<16x32xf32>
    %360 = arith.truncf %359 : vector<16x32xf32> to vector<16x32xbf16>
    %361 = vector.extract_strided_slice %334 {offsets = [0, 32], sizes = [16, 32], strides = [1, 1]} : vector<32x128xf32> to vector<16x32xf32>
    %362 = arith.truncf %361 : vector<16x32xf32> to vector<16x32xbf16>
    %363 = vector.extract_strided_slice %335 {offsets = [0, 32], sizes = [16, 32], strides = [1, 1]} : vector<32x128xf32> to vector<16x32xf32>
    %364 = arith.truncf %363 : vector<16x32xf32> to vector<16x32xbf16>
    %cst_150 = arith.constant dense<0.000000e+00> : vector<16x16xf32>
    %365 = tpu.matmul %360, %362, %cst_150 {dimension_numbers = #tpu.dot_dimension_numbers<[1], [1], [0], [0], [0, 0, 1, 0], [], []>} : vector<16x32xbf16>, vector<16x32xbf16>, vector<16x16xf32> -> vector<16x16xf32>
    %cst_151 = arith.constant 0.176776692 : f32
    %366 = vector.broadcast %cst_151 : f32 to vector<16x16xf32>
    %367 = arith.mulf %365, %366 : vector<16x16xf32>
    %368 = vector.broadcast %336 : vector<1x16xf32> to vector<16x16xf32>
    %369 = arith.addf %367, %368 : vector<16x16xf32>
    %cst_152 = arith.constant dense<0xFF800000> : vector<16xf32>
    %370 = vector.multi_reduction <maximumf>, %369, %cst_152 [1] : vector<16x16xf32> to vector<16xf32>
    %371 = vector.shape_cast %370 : vector<16xf32> to vector<16x1xf32>
    %372 = vector.broadcast %371 : vector<16x1xf32> to vector<16x16xf32>
    %373 = arith.subf %369, %372 : vector<16x16xf32>
    %374 = math.exp %373 : vector<16x16xf32>
    %cst_153 = arith.constant dense<0.000000e+00> : vector<16xf32>
    %375 = vector.multi_reduction <add>, %374, %cst_153 [1] : vector<16x16xf32> to vector<16xf32>
    %376 = vector.shape_cast %375 : vector<16xf32> to vector<16x1xf32>
    %377 = vector.broadcast %376 : vector<16x1xf32> to vector<16x16xf32>
    %378 = arith.divf %374, %377 : vector<16x16xf32>
    %379 = arith.truncf %378 : vector<16x16xf32> to vector<16x16xbf16>
    %cst_154 = arith.constant dense<0.000000e+00> : vector<16x32xf32>
    %380 = tpu.matmul %379, %364, %cst_154 {dimension_numbers = #tpu.dot_dimension_numbers<[1], [0], [0], [1], [0, 0, 1, 1], [], []>} : vector<16x16xbf16>, vector<16x32xbf16>, vector<16x32xf32> -> vector<16x32xf32>
    %381 = vector.extract_strided_slice %333 {offsets = [0, 64], sizes = [16, 32], strides = [1, 1]} : vector<32x128xf32> to vector<16x32xf32>
    %382 = arith.truncf %381 : vector<16x32xf32> to vector<16x32xbf16>
    %383 = vector.extract_strided_slice %334 {offsets = [0, 64], sizes = [16, 32], strides = [1, 1]} : vector<32x128xf32> to vector<16x32xf32>
    %384 = arith.truncf %383 : vector<16x32xf32> to vector<16x32xbf16>
    %385 = vector.extract_strided_slice %335 {offsets = [0, 64], sizes = [16, 32], strides = [1, 1]} : vector<32x128xf32> to vector<16x32xf32>
    %386 = arith.truncf %385 : vector<16x32xf32> to vector<16x32xbf16>
    %cst_155 = arith.constant dense<0.000000e+00> : vector<16x16xf32>
    %387 = tpu.matmul %382, %384, %cst_155 {dimension_numbers = #tpu.dot_dimension_numbers<[1], [1], [0], [0], [0, 0, 1, 0], [], []>} : vector<16x32xbf16>, vector<16x32xbf16>, vector<16x16xf32> -> vector<16x16xf32>
    %cst_156 = arith.constant 0.176776692 : f32
    %388 = vector.broadcast %cst_156 : f32 to vector<16x16xf32>
    %389 = arith.mulf %387, %388 : vector<16x16xf32>
    %390 = vector.broadcast %336 : vector<1x16xf32> to vector<16x16xf32>
    %391 = arith.addf %389, %390 : vector<16x16xf32>
    %cst_157 = arith.constant dense<0xFF800000> : vector<16xf32>
    %392 = vector.multi_reduction <maximumf>, %391, %cst_157 [1] : vector<16x16xf32> to vector<16xf32>
    %393 = vector.shape_cast %392 : vector<16xf32> to vector<16x1xf32>
    %394 = vector.broadcast %393 : vector<16x1xf32> to vector<16x16xf32>
    %395 = arith.subf %391, %394 : vector<16x16xf32>
    %396 = math.exp %395 : vector<16x16xf32>
    %cst_158 = arith.constant dense<0.000000e+00> : vector<16xf32>
    %397 = vector.multi_reduction <add>, %396, %cst_158 [1] : vector<16x16xf32> to vector<16xf32>
    %398 = vector.shape_cast %397 : vector<16xf32> to vector<16x1xf32>
    %399 = vector.broadcast %398 : vector<16x1xf32> to vector<16x16xf32>
    %400 = arith.divf %396, %399 : vector<16x16xf32>
    %401 = arith.truncf %400 : vector<16x16xf32> to vector<16x16xbf16>
    %cst_159 = arith.constant dense<0.000000e+00> : vector<16x32xf32>
    %402 = tpu.matmul %401, %386, %cst_159 {dimension_numbers = #tpu.dot_dimension_numbers<[1], [0], [0], [1], [0, 0, 1, 1], [], []>} : vector<16x16xbf16>, vector<16x32xbf16>, vector<16x32xf32> -> vector<16x32xf32>
    %403 = vector.extract_strided_slice %333 {offsets = [0, 96], sizes = [16, 32], strides = [1, 1]} : vector<32x128xf32> to vector<16x32xf32>
    %404 = arith.truncf %403 : vector<16x32xf32> to vector<16x32xbf16>
    %405 = vector.extract_strided_slice %334 {offsets = [0, 96], sizes = [16, 32], strides = [1, 1]} : vector<32x128xf32> to vector<16x32xf32>
    %406 = arith.truncf %405 : vector<16x32xf32> to vector<16x32xbf16>
    %407 = vector.extract_strided_slice %335 {offsets = [0, 96], sizes = [16, 32], strides = [1, 1]} : vector<32x128xf32> to vector<16x32xf32>
    %408 = arith.truncf %407 : vector<16x32xf32> to vector<16x32xbf16>
    %cst_160 = arith.constant dense<0.000000e+00> : vector<16x16xf32>
    %409 = tpu.matmul %404, %406, %cst_160 {dimension_numbers = #tpu.dot_dimension_numbers<[1], [1], [0], [0], [0, 0, 1, 0], [], []>} : vector<16x32xbf16>, vector<16x32xbf16>, vector<16x16xf32> -> vector<16x16xf32>
    %cst_161 = arith.constant 0.176776692 : f32
    %410 = vector.broadcast %cst_161 : f32 to vector<16x16xf32>
    %411 = arith.mulf %409, %410 : vector<16x16xf32>
    %412 = vector.broadcast %336 : vector<1x16xf32> to vector<16x16xf32>
    %413 = arith.addf %411, %412 : vector<16x16xf32>
    %cst_162 = arith.constant dense<0xFF800000> : vector<16xf32>
    %414 = vector.multi_reduction <maximumf>, %413, %cst_162 [1] : vector<16x16xf32> to vector<16xf32>
    %415 = vector.shape_cast %414 : vector<16xf32> to vector<16x1xf32>
    %416 = vector.broadcast %415 : vector<16x1xf32> to vector<16x16xf32>
    %417 = arith.subf %413, %416 : vector<16x16xf32>
    %418 = math.exp %417 : vector<16x16xf32>
    %cst_163 = arith.constant dense<0.000000e+00> : vector<16xf32>
    %419 = vector.multi_reduction <add>, %418, %cst_163 [1] : vector<16x16xf32> to vector<16xf32>
    %420 = vector.shape_cast %419 : vector<16xf32> to vector<16x1xf32>
    %421 = vector.broadcast %420 : vector<16x1xf32> to vector<16x16xf32>
    %422 = arith.divf %418, %421 : vector<16x16xf32>
    %423 = arith.truncf %422 : vector<16x16xf32> to vector<16x16xbf16>
    %cst_164 = arith.constant dense<0.000000e+00> : vector<16x32xf32>
    %424 = tpu.matmul %423, %408, %cst_164 {dimension_numbers = #tpu.dot_dimension_numbers<[1], [0], [0], [1], [0, 0, 1, 1], [], []>} : vector<16x16xbf16>, vector<16x32xbf16>, vector<16x32xf32> -> vector<16x32xf32>
    %425 = tpu.concatenate %358, %380, %402, %424 in 1 : vector<16x32xf32>, vector<16x32xf32>, vector<16x32xf32>, vector<16x32xf32> -> vector<16x128xf32>
    %426 = vector.extract_strided_slice %49 {offsets = [1, 0], sizes = [1, 16], strides = [1, 1]} : vector<2x16xf32> to vector<1x16xf32>
    %427 = vector.extract_strided_slice %333 {offsets = [16, 0], sizes = [16, 32], strides = [1, 1]} : vector<32x128xf32> to vector<16x32xf32>
    %428 = arith.truncf %427 : vector<16x32xf32> to vector<16x32xbf16>
    %429 = vector.extract_strided_slice %334 {offsets = [16, 0], sizes = [16, 32], strides = [1, 1]} : vector<32x128xf32> to vector<16x32xf32>
    %430 = arith.truncf %429 : vector<16x32xf32> to vector<16x32xbf16>
    %431 = vector.extract_strided_slice %335 {offsets = [16, 0], sizes = [16, 32], strides = [1, 1]} : vector<32x128xf32> to vector<16x32xf32>
    %432 = arith.truncf %431 : vector<16x32xf32> to vector<16x32xbf16>
    %cst_165 = arith.constant dense<0.000000e+00> : vector<16x16xf32>
    %433 = tpu.matmul %428, %430, %cst_165 {dimension_numbers = #tpu.dot_dimension_numbers<[1], [1], [0], [0], [0, 0, 1, 0], [], []>} : vector<16x32xbf16>, vector<16x32xbf16>, vector<16x16xf32> -> vector<16x16xf32>
    %cst_166 = arith.constant 0.176776692 : f32
    %434 = vector.broadcast %cst_166 : f32 to vector<16x16xf32>
    %435 = arith.mulf %433, %434 : vector<16x16xf32>
    %436 = vector.broadcast %426 : vector<1x16xf32> to vector<16x16xf32>
    %437 = arith.addf %435, %436 : vector<16x16xf32>
    %cst_167 = arith.constant dense<0xFF800000> : vector<16xf32>
    %438 = vector.multi_reduction <maximumf>, %437, %cst_167 [1] : vector<16x16xf32> to vector<16xf32>
    %439 = vector.shape_cast %438 : vector<16xf32> to vector<16x1xf32>
    %440 = vector.broadcast %439 : vector<16x1xf32> to vector<16x16xf32>
    %441 = arith.subf %437, %440 : vector<16x16xf32>
    %442 = math.exp %441 : vector<16x16xf32>
    %cst_168 = arith.constant dense<0.000000e+00> : vector<16xf32>
    %443 = vector.multi_reduction <add>, %442, %cst_168 [1] : vector<16x16xf32> to vector<16xf32>
    %444 = vector.shape_cast %443 : vector<16xf32> to vector<16x1xf32>
    %445 = vector.broadcast %444 : vector<16x1xf32> to vector<16x16xf32>
    %446 = arith.divf %442, %445 : vector<16x16xf32>
    %447 = arith.truncf %446 : vector<16x16xf32> to vector<16x16xbf16>
    %cst_169 = arith.constant dense<0.000000e+00> : vector<16x32xf32>
    %448 = tpu.matmul %447, %432, %cst_169 {dimension_numbers = #tpu.dot_dimension_numbers<[1], [0], [0], [1], [0, 0, 1, 1], [], []>} : vector<16x16xbf16>, vector<16x32xbf16>, vector<16x32xf32> -> vector<16x32xf32>
    %449 = vector.extract_strided_slice %333 {offsets = [16, 32], sizes = [16, 32], strides = [1, 1]} : vector<32x128xf32> to vector<16x32xf32>
    %450 = arith.truncf %449 : vector<16x32xf32> to vector<16x32xbf16>
    %451 = vector.extract_strided_slice %334 {offsets = [16, 32], sizes = [16, 32], strides = [1, 1]} : vector<32x128xf32> to vector<16x32xf32>
    %452 = arith.truncf %451 : vector<16x32xf32> to vector<16x32xbf16>
    %453 = vector.extract_strided_slice %335 {offsets = [16, 32], sizes = [16, 32], strides = [1, 1]} : vector<32x128xf32> to vector<16x32xf32>
    %454 = arith.truncf %453 : vector<16x32xf32> to vector<16x32xbf16>
    %cst_170 = arith.constant dense<0.000000e+00> : vector<16x16xf32>
    %455 = tpu.matmul %450, %452, %cst_170 {dimension_numbers = #tpu.dot_dimension_numbers<[1], [1], [0], [0], [0, 0, 1, 0], [], []>} : vector<16x32xbf16>, vector<16x32xbf16>, vector<16x16xf32> -> vector<16x16xf32>
    %cst_171 = arith.constant 0.176776692 : f32
    %456 = vector.broadcast %cst_171 : f32 to vector<16x16xf32>
    %457 = arith.mulf %455, %456 : vector<16x16xf32>
    %458 = vector.broadcast %426 : vector<1x16xf32> to vector<16x16xf32>
    %459 = arith.addf %457, %458 : vector<16x16xf32>
    %cst_172 = arith.constant dense<0xFF800000> : vector<16xf32>
    %460 = vector.multi_reduction <maximumf>, %459, %cst_172 [1] : vector<16x16xf32> to vector<16xf32>
    %461 = vector.shape_cast %460 : vector<16xf32> to vector<16x1xf32>
    %462 = vector.broadcast %461 : vector<16x1xf32> to vector<16x16xf32>
    %463 = arith.subf %459, %462 : vector<16x16xf32>
    %464 = math.exp %463 : vector<16x16xf32>
    %cst_173 = arith.constant dense<0.000000e+00> : vector<16xf32>
    %465 = vector.multi_reduction <add>, %464, %cst_173 [1] : vector<16x16xf32> to vector<16xf32>
    %466 = vector.shape_cast %465 : vector<16xf32> to vector<16x1xf32>
    %467 = vector.broadcast %466 : vector<16x1xf32> to vector<16x16xf32>
    %468 = arith.divf %464, %467 : vector<16x16xf32>
    %469 = arith.truncf %468 : vector<16x16xf32> to vector<16x16xbf16>
    %cst_174 = arith.constant dense<0.000000e+00> : vector<16x32xf32>
    %470 = tpu.matmul %469, %454, %cst_174 {dimension_numbers = #tpu.dot_dimension_numbers<[1], [0], [0], [1], [0, 0, 1, 1], [], []>} : vector<16x16xbf16>, vector<16x32xbf16>, vector<16x32xf32> -> vector<16x32xf32>
    %471 = vector.extract_strided_slice %333 {offsets = [16, 64], sizes = [16, 32], strides = [1, 1]} : vector<32x128xf32> to vector<16x32xf32>
    %472 = arith.truncf %471 : vector<16x32xf32> to vector<16x32xbf16>
    %473 = vector.extract_strided_slice %334 {offsets = [16, 64], sizes = [16, 32], strides = [1, 1]} : vector<32x128xf32> to vector<16x32xf32>
    %474 = arith.truncf %473 : vector<16x32xf32> to vector<16x32xbf16>
    %475 = vector.extract_strided_slice %335 {offsets = [16, 64], sizes = [16, 32], strides = [1, 1]} : vector<32x128xf32> to vector<16x32xf32>
    %476 = arith.truncf %475 : vector<16x32xf32> to vector<16x32xbf16>
    %cst_175 = arith.constant dense<0.000000e+00> : vector<16x16xf32>
    %477 = tpu.matmul %472, %474, %cst_175 {dimension_numbers = #tpu.dot_dimension_numbers<[1], [1], [0], [0], [0, 0, 1, 0], [], []>} : vector<16x32xbf16>, vector<16x32xbf16>, vector<16x16xf32> -> vector<16x16xf32>
    %cst_176 = arith.constant 0.176776692 : f32
    %478 = vector.broadcast %cst_176 : f32 to vector<16x16xf32>
    %479 = arith.mulf %477, %478 : vector<16x16xf32>
    %480 = vector.broadcast %426 : vector<1x16xf32> to vector<16x16xf32>
    %481 = arith.addf %479, %480 : vector<16x16xf32>
    %cst_177 = arith.constant dense<0xFF800000> : vector<16xf32>
    %482 = vector.multi_reduction <maximumf>, %481, %cst_177 [1] : vector<16x16xf32> to vector<16xf32>
    %483 = vector.shape_cast %482 : vector<16xf32> to vector<16x1xf32>
    %484 = vector.broadcast %483 : vector<16x1xf32> to vector<16x16xf32>
    %485 = arith.subf %481, %484 : vector<16x16xf32>
    %486 = math.exp %485 : vector<16x16xf32>
    %cst_178 = arith.constant dense<0.000000e+00> : vector<16xf32>
    %487 = vector.multi_reduction <add>, %486, %cst_178 [1] : vector<16x16xf32> to vector<16xf32>
    %488 = vector.shape_cast %487 : vector<16xf32> to vector<16x1xf32>
    %489 = vector.broadcast %488 : vector<16x1xf32> to vector<16x16xf32>
    %490 = arith.divf %486, %489 : vector<16x16xf32>
    %491 = arith.truncf %490 : vector<16x16xf32> to vector<16x16xbf16>
    %cst_179 = arith.constant dense<0.000000e+00> : vector<16x32xf32>
    %492 = tpu.matmul %491, %476, %cst_179 {dimension_numbers = #tpu.dot_dimension_numbers<[1], [0], [0], [1], [0, 0, 1, 1], [], []>} : vector<16x16xbf16>, vector<16x32xbf16>, vector<16x32xf32> -> vector<16x32xf32>
    %493 = vector.extract_strided_slice %333 {offsets = [16, 96], sizes = [16, 32], strides = [1, 1]} : vector<32x128xf32> to vector<16x32xf32>
    %494 = arith.truncf %493 : vector<16x32xf32> to vector<16x32xbf16>
    %495 = vector.extract_strided_slice %334 {offsets = [16, 96], sizes = [16, 32], strides = [1, 1]} : vector<32x128xf32> to vector<16x32xf32>
    %496 = arith.truncf %495 : vector<16x32xf32> to vector<16x32xbf16>
    %497 = vector.extract_strided_slice %335 {offsets = [16, 96], sizes = [16, 32], strides = [1, 1]} : vector<32x128xf32> to vector<16x32xf32>
    %498 = arith.truncf %497 : vector<16x32xf32> to vector<16x32xbf16>
    %cst_180 = arith.constant dense<0.000000e+00> : vector<16x16xf32>
    %499 = tpu.matmul %494, %496, %cst_180 {dimension_numbers = #tpu.dot_dimension_numbers<[1], [1], [0], [0], [0, 0, 1, 0], [], []>} : vector<16x32xbf16>, vector<16x32xbf16>, vector<16x16xf32> -> vector<16x16xf32>
    %cst_181 = arith.constant 0.176776692 : f32
    %500 = vector.broadcast %cst_181 : f32 to vector<16x16xf32>
    %501 = arith.mulf %499, %500 : vector<16x16xf32>
    %502 = vector.broadcast %426 : vector<1x16xf32> to vector<16x16xf32>
    %503 = arith.addf %501, %502 : vector<16x16xf32>
    %cst_182 = arith.constant dense<0xFF800000> : vector<16xf32>
    %504 = vector.multi_reduction <maximumf>, %503, %cst_182 [1] : vector<16x16xf32> to vector<16xf32>
    %505 = vector.shape_cast %504 : vector<16xf32> to vector<16x1xf32>
    %506 = vector.broadcast %505 : vector<16x1xf32> to vector<16x16xf32>
    %507 = arith.subf %503, %506 : vector<16x16xf32>
    %508 = math.exp %507 : vector<16x16xf32>
    %cst_183 = arith.constant dense<0.000000e+00> : vector<16xf32>
    %509 = vector.multi_reduction <add>, %508, %cst_183 [1] : vector<16x16xf32> to vector<16xf32>
    %510 = vector.shape_cast %509 : vector<16xf32> to vector<16x1xf32>
    %511 = vector.broadcast %510 : vector<16x1xf32> to vector<16x16xf32>
    %512 = arith.divf %508, %511 : vector<16x16xf32>
    %513 = arith.truncf %512 : vector<16x16xf32> to vector<16x16xbf16>
    %cst_184 = arith.constant dense<0.000000e+00> : vector<16x32xf32>
    %514 = tpu.matmul %513, %498, %cst_184 {dimension_numbers = #tpu.dot_dimension_numbers<[1], [0], [0], [1], [0, 0, 1, 1], [], []>} : vector<16x16xbf16>, vector<16x32xbf16>, vector<16x32xf32> -> vector<16x32xf32>
    %515 = tpu.concatenate %448, %470, %492, %514 in 1 : vector<16x32xf32>, vector<16x32xf32>, vector<16x32xf32>, vector<16x32xf32> -> vector<16x128xf32>
    %516 = tpu.concatenate %425, %515 in 0 : vector<16x128xf32>, vector<16x128xf32> -> vector<32x128xf32>
    %517 = arith.truncf %516 : vector<32x128xf32> to vector<32x128xbf16>
    %cst_185 = arith.constant dense<0.000000e+00> : vector<32x128xf32>
    %518 = tpu.matmul %517, %29, %cst_185 {dimension_numbers = #tpu.dot_dimension_numbers<[1], [0], [0], [1], [0, 0, 1, 1], [], []>} : vector<32x128xbf16>, vector<128x128xbf16>, vector<32x128xf32> -> vector<32x128xf32>
    %519 = vector.broadcast %31 : vector<1x128xf32> to vector<32x128xf32>
    %520 = arith.addf %518, %519 : vector<32x128xf32>
    %521 = arith.addf %520, %328 : vector<32x128xf32>
    %cst_186 = arith.constant dense<0.000000e+00> : vector<32xf32>
    %522 = vector.multi_reduction <add>, %521, %cst_186 [1] : vector<32x128xf32> to vector<32xf32>
    %523 = vector.shape_cast %522 : vector<32xf32> to vector<32x1xf32>
    %cst_187 = arith.constant 1.280000e+02 : f32
    %524 = vector.broadcast %cst_187 : f32 to vector<32x1xf32>
    %525 = arith.divf %523, %524 : vector<32x1xf32>
    %526 = vector.broadcast %525 : vector<32x1xf32> to vector<32x128xf32>
    %527 = arith.subf %521, %526 : vector<32x128xf32>
    %528 = arith.mulf %527, %527 : vector<32x128xf32>
    %cst_188 = arith.constant dense<0.000000e+00> : vector<32xf32>
    %529 = vector.multi_reduction <add>, %528, %cst_188 [1] : vector<32x128xf32> to vector<32xf32>
    %530 = vector.shape_cast %529 : vector<32xf32> to vector<32x1xf32>
    %cst_189 = arith.constant 1.280000e+02 : f32
    %531 = vector.broadcast %cst_189 : f32 to vector<32x1xf32>
    %532 = arith.divf %530, %531 : vector<32x1xf32>
    %cst_190 = arith.constant 9.99999996E-13 : f32
    %533 = vector.broadcast %cst_190 : f32 to vector<32x1xf32>
    %534 = arith.addf %532, %533 : vector<32x1xf32>
    %535 = math.rsqrt %534 : vector<32x1xf32>
    %536 = vector.broadcast %535 : vector<32x1xf32> to vector<32x128xf32>
    %537 = arith.mulf %527, %536 : vector<32x128xf32>
    %538 = vector.broadcast %33 : vector<1x128xf32> to vector<32x128xf32>
    %539 = arith.mulf %537, %538 : vector<32x128xf32>
    %540 = vector.broadcast %35 : vector<1x128xf32> to vector<32x128xf32>
    %541 = arith.addf %539, %540 : vector<32x128xf32>
    %542 = arith.truncf %541 : vector<32x128xf32> to vector<32x128xbf16>
    %cst_191 = arith.constant dense<0.000000e+00> : vector<32x256xf32>
    %543 = tpu.matmul %542, %37, %cst_191 {dimension_numbers = #tpu.dot_dimension_numbers<[1], [0], [0], [1], [0, 0, 1, 1], [], []>} : vector<32x128xbf16>, vector<128x256xbf16>, vector<32x256xf32> -> vector<32x256xf32>
    %544 = vector.broadcast %39 : vector<1x256xf32> to vector<32x256xf32>
    %545 = arith.addf %543, %544 : vector<32x256xf32>
    %cst_192 = arith.constant 5.000000e-01 : f32
    %546 = vector.broadcast %cst_192 : f32 to vector<32x256xf32>
    %547 = arith.mulf %546, %545 : vector<32x256xf32>
    %cst_193 = arith.constant 4.471500e-02 : f32
    %548 = vector.broadcast %cst_193 : f32 to vector<32x256xf32>
    %549 = arith.mulf %548, %545 : vector<32x256xf32>
    %550 = arith.mulf %549, %545 : vector<32x256xf32>
    %551 = arith.mulf %550, %545 : vector<32x256xf32>
    %552 = arith.addf %545, %551 : vector<32x256xf32>
    %cst_194 = arith.constant 0.797884583 : f32
    %553 = vector.broadcast %cst_194 : f32 to vector<32x256xf32>
    %554 = arith.mulf %553, %552 : vector<32x256xf32>
    %555 = math.tanh %554 : vector<32x256xf32>
    %cst_195 = arith.constant 1.000000e+00 : f32
    %556 = vector.broadcast %cst_195 : f32 to vector<32x256xf32>
    %557 = arith.addf %556, %555 : vector<32x256xf32>
    %558 = arith.mulf %547, %557 : vector<32x256xf32>
    %559 = arith.truncf %558 : vector<32x256xf32> to vector<32x256xbf16>
    %cst_196 = arith.constant dense<0.000000e+00> : vector<32x128xf32>
    %560 = tpu.matmul %559, %41, %cst_196 {dimension_numbers = #tpu.dot_dimension_numbers<[1], [0], [0], [1], [0, 0, 1, 1], [], []>} : vector<32x256xbf16>, vector<256x128xbf16>, vector<32x128xf32> -> vector<32x128xf32>
    %561 = vector.broadcast %43 : vector<1x128xf32> to vector<32x128xf32>
    %562 = arith.addf %560, %561 : vector<32x128xf32>
    %563 = arith.addf %562, %541 : vector<32x128xf32>
    %cst_197 = arith.constant dense<0.000000e+00> : vector<32xf32>
    %564 = vector.multi_reduction <add>, %563, %cst_197 [1] : vector<32x128xf32> to vector<32xf32>
    %565 = vector.shape_cast %564 : vector<32xf32> to vector<32x1xf32>
    %cst_198 = arith.constant 1.280000e+02 : f32
    %566 = vector.broadcast %cst_198 : f32 to vector<32x1xf32>
    %567 = arith.divf %565, %566 : vector<32x1xf32>
    %568 = vector.broadcast %567 : vector<32x1xf32> to vector<32x128xf32>
    %569 = arith.subf %563, %568 : vector<32x128xf32>
    %570 = arith.mulf %569, %569 : vector<32x128xf32>
    %cst_199 = arith.constant dense<0.000000e+00> : vector<32xf32>
    %571 = vector.multi_reduction <add>, %570, %cst_199 [1] : vector<32x128xf32> to vector<32xf32>
    %572 = vector.shape_cast %571 : vector<32xf32> to vector<32x1xf32>
    %cst_200 = arith.constant 1.280000e+02 : f32
    %573 = vector.broadcast %cst_200 : f32 to vector<32x1xf32>
    %574 = arith.divf %572, %573 : vector<32x1xf32>
    %cst_201 = arith.constant 9.99999996E-13 : f32
    %575 = vector.broadcast %cst_201 : f32 to vector<32x1xf32>
    %576 = arith.addf %574, %575 : vector<32x1xf32>
    %577 = math.rsqrt %576 : vector<32x1xf32>
    %578 = vector.broadcast %577 : vector<32x1xf32> to vector<32x128xf32>
    %579 = arith.mulf %569, %578 : vector<32x128xf32>
    %580 = vector.broadcast %45 : vector<1x128xf32> to vector<32x128xf32>
    %581 = arith.mulf %579, %580 : vector<32x128xf32>
    %582 = vector.broadcast %47 : vector<1x128xf32> to vector<32x128xf32>
    %583 = arith.addf %581, %582 : vector<32x128xf32>
    %584 = vector.extract_strided_slice %583 {offsets = [0, 0], sizes = [1, 128], strides = [1, 1]} : vector<32x128xf32> to vector<1x128xf32>
    %585 = vector.extract_strided_slice %583 {offsets = [16, 0], sizes = [1, 128], strides = [1, 1]} : vector<32x128xf32> to vector<1x128xf32>
    %586 = tpu.concatenate %584, %585 in 0 : vector<1x128xf32>, vector<1x128xf32> -> vector<2x128xf32>
    %587 = arith.truncf %586 : vector<2x128xf32> to vector<2x128xbf16>
    %cst_202 = arith.constant dense<0.000000e+00> : vector<2x4xf32>
    %588 = tpu.matmul %587, %52, %cst_202 {dimension_numbers = #tpu.dot_dimension_numbers<[1], [1], [0], [0], [0, 0, 1, 0], [], []>} : vector<2x128xbf16>, vector<4x128xbf16>, vector<2x4xf32> -> vector<2x4xf32>
    %589 = vector.broadcast %53 : vector<1x4xf32> to vector<2x4xf32>
    %590 = arith.addf %588, %589 : vector<2x4xf32>
    %c0_203 = arith.constant 0 : index
    %c0_204 = arith.constant 0 : index
    %591 = vector.load %arg20[%c0_203, %c0_204] : memref<2x4xf32, #tpu.memory_space<vmem>>, vector<2x4xf32>
    tpu.vector_store %arg20[%c0_203, %c0_204], %590 {strides = array<i32>} : memref<2x4xf32, #tpu.memory_space<vmem>>, vector<2x4xf32>,
    %c0_205 = arith.constant 0 : index
    %c0_206 = arith.constant 0 : index
    %592 = vector.load %arg19[%c0_205, %c0_206] : memref<2x4xf32, #tpu.memory_space<vmem>>, vector<2x4xf32>
    %cst_207 = arith.constant 0.000000e+00 : f32
    %593 = vector.broadcast %cst_207 : f32 to vector<2x4xf32>
    %594 = arith.maximumf %590, %593 : vector<2x4xf32>
    %595 = arith.mulf %590, %592 : vector<2x4xf32>
    %596 = arith.subf %594, %595 : vector<2x4xf32>
    %597 = math.absf %590 : vector<2x4xf32>
    %cst_208 = arith.constant 0.000000e+00 : f32
    %598 = vector.broadcast %cst_208 : f32 to vector<2x4xf32>
    %599 = arith.subf %598, %597 : vector<2x4xf32>
    %600 = math.exp %599 : vector<2x4xf32>
    %cst_209 = arith.constant 1.000000e+00 : f32
    %601 = vector.broadcast %cst_209 : f32 to vector<2x4xf32>
    %602 = arith.addf %601, %600 : vector<2x4xf32>
    %603 = math.log %602 : vector<2x4xf32>
    %604 = arith.addf %596, %603 : vector<2x4xf32>
    %cst_210 = arith.constant dense<0.000000e+00> : vector<2xf32>
    %605 = vector.multi_reduction <add>, %604, %cst_210 [1] : vector<2x4xf32> to vector<2xf32>
    %606 = vector.shape_cast %605 : vector<2xf32> to vector<2x1xf32>
    %cst_211 = arith.constant dense<0.000000e+00> : vector<1xf32>
    %607 = vector.multi_reduction <add>, %606, %cst_211 [0] : vector<2x1xf32> to vector<1xf32>
    %608 = vector.shape_cast %607 : vector<1xf32> to vector<1x1xf32>
    %cst_212 = arith.constant 8.000000e+00 : f32
    %609 = vector.broadcast %cst_212 : f32 to vector<1x1xf32>
    %610 = arith.divf %608, %609 : vector<1x1xf32>
    %c0_213 = arith.constant 0 : index
    %c0_214 = arith.constant 0 : index
    %611 = vector.load %arg21[%c0_213, %c0_214] : memref<1x1xf32, #tpu.memory_space<vmem>>, vector<1x1xf32>
    tpu.vector_store %arg21[%c0_213, %c0_214], %610 {strides = array<i32>} : memref<1x1xf32, #tpu.memory_space<vmem>>, vector<1x1xf32>,
    return
  }
  func.func @transform_0(%arg0: i32) -> (i32, i32) {
    %c0_i32 = arith.constant 0 : i32
    %c0_i32_0 = arith.constant 0 : i32
    %c0_i32_1 = arith.constant 0 : i32
    return %c0_i32, %c0_i32_0 : i32, i32
  }
  func.func @transform_1(%arg0: i32) -> (i32, i32) {
    %c0_i32 = arith.constant 0 : i32
    %c0_i32_0 = arith.constant 0 : i32
    %c0_i32_1 = arith.constant 0 : i32
    return %c0_i32, %c0_i32_0 : i32, i32
  }
  func.func @transform_2(%arg0: i32) -> (i32, i32) {
    %c0_i32 = arith.constant 0 : i32
    %c0_i32_0 = arith.constant 0 : i32
    %c0_i32_1 = arith.constant 0 : i32
    return %c0_i32, %c0_i32_0 : i32, i32
  }
  func.func @transform_3(%arg0: i32) -> (i32, i32) {
    %c0_i32 = arith.constant 0 : i32
    %c0_i32_0 = arith.constant 0 : i32
    %c0_i32_1 = arith.constant 0 : i32
    return %c0_i32, %c0_i32_0 : i32, i32
  }
  func.func @transform_4(%arg0: i32) -> (i32, i32, i32) {
    %c0_i32 = arith.constant 0 : i32
    %c0_i32_0 = arith.constant 0 : i32
    %c0_i32_1 = arith.constant 0 : i32
    %c0_i32_2 = arith.constant 0 : i32
    return %c0_i32, %c0_i32_0, %c0_i32_1 : i32, i32, i32
  }
  func.func @transform_5(%arg0: i32) -> (i32, i32, i32) {
    %c0_i32 = arith.constant 0 : i32
    %c0_i32_0 = arith.constant 0 : i32
    %c0_i32_1 = arith.constant 0 : i32
    %c0_i32_2 = arith.constant 0 : i32
    return %c0_i32, %c0_i32_0, %c0_i32_1 : i32, i32, i32
  }
  func.func @transform_6(%arg0: i32) -> (i32, i32, i32) {
    %c0_i32 = arith.constant 0 : i32
    %c0_i32_0 = arith.constant 0 : i32
    %c0_i32_1 = arith.constant 0 : i32
    %c0_i32_2 = arith.constant 0 : i32
    return %c0_i32, %c0_i32_0, %c0_i32_1 : i32, i32, i32
  }
  func.func @transform_7(%arg0: i32) -> (i32, i32, i32) {
    %c0_i32 = arith.constant 0 : i32
    %c0_i32_0 = arith.constant 0 : i32
    %c0_i32_1 = arith.constant 0 : i32
    %c0_i32_2 = arith.constant 0 : i32
    return %c0_i32, %c0_i32_0, %c0_i32_1 : i32, i32, i32
  }
  func.func @transform_8(%arg0: i32) -> (i32, i32, i32) {
    %c0_i32 = arith.constant 0 : i32
    %c0_i32_0 = arith.constant 0 : i32
    %c0_i32_1 = arith.constant 0 : i32
    %c0_i32_2 = arith.constant 0 : i32
    return %c0_i32, %c0_i32_0, %c0_i32_1 : i32, i32, i32
  }
  func.func @transform_9(%arg0: i32) -> (i32, i32, i32) {
    %c0_i32 = arith.constant 0 : i32
    %c0_i32_0 = arith.constant 0 : i32
    %c0_i32_1 = arith.constant 0 : i32
    %c0_i32_2 = arith.constant 0 : i32
    return %c0_i32, %c0_i32_0, %c0_i32_1 : i32, i32, i32
  }
  func.func @transform_10(%arg0: i32) -> (i32, i32, i32) {
    %c0_i32 = arith.constant 0 : i32
    %c0_i32_0 = arith.constant 0 : i32
    %c0_i32_1 = arith.constant 0 : i32
    %c0_i32_2 = arith.constant 0 : i32
    return %c0_i32, %c0_i32_0, %c0_i32_1 : i32, i32, i32
  }
  func.func @transform_11(%arg0: i32) -> (i32, i32, i32) {
    %c0_i32 = arith.constant 0 : i32
    %c0_i32_0 = arith.constant 0 : i32
    %c0_i32_1 = arith.constant 0 : i32
    %c0_i32_2 = arith.constant 0 : i32
    return %c0_i32, %c0_i32_0, %c0_i32_1 : i32, i32, i32
  }
  func.func @transform_12(%arg0: i32) -> (i32, i32, i32) {
    %c0_i32 = arith.constant 0 : i32
    %c0_i32_0 = arith.constant 0 : i32
    %c0_i32_1 = arith.constant 0 : i32
    %c0_i32_2 = arith.constant 0 : i32
    return %c0_i32, %c0_i32_0, %c0_i32_1 : i32, i32, i32
  }
  func.func @transform_13(%arg0: i32) -> (i32, i32, i32) {
    %c0_i32 = arith.constant 0 : i32
    %c0_i32_0 = arith.constant 0 : i32
    %c0_i32_1 = arith.constant 0 : i32
    %c0_i32_2 = arith.constant 0 : i32
    return %c0_i32, %c0_i32_0, %c0_i32_1 : i32, i32, i32
  }
  func.func @transform_14(%arg0: i32) -> (i32, i32, i32) {
    %c0_i32 = arith.constant 0 : i32
    %c0_i32_0 = arith.constant 0 : i32
    %c0_i32_1 = arith.constant 0 : i32
    %c0_i32_2 = arith.constant 0 : i32
    return %c0_i32, %c0_i32_0, %c0_i32_1 : i32, i32, i32
  }
  func.func @transform_15(%arg0: i32) -> (i32, i32, i32) {
    %c0_i32 = arith.constant 0 : i32
    %c0_i32_0 = arith.constant 0 : i32
    %c0_i32_1 = arith.constant 0 : i32
    %c0_i32_2 = arith.constant 0 : i32
    return %c0_i32, %c0_i32_0, %c0_i32_1 : i32, i32, i32
  }
  func.func @transform_16(%arg0: i32) -> (i32, i32) {
    %c0_i32 = arith.constant 0 : i32
    %c0_i32_0 = arith.constant 0 : i32
    %c0_i32_1 = arith.constant 0 : i32
    return %c0_i32, %c0_i32_0 : i32, i32
  }
  func.func @transform_17(%arg0: i32) -> (i32, i32) {
    %c0_i32 = arith.constant 0 : i32
    %c0_i32_0 = arith.constant 0 : i32
    %c0_i32_1 = arith.constant 0 : i32
    return %c0_i32, %c0_i32_0 : i32, i32
  }
  func.func @transform_18(%arg0: i32) -> (i32, i32) {
    %c0_i32 = arith.constant 0 : i32
    %c0_i32_0 = arith.constant 0 : i32
    %c0_i32_1 = arith.constant 0 : i32
    return %c0_i32, %c0_i32_0 : i32, i32
  }
  func.func @transform_19(%arg0: i32) -> (i32, i32) {
    %c0_i32 = arith.constant 0 : i32
    %c0_i32_0 = arith.constant 0 : i32
    %c0_i32_1 = arith.constant 0 : i32
    return %c0_i32, %c0_i32_0 : i32, i32
  }
  func.func @transform_20(%arg0: i32) -> (i32, i32) {
    %c0_i32 = arith.constant 0 : i32
    %c0_i32_0 = arith.constant 0 : i32
    %c0_i32_1 = arith.constant 0 : i32
    return %c0_i32, %c0_i32_0 : i32, i32
  }
}

</mosaic_0001>

<bundles_post_ra>
// kernel: bert_forward.1
= control target key start
LH: loop header
LB: loop body
LE: loop exit
PB: predicated region body
PF: predicated region fallthrough
CT: control target
= control target key end

     0   :  { %s6812_s0 = inlined_call_operand.vmem [shape: f32[32,128], index: 0, kind: input, shape index: {}]   ;;  %s6813_s1 = inlined_call_operand.vmem [shape: f32[2,16], index: 1, kind: input, shape index: {}]   ;;  %s6814_s2 = inlined_call_operand.vmem [shape: f32[1,128], index: 2, kind: input, shape index: {}]   ;;  %s6815_s3 = inlined_call_operand.vmem [shape: f32[1,128], index: 3, kind: input, shape index: {}]   ;;  %s6816_s4 = inlined_call_operand.vmem [shape: bf16[2,128,384], index: 4, kind: input, shape index: {}]   ;;  %s6817_s5 = inlined_call_operand.vmem [shape: f32[2,1,384], index: 5, kind: input, shape index: {}]   ;;  %s6818_s6 = inlined_call_operand.vmem [shape: bf16[2,128,128], index: 6, kind: input, shape index: {}]   ;;  %s6819_s7 = inlined_call_operand.vmem [shape: f32[2,1,128], index: 7, kind: input, shape index: {}]   ;;  %s6820_s8 = inlined_call_operand.vmem [shape: f32[2,1,128], index: 8, kind: input, shape index: {}]   ;;  %s6821_s9 = inlined_call_operand.vmem [shape: f32[2,1,128], index: 9, kind: input, shape index: {}]   ;;  %s6822_s10 = inlined_call_operand.vmem [shape: bf16[2,128,256], index: 10, kind: input, shape index: {}]   ;;  %s6823_s11 = inlined_call_operand.vmem [shape: f32[2,1,256], index: 11, kind: input, shape index: {}]   ;;  %s6824_s12 = inlined_call_operand.hbm [shape: bf16[2,256,128], index: 12, kind: input, shape index: {}]   ;;  %s6825_s13 = inlined_call_operand.vmem [shape: f32[2,1,128], index: 13, kind: input, shape index: {}]   ;;  %s6826_s14 = inlined_call_operand.vmem [shape: f32[2,1,128], index: 14, kind: input, shape index: {}]   ;;  %s6827_s15 = inlined_call_operand.vmem [shape: f32[2,1,128], index: 15, kind: input, shape index: {}]   ;;  %s6828_s16 = inlined_call_operand.vmem [shape: bf16[4,128], index: 16, kind: input, shape index: {}]   ;;  %s6829_s17 = inlined_call_operand.vmem [shape: f32[1,4], index: 17, kind: input, shape index: {}]   ;;  %s6830_s18 = inlined_call_operand.vmem [shape: f32[2,4], index: 18, kind: input, shape index: {}]   ;;  %s6831_s19 = inlined_call_operand.hbm [shape: f32[2,4], index: 19, kind: output, shape index: {0}]   ;;  %s6832_s20 = inlined_call_operand.hbm [shape: f32[1,1], index: 20, kind: output, shape index: {1}]  }
   0x1   :  { %6835 = sst [smem:[#allocation11_spill]] %s6812_s0 }
   0x2   :  { %6836 = sst [smem:[#allocation12_spill]] %s6813_s1 }
   0x3   :  { %6837 = sst [smem:[#allocation13_spill]] %s6814_s2 }
   0x4   :  { %6838 = sst [smem:[#allocation14_spill]] %s6815_s3 }
   0x5   :  { %6839 = sst [smem:[#allocation15_spill]] %s6816_s4 }
   0x6   :  { %26 = vsyncpa [#allocation3], 0 }
   0x7   :  { %27 = vsyncpa [#allocation4], 0 }
   0x8   :  { %28 = vsyncpa [#allocation7], 0  ;;  %s5496_s1 = smov [#allocation2]   ;;  %s5424_s2 = scalar_lea.hbm %s6824_s12, 4096 }
   0x9   :  { %s58_s22 = sshll.u32 %s5496_s1, 4  ;;  %p5425_p0 = scmp.ne.s32.totalorder %s6824_s12, %s5424_s2  ;;  %s59_s22 = int_to_ptr.vmem [resolvable:$true] %s58_s22 }
   0xa   :  { %p5428_p1 = scmp.lt.u32.totalorder %s5424_s2, %s6824_s12 }
   0xc   :  { %p5430_p2 = pnand %p5428_p1, %p5425_p0 }
   0xe   :  { %5433 = shalt.err (!%p5430_p2)
}
   0xf   :  { %s5434_s28 = scalar_lea.vmem %s59_s22, 4096  ;;  %p5439_p4 = scmp.lt.s32.totalorder %s59_s22, %s59_s22 }
  0x10   :  { %p5435_p3 = scmp.ne.s32.totalorder %s59_s22, %s5434_s28  ;;  %p5440_p5 = scmp.lt.s32.totalorder %s5434_s28, %s5434_s28 }
  0x12   :  { %p5441_p6 = por %p5440_p5, %p5439_p4 }
  0x14   :  { %p5442_p7 = pnand %p5441_p6, %p5435_p3 }
  0x16   :  { %5445 = shalt.err (!%p5442_p7)
}
  0x17   :  { %s5497_s4 = smov 64   ;;  %s5498_s29 = smov 4  }
  0x18   :  { %64 = dma.hbm_to_vmem [thread:$0]  %s6824_s12, 4096, %s59_s22, [#allocation3], %s5497_s4, %s5497_s4, %s5498_s29  }
  0x19   :  { %5490 = dma.done.wait [#allocation3], 4096  }
  0x1a   :  { %5491 = vsyncadd [#allocation3], 4294963200  ;;  %s6840_s23 = sld [smem:[#allocation11_spill]]  ;;  %s6841_s12 = sld [smem:[#allocation15_spill]]  ;;  %v5499_v30 = vmov 0   ;;  %v5500_v62 = vmov 0.0  }
  0x1b   :  { %553 = vmatprep.mubr.bf16.mxu0 %v5499_v30  ;;  %s6843_s27 = sld [smem:[#allocation14_spill]]  ;;  %vm5501_vm0 = vmmov 0   ;;  %vm626_vm1 = vcmask 261120   ;;  %s6844_s29 = sld [smem:[#allocation12_spill]]  ;;  %vm682_vm2 = vcmask 130048   ;;  %vm1154_vm3 = vcmask 523264  }
  0x1c   :  { %s5502_s30 = smov 96   ;;  %s5503_s0 = smov 32   ;;  %vm1157_vm4 = vcmask 785408   ;;  %vm4200_vm5 = vcmask 1040384   ;;  %vm4249_vm6 = vcmask 25600  }
  0x20   :  { %v301_v0 = vld [vmem:[%s6840_s23] sm:$0xff]  ;;  %v302_v1 = vld [vmem:[%s6840_s23 + $0x8] sm:$0xff]  ;;  %v303_v2 = vld [vmem:[%s6840_s23 + $0x10] sm:$0xff] }
  0x21   :  { %310 = vadd.xlane.f32.xlu0 %v301_v0  ;;  %v5064_v3 = vld [vmem:[%s6841_s12 + $0x4] ss:$12 sps:$4 sm:$0xff]   ;;  %v5066_v4 = vld [vmem:[%s6841_s12] ss:$12 sps:$4 sm:$0xff]   ;;  %v304_v16 = vld [vmem:[%s6840_s23 + $0x18] sm:$0xff]  ;;  %s6842_s23 = sld [smem:[#allocation13_spill]] }
  0x22   :  { %521 = vmatprep.subr.bf16.mxu0 %v5064_v3  ;;  %v5067_v18 = vld [vmem:[%s6841_s12 + $0x1c] ss:$12 sps:$4 sm:$0xff]   ;;  %v5069_v19 = vld [vmem:[%s6841_s12 + $0x18] ss:$12 sps:$4 sm:$0xff]   ;;  %v5070_v20 = vld [vmem:[%s6841_s12 + $0x34] ss:$12 sps:$4 sm:$0xff]  }
  0x23   :  { %522 = vmatpush1.bf16.msra.mxu0 %v5066_v4  ;;  %v5072_v21 = vld [vmem:[%s6841_s12 + $0x30] ss:$12 sps:$4 sm:$0xff]   ;;  %v5073_v22 = vld [vmem:[%s6841_s12 + $0x4c] ss:$12 sps:$4 sm:$0xff]   ;;  %v5075_v23 = vld [vmem:[%s6841_s12 + $0x48] ss:$12 sps:$4 sm:$0xff]  }
  0x24   :  { %523 = vmatprep.subr.bf16.mxu0 %v5067_v18  ;;  %v5076_v24 = vld [vmem:[%s6841_s12 + $0x64] ss:$12 sps:$4 sm:$0xff]   ;;  %v5078_v25 = vld [vmem:[%s6841_s12 + $0x60] ss:$12 sps:$4 sm:$0xff]   ;;  %v5079_v26 = vld [vmem:[%s6841_s12 + $0x7c] ss:$12 sps:$4 sm:$0xff]  }
  0x25   :  { %312 = vadd.xlane.f32.xlu0 %v302_v1  ;;  %v5081_v27 = vld [vmem:[%s6841_s12 + $0x78] ss:$12 sps:$4 sm:$0xff]   ;;  %v5082_v28 = vld [vmem:[%s6841_s12 + $0x94] ss:$12 sps:$4 sm:$0xff]   ;;  %v5084_v29 = vld [vmem:[%s6841_s12 + $0x90] ss:$12 sps:$4 sm:$0xff]  }
  0x26   :  { %v5085_v31 = vld [vmem:[%s6841_s12 + $0xac] ss:$12 sps:$4 sm:$0xff]   ;;  %v5087_v32 = vld [vmem:[%s6841_s12 + $0xa8] ss:$12 sps:$4 sm:$0xff]   ;;  %v4380_v51 = vld [vmem:[%s6843_s27] ss:$0 sm:$0xff] }
  0x27   :  { %524 = vmatpush1.bf16.msra.mxu0 %v5069_v19  ;;  %v5088_v33 = vld [vmem:[%s6841_s12 + $0x8] ss:$12 sps:$4 sm:$0xff]   ;;  %v5089_v34 = vld [vmem:[%s6841_s12 + $0x20] ss:$12 sps:$4 sm:$0xff]   ;;  %v5090_v56 = vld [vmem:[%s6841_s12 + $0x38] ss:$12 sps:$4 sm:$0xff]  }
  0x28   :  { %525 = vmatprep.subr.bf16.mxu0 %v5070_v20  ;;  %4716 = vmatprep.subr.bf16.mxu1 %v5088_v33  ;;  %v4379_v47 = vld [vmem:[%s6842_s23] ss:$0 sm:$0xff]  ;;  %v5091_v57 = vld [vmem:[%s6841_s12 + $0x50] ss:$12 sps:$4 sm:$0xff]   ;;  %v5092_v58 = vld [vmem:[%s6841_s12 + $0x68] ss:$12 sps:$4 sm:$0xff]  }
  0x29   :  { %314 = vadd.xlane.f32.xlu0 %v303_v2  ;;  %4717 = vmatpush3.bf16.msra.mxu1 %v5088_v33  ;;  %v5093_v59 = vld [vmem:[%s6841_s12 + $0x80] ss:$12 sps:$4 sm:$0xff]   ;;  %v5094_v60 = vld [vmem:[%s6841_s12 + $0x98] ss:$12 sps:$4 sm:$0xff]   ;;  %v5095_v61 = vld [vmem:[%s6841_s12 + $0xb0] ss:$12 sps:$4 sm:$0xff]  }
  0x2a   :  { %4718 = vmatprep.subr.bf16.mxu1 %v5089_v34 }
  0x2b   :  { %526 = vmatpush1.bf16.msra.mxu0 %v5072_v21 }
  0x2c   :  { %527 = vmatprep.subr.bf16.mxu0 %v5073_v22 }
  0x2d   :  { %4719 = vmatpush3.bf16.msra.mxu1 %v5089_v34 }
  0x2e   :  { %4720 = vmatprep.subr.bf16.mxu1 %v5090_v56 }
  0x2f   :  { %528 = vmatpush1.bf16.msra.mxu0 %v5075_v23 }
  0x30   :  { %529 = vmatprep.subr.bf16.mxu0 %v5076_v24 }
  0x31   :  { %4721 = vmatpush3.bf16.msra.mxu1 %v5090_v56 }
  0x32   :  { %4722 = vmatprep.subr.bf16.mxu1 %v5091_v57 }
  0x33   :  { %530 = vmatpush1.bf16.msra.mxu0 %v5078_v25 }
  0x34   :  { %531 = vmatprep.subr.bf16.mxu0 %v5079_v26 }
  0x35   :  { %4723 = vmatpush3.bf16.msra.mxu1 %v5091_v57  ;;  %v5790_v57 = vld [vmem:[%s6844_s29] sm:$0x3] }
  0x36   :  { %4724 = vmatprep.subr.bf16.mxu1 %v5092_v58 }
  0x37   :  { %532 = vmatpush1.bf16.msra.mxu0 %v5081_v27 }
  0x38   :  { %533 = vmatprep.subr.bf16.mxu0 %v5082_v28 }
  0x39   :  { %4725 = vmatpush3.bf16.msra.mxu1 %v5092_v58 }
  0x3a   :  { %4726 = vmatprep.subr.bf16.mxu1 %v5093_v59 }
  0x3b   :  { %534 = vmatpush1.bf16.msra.mxu0 %v5084_v29 }
  0x3c   :  { %535 = vmatprep.subr.bf16.mxu0 %v5085_v31 }
  0x3d   :  { %4727 = vmatpush3.bf16.msra.mxu1 %v5093_v59 }
  0x3e   :  { %4728 = vmatprep.subr.bf16.mxu1 %v5094_v60 }
  0x3f   :  { %536 = vmatpush1.bf16.msra.mxu0 %v5087_v32 }
  0x40   :  { %4754 = vmatprep.subr.bf16.mxu0 %v5500_v62 }
  0x41   :  { %4729 = vmatpush3.bf16.msra.mxu1 %v5094_v60 }
  0x42   :  { %4730 = vmatprep.subr.bf16.mxu1 %v5095_v61 }
  0x45   :  { %4731 = vmatpush3.bf16.msra.mxu1 %v5095_v61 }
  0x46   :  { %4736 = vmatprep.subr.bf16.mxu1 %v5500_v62 }
  0xae   :  { %v311_v5 = vpop.xlane.xlu0 %310 }
  0xaf   :  { %v319_v6 = vmul.f32 0.0078125, %v311_v5 }
  0xb1   :  { %v5640_v7 = vsub.f32 %v301_v0, %v319_v6 }
  0xb2   :  { %v313_v8 = vpop.xlane.xlu0 %312 }
  0xb3   :  { %v320_v9 = vmul.f32 0.0078125, %v313_v8  ;;  %v327_v10 = vmul.f32 %v5640_v7, %v5640_v7 }
  0xb5   :  { %331 = vadd.xlane.f32.xlu1 %v327_v10  ;;  %v5644_v11 = vsub.f32 %v302_v1, %v320_v9 }
  0xb6   :  { %v315_v12 = vpop.xlane.xlu0 %314 }
  0xb7   :  { %v328_v13 = vmul.f32 %v5644_v11, %v5644_v11  ;;  %v321_v14 = vmul.f32 0.0078125, %v315_v12 }
  0xb9   :  { %333 = vadd.xlane.f32.xlu1 %v328_v13  ;;  %v5648_v15 = vsub.f32 %v303_v2, %v321_v14  ;;  %v378_v14 = vlaneseq }
  0xbb   :  { %v329_v17 = vmul.f32 %v5648_v15, %v5648_v15 }
  0xbd   :  { %316 = vadd.xlane.f32.xlu1 %v304_v16  ;;  %335 = vadd.xlane.f32.xlu0 %v329_v17  ;;  %v113_v17 = vld [vmem:[%s6817_s5] sm:$0x7] }
 0x142   :  { %v332_v35 = vpop.xlane.xlu1 %331 }
 0x143   :  { %v339_v36 = vmul.f32 0.0078125, %v332_v35 }
 0x145   :  { %v343_v37 = vadd.f32 1e-12, %v339_v36 }
 0x146   :  { %v334_v38 = vpop.xlane.xlu1 %333 }
 0x147   :  { %5224 = vrsqrt.f32 %v343_v37  ;;  %v340_v39 = vmul.f32 0.0078125, %v334_v38 }
 0x149   :  { %v344_v40 = vadd.f32 1e-12, %v340_v39 }
 0x14a   :  { %v317_v41 = vpop.xlane.xlu1 %316  ;;  %v336_v63 = vpop.xlane.xlu0 %335 }
 0x14b   :  { %5226 = vrsqrt.f32 %v344_v40  ;;  %v322_v42 = vmul.f32 0.0078125, %v317_v41  ;;  %v341_v0 = vmul.f32 0.0078125, %v336_v63 }
 0x14d   :  { %v326_v43 = vsub.f32 %v304_v16, %v322_v42  ;;  %v345_v1 = vadd.f32 1e-12, %v341_v0 }
 0x14f   :  { %v330_v44 = vmul.f32 %v326_v43, %v326_v43  ;;  %5228 = vrsqrt.f32 %v345_v1 }
 0x151   :  { %v5225_v45 = vpop.eup %5224  ;;  %337 = vadd.xlane.f32.xlu1 %v330_v44 }
 0x152   :  { %v351_v46 = vmul.f32 %v5225_v45, %v5640_v7 }
 0x154   :  { %v361_v50 = vmul.f32 %v4379_v47, %v351_v46 }
 0x155   :  { %v5227_v48 = vpop.eup %5226 }
 0x156   :  { %v352_v49 = vmul.f32 %v5227_v48, %v5644_v11  ;;  %v5712_v53 = vadd.f32 %v4380_v51, %v361_v50 }
 0x158   :  { %v362_v52 = vmul.f32 %v4379_v47, %v352_v49 }
 0x159   :  { %v5229_v5 = vpop.eup %5228 }
 0x15a   :  { %v5714_v54 = vadd.f32 %v4380_v51, %v362_v52  ;;  %v353_v6 = vmul.f32 %v5229_v5, %v5648_v15  ;;  %v5750_v15 = vshrl.u32 %v378_v14, 7 }
 0x15c   :  { %v375_v55 = vpack.c.bf16 %v5714_v54, %v5712_v53  ;;  %v363_v9 = vmul.f32 %v4379_v47, %v353_v6  ;;  %v5753_v16 = vsub.s32 0, %v5750_v15  ;;  %v5759_v18 = vsub.s32 1, %v5750_v15 }
 0x15d   :  { %v388_v33 = vsub.s32 2, %v5750_v15 }
 0x15e   :  { %554 = vmatmul.mubr.bf16.vlgmr.msra.gmra.mrb[0].mxu0 %v375_v55  ;;  %4732 = vmatprep.mubr.bf16.mxu1 %v375_v55  ;;  %v5740_v11 = vadd.f32 %v4380_v51, %v363_v9  ;;  %v381_v19 = vrot.slane %v113_v17, %v5753_v16  ;;  %v385_v21 = vrot.slane %v113_v17, %v5759_v18 }
 0x15f   :  { %563 = vmatprep.mubr.bf16.mxu0 %v5499_v30  ;;  %v389_v34 = vrot.slane %v113_v17, %v388_v33  ;;  %v5794_v58 = vrot.slane %v5790_v57, %v5753_v16 }
 0x1de   :  { %v338_v2 = vpop.xlane.xlu1 %337 }
 0x1df   :  { %v342_v3 = vmul.f32 0.0078125, %v338_v2 }
 0x1e1   :  { %v346_v4 = vadd.f32 1e-12, %v342_v3 }
 0x1e3   :  { %5230 = vrsqrt.f32 %v346_v4 }
 0x1ed   :  { %v5231_v7 = vpop.eup %5230 }
 0x1ee   :  { %v354_v8 = vmul.f32 %v5231_v7, %v326_v43 }
 0x1f0   :  { %v364_v10 = vmul.f32 %v4379_v47, %v354_v8 }
 0x1f2   :  { %v5742_v12 = vadd.f32 %v4380_v51, %v364_v10 }
 0x1f4   :  { %v376_v13 = vpack.c.bf16 %v5742_v12, %v5740_v11 }
 0x1f6   :  { %564 = vmatmul.mubr.bf16.gmra.mrb[4].mxu0 %v376_v13  ;;  %4733 = vmatmul.mubr.bf16.vlgmr.msra.gmra.mrb[0].mxu1 %v376_v13 }
 0x1f7   :  { %4738 = vmatprep.mubr.msk.bf16.mxu1 %vm5501_vm0, %v5500_v62  ;;  %4756 = vmatprep.mubr.msk.bf16.mxu0 %vm5501_vm0, %v5500_v62 }
 0x231   :  { %v555_v20 = vpop.f32.mrb[0].mxu0 }
 0x232   :  { %v557_v22 = vpop.f32.mrb[1].mxu0  ;;  %v556_v24 = vadd.f32 %v555_v20, %v381_v19 }
 0x233   :  { %v559_v23 = vpop.f32.mrb[2].mxu0  ;;  %v558_v27 = vadd.f32 %v557_v22, %v385_v21 }
 0x234   :  { %v560_v25 = vadd.f32 %v559_v23, %v381_v19  ;;  %v561_v26 = vpop.f32.mrb[3].mxu0 }
 0x235   :  { %v562_v28 = vadd.f32 %v561_v26, %v385_v21 }
 0x236   :  { %v5763_v29 = vpack.c.bf16 %v560_v25, %v556_v24 }
 0x237   :  { %v5765_v31 = vpack.c.bf16 %v562_v28, %v558_v27 }
 0x239   :  { %v631_v32 = vsel %vm626_vm1, %v5765_v31, 0 }
 0x23a   :  { %4737 = vmatpush3.bf16.xpose.msra.mxu1 %v631_v32 }
 0x23b   :  { %4742 = vmatprep.subr.bf16.mxu1 %v5500_v62 }
 0x241   :  { %4739 = vmatmul.mubr.msk.bf16.vlgmr.msra.gmra.mrb[4].mxu1 %vm626_vm1, %v5763_v29 }
 0x242   :  { %4744 = vmatprep.mubr.msk.bf16.mxu1 %vm5501_vm0, %v5500_v62 }
 0x2c9   :  { %v565_v35 = vpop.f32.mrb[4].mxu0  ;;  %v4734_v36 = vpop.f32.mrb[0].mxu1 }
 0x2ca   :  { %v617_v37 = vadd.f32 %v4734_v36, %v389_v34  ;;  %v567_v38 = vpop.f32.mrb[5].mxu0  ;;  %v608_v39 = vpop.f32.mrb[1].mxu1  ;;  %v566_v42 = vadd.f32 %v565_v35, %v381_v19 }
 0x2cb   :  { %v569_v40 = vpop.f32.mrb[6].mxu0  ;;  %v4735_v41 = vpop.f32.mrb[2].mxu1  ;;  %v568_v47 = vadd.f32 %v567_v38, %v385_v21  ;;  %v609_v48 = vadd.f32 %v608_v39, %v389_v34 }
 0x2cc   :  { %v570_v43 = vadd.f32 %v569_v40, %v381_v19  ;;  %v620_v44 = vadd.f32 %v4735_v41, %v389_v34  ;;  %v571_v45 = vpop.f32.mrb[7].mxu0  ;;  %v611_v46 = vpop.f32.mrb[3].mxu1 }
 0x2cd   :  { %v572_v49 = vadd.f32 %v571_v45, %v385_v21  ;;  %v612_v50 = vadd.f32 %v611_v46, %v389_v34 }
 0x2ce   :  { %v5777_v51 = vpack.c.bf16 %v570_v43, %v566_v42  ;;  %v5779_v52 = vpack.c.bf16 %v620_v44, %v617_v37 }
 0x2cf   :  { %v5781_v55 = vpack.c.bf16 %v572_v49, %v568_v47  ;;  %v5783_v56 = vpack.c.bf16 %v612_v50, %v609_v48 }
 0x2d1   :  { %4743 = vmatpush3.bf16.msra.mxu1 %v5783_v56  ;;  %v1167_v39 = vsel %vm626_vm1, %v5781_v55, 0 }
 0x2d2   :  { %4748 = vmatprep.subr.bf16.mxu1 %v5500_v62 }
 0x314   :  { %v667_v59 = vpop.f32.mrb[4].mxu1 }
 0x315   :  { %v674_v60 = vmul.f32 0.17677669, %v667_v59  ;;  %v4740_v61 = vpop.f32.mrb[5].mxu1 }
 0x316   :  { %v670_v63 = vpop.f32.mrb[6].mxu1 }
 0x317   :  { %v675_v0 = vmul.f32 0.17677669, %v670_v63  ;;  %v4741_v1 = vpop.f32.mrb[7].mxu1  ;;  %v680_v2 = vadd.f32 %v5794_v58, %v674_v60 }
 0x319   :  { %v683_v3 = vsel %vm682_vm2, %v680_v2, -inf  ;;  %v681_v4 = vadd.f32 %v5794_v58, %v675_v0 }
 0x31a   :  { %684 = vmax.xlane.f32.xlu0 %v683_v3 }
 0x31b   :  { %v686_v5 = vsel %vm682_vm2, %v681_v4, -inf }
 0x31c   :  { %687 = vmax.xlane.f32.xlu1 %v686_v5 }
 0x3a7   :  { %v685_v6 = vpop.xlane.xlu0 %684 }
 0x3a8   :  { %v689_v7 = vsub.f32 %v680_v2, %v685_v6 }
 0x3a9   :  { %v688_v8 = vpop.xlane.xlu1 %687 }
 0x3aa   :  { %v691_v9 = vmul.f32 1.442695, %v689_v7  ;;  %v690_v10 = vsub.f32 %v681_v4, %v688_v8 }
 0x3ac   :  { %5232 = vpow2.f32 %v691_v9  ;;  %v693_v13 = vmul.f32 1.442695, %v690_v10 }
 0x3ae   :  { %5234 = vpow2.f32 %v693_v13 }
 0x3b6   :  { %v5233_v14 = vpop.eup %5232 }
 0x3b7   :  { %v695_v17 = vsel %vm682_vm2, %v5233_v14, 0.0 }
 0x3b8   :  { %v5235_v19 = vpop.eup %5234  ;;  %696 = vadd.xlane.f32.xlu0 %v695_v17 }
 0x3b9   :  { %v698_v20 = vsel %vm682_vm2, %v5235_v19, 0.0 }
 0x3ba   :  { %699 = vadd.xlane.f32.xlu1 %v698_v20 }
 0x3cb   :  { %751 = vrot.lane.b32.xlu1 %v5763_v29, %s5502_s30 }
 0x3ce   :  { %754 = vrot.lane.b32.xlu0 %v5765_v31, %s5502_s30 }
 0x3cf   :  { %880 = vrot.lane.b32.xlu1 %v5765_v31, %s5497_s4 }
 0x3d2   :  { %1005 = vrot.lane.b32.xlu0 %v5765_v31, %s5503_s0 }
 0x3d3   :  { %878 = vrot.lane.b32.xlu1 %v5763_v29, %s5497_s4 }
 0x3d6   :  { %1289 = vrot.lane.b32.xlu0 %v5781_v55, %s5502_s30 }
 0x3d7   :  { %1003 = vrot.lane.b32.xlu1 %v5763_v29, %s5503_s0 }
 0x3da   :  { %1415 = vrot.lane.b32.xlu0 %v5781_v55, %s5497_s4 }
 0x3db   :  { %1286 = vrot.lane.b32.xlu1 %v5777_v51, %s5502_s30 }
 0x3de   :  { %1540 = vrot.lane.b32.xlu0 %v5781_v55, %s5503_s0 }
 0x3df   :  { %1413 = vrot.lane.b32.xlu1 %v5777_v51, %s5497_s4 }
 0x3e3   :  { %1538 = vrot.lane.b32.xlu1 %v5777_v51, %s5503_s0 }
 0x445   :  { %v697_v21 = vpop.xlane.xlu0 %696 }
 0x446   :  { %5236 = vrcp.f32 %v697_v21 }
 0x447   :  { %v700_v22 = vpop.xlane.xlu1 %699 }
 0x448   :  { %5238 = vrcp.f32 %v700_v22 }
 0x449   :  { %v755_v27 = vpop.permute.xlu0 %754 }
 0x44a   :  { %v760_v31 = vsel %vm626_vm1, %v755_v27, 0 }
 0x44b   :  { %v752_v29 = vpop.permute.xlu1 %751 }
 0x44d   :  { %v1006_v35 = vpop.permute.xlu0 %1005 }
 0x44e   :  { %v1011_v37 = vsel %vm626_vm1, %v1006_v35, 0 }
 0x44f   :  { %v881_v32 = vpop.permute.xlu1 %880 }
 0x450   :  { %v5237_v23 = vpop.eup %5236  ;;  %v886_v34 = vsel %vm626_vm1, %v881_v32, 0 }
 0x451   :  { %v702_v25 = vmul.f32 %v5237_v23, %v5233_v14  ;;  %v1290_v40 = vpop.permute.xlu0 %1289 }
 0x452   :  { %v5239_v24 = vpop.eup %5238  ;;  %v1295_v41 = vsel %vm626_vm1, %v1290_v40, 0 }
 0x453   :  { %v704_v26 = vmul.f32 %v5239_v24, %v5235_v19  ;;  %v879_v36 = vpop.permute.xlu1 %878 }
 0x455   :  { %v705_v28 = vpack.c.bf16 %v704_v26, %v702_v25  ;;  %v1416_v42 = vpop.permute.xlu0 %1415 }
 0x456   :  { %v1421_v44 = vsel %vm626_vm1, %v1416_v42, 0 }
 0x457   :  { %4745 = vmatmul.mubr.msk.bf16.vlgmr.msra.gmra.mrb[8].mxu1 %vm682_vm2, %v705_v28  ;;  %v1004_v38 = vpop.permute.xlu1 %1003 }
 0x458   :  { %4749 = vmatpush3.bf16.xpose.msra.mxu1 %v760_v31  ;;  %4750 = vmatprep.mubr.msk.bf16.mxu1 %vm5501_vm0, %v5500_v62  ;;  %v5897_v31 = vrot.slane %v5790_v57, %v5759_v18 }
 0x459   :  { %4760 = vmatprep.subr.bf16.mxu1 %v5500_v62  ;;  %v1541_v45 = vpop.permute.xlu0 %1540 }
 0x45a   :  { %v1546_v47 = vsel %vm626_vm1, %v1541_v45, 0 }
 0x45b   :  { %v1287_v43 = vpop.permute.xlu1 %1286 }
 0x45f   :  { %4751 = vmatmul.mubr.msk.bf16.vlgmr.msra.gmra.mrb[12].mxu1 %vm626_vm1, %v752_v29  ;;  %v1414_v46 = vpop.permute.xlu1 %1413 }
 0x460   :  { %4761 = vmatpush3.bf16.xpose.msra.mxu1 %v886_v34  ;;  %4762 = vmatprep.mubr.msk.bf16.mxu1 %vm5501_vm0, %v5500_v62 }
 0x461   :  { %4772 = vmatprep.subr.bf16.mxu1 %v5500_v62 }
 0x463   :  { %v1539_v48 = vpop.permute.xlu1 %1538 }
 0x467   :  { %4763 = vmatmul.mubr.msk.bf16.vlgmr.msra.gmra.mrb[16].mxu1 %vm626_vm1, %v879_v36 }
 0x468   :  { %4773 = vmatpush3.bf16.xpose.msra.mxu1 %v1011_v37  ;;  %4774 = vmatprep.mubr.msk.bf16.mxu1 %vm5501_vm0, %v5500_v62 }
 0x469   :  { %4784 = vmatprep.subr.bf16.mxu1 %v5500_v62 }
 0x46f   :  { %4775 = vmatmul.mubr.msk.bf16.vlgmr.msra.gmra.mrb[20].mxu1 %vm626_vm1, %v1004_v38 }
 0x470   :  { %4785 = vmatpush3.bf16.xpose.msra.mxu1 %v1167_v39  ;;  %4786 = vmatprep.mubr.msk.bf16.mxu1 %vm5501_vm0, %v5500_v62 }
 0x471   :  { %4796 = vmatprep.subr.bf16.mxu1 %v5500_v62 }
 0x477   :  { %4787 = vmatmul.mubr.msk.bf16.vlgmr.msra.gmra.mrb[24].mxu1 %vm626_vm1, %v5777_v51 }
 0x478   :  { %4797 = vmatpush3.bf16.xpose.msra.mxu1 %v1295_v41  ;;  %4798 = vmatprep.mubr.msk.bf16.mxu1 %vm5501_vm0, %v5500_v62 }
 0x479   :  { %4808 = vmatprep.subr.bf16.mxu1 %v5500_v62 }
 0x47f   :  { %4799 = vmatmul.mubr.msk.bf16.vlgmr.msra.gmra.mrb[28].mxu1 %vm626_vm1, %v1287_v43 }
 0x480   :  { %4809 = vmatpush3.bf16.xpose.msra.mxu1 %v1421_v44  ;;  %4810 = vmatprep.mubr.msk.bf16.mxu1 %vm5501_vm0, %v5500_v62 }
 0x481   :  { %4820 = vmatprep.subr.bf16.mxu1 %v5500_v62 }
 0x487   :  { %4811 = vmatmul.mubr.msk.bf16.vlgmr.msra.gmra.mrb[32].mxu1 %vm626_vm1, %v1414_v46 }
 0x488   :  { %4821 = vmatpush3.bf16.xpose.msra.mxu1 %v1546_v47  ;;  %4822 = vmatprep.mubr.msk.bf16.mxu1 %vm5501_vm0, %v5500_v62 }
 0x48f   :  { %4823 = vmatmul.mubr.msk.bf16.vlgmr.msra.gmra.mrb[36].mxu1 %vm626_vm1, %v1539_v48 }
 0x52a   :  { %v5863_v49 = vpop.f32.mrb[8].mxu1 }
 0x52b   :  { %v4746_v50 = vpop.f32.mrb[9].mxu1 }
 0x52c   :  { %v5865_v51 = vpop.f32.mrb[10].mxu1 }
 0x52d   :  { %v4747_v55 = vpop.f32.mrb[11].mxu1 }
 0x532   :  { %v796_v59 = vpop.f32.mrb[12].mxu1 }
 0x533   :  { %v803_v60 = vmul.f32 0.17677669, %v796_v59  ;;  %v4752_v61 = vpop.f32.mrb[13].mxu1 }
 0x534   :  { %v799_v63 = vpop.f32.mrb[14].mxu1 }
 0x535   :  { %v804_v0 = vmul.f32 0.17677669, %v799_v63  ;;  %v4753_v1 = vpop.f32.mrb[15].mxu1  ;;  %v5868_v2 = vadd.f32 %v803_v60, %v5794_v58 }
 0x537   :  { %v807_v3 = vsel %vm682_vm2, %v5868_v2, -inf  ;;  %v5873_v4 = vadd.f32 %v804_v0, %v5794_v58 }
 0x538   :  { %808 = vmax.xlane.f32.xlu0 %v807_v3 }
 0x539   :  { %v810_v5 = vsel %vm682_vm2, %v5873_v4, -inf }
 0x53a   :  { %811 = vmax.xlane.f32.xlu1 %v810_v5  ;;  %v922_v6 = vpop.f32.mrb[16].mxu1 }
 0x53b   :  { %v929_v7 = vmul.f32 0.17677669, %v922_v6  ;;  %v4764_v8 = vpop.f32.mrb[17].mxu1 }
 0x53c   :  { %v925_v9 = vpop.f32.mrb[18].mxu1 }
 0x53d   :  { %v930_v10 = vmul.f32 0.17677669, %v925_v9  ;;  %v4765_v13 = vpop.f32.mrb[19].mxu1  ;;  %v5878_v14 = vadd.f32 %v929_v7, %v5794_v58 }
 0x53f   :  { %v933_v17 = vsel %vm682_vm2, %v5878_v14, -inf  ;;  %v5883_v19 = vadd.f32 %v930_v10, %v5794_v58 }
 0x540   :  { %934 = vmax.xlane.f32.xlu0 %v933_v17 }
 0x541   :  { %v936_v23 = vsel %vm682_vm2, %v5883_v19, -inf }
 0x542   :  { %v1047_v20 = vpop.f32.mrb[20].mxu1 }
 0x543   :  { %v1054_v21 = vmul.f32 0.17677669, %v1047_v20  ;;  %v4776_v22 = vpop.f32.mrb[21].mxu1 }
 0x544   :  { %937 = vmax.xlane.f32.xlu0 %v936_v23  ;;  %v1050_v24 = vpop.f32.mrb[22].mxu1 }
 0x545   :  { %v1055_v25 = vmul.f32 0.17677669, %v1050_v24  ;;  %v4777_v26 = vpop.f32.mrb[23].mxu1  ;;  %v5888_v27 = vadd.f32 %v1054_v21, %v5794_v58 }
 0x547   :  { %v1058_v28 = vsel %vm682_vm2, %v5888_v27, -inf  ;;  %v5893_v29 = vadd.f32 %v1055_v25, %v5794_v58 }
 0x548   :  { %1059 = vmax.xlane.f32.xlu0 %v1058_v28 }
 0x549   :  { %v1061_v32 = vsel %vm682_vm2, %v5893_v29, -inf }
 0x54a   :  { %1062 = vmax.xlane.f32.xlu1 %v1061_v32  ;;  %v1203_v34 = vpop.f32.mrb[24].mxu1 }
 0x54b   :  { %v1210_v35 = vmul.f32 0.17677669, %v1203_v34  ;;  %v4788_v36 = vpop.f32.mrb[25].mxu1 }
 0x54c   :  { %v1206_v37 = vpop.f32.mrb[26].mxu1 }
 0x54d   :  { %v1211_v38 = vmul.f32 0.17677669, %v1206_v37  ;;  %v4789_v39 = vpop.f32.mrb[27].mxu1  ;;  %v5902_v40 = vadd.f32 %v5897_v31, %v1210_v35 }
 0x54f   :  { %v1218_v41 = vsel %vm682_vm2, %v5902_v40, -inf  ;;  %v5907_v42 = vadd.f32 %v5897_v31, %v1211_v38 }
 0x550   :  { %1219 = vmax.xlane.f32.xlu0 %v1218_v41 }
 0x551   :  { %v1221_v57 = vsel %vm682_vm2, %v5907_v42, -inf }
 0x552   :  { %1222 = vmax.xlane.f32.xlu1 %v1221_v57  ;;  %v1331_v43 = vpop.f32.mrb[28].mxu1 }
 0x553   :  { %v1338_v44 = vmul.f32 0.17677669, %v1331_v43  ;;  %v4800_v45 = vpop.f32.mrb[29].mxu1 }
 0x554   :  { %v1334_v46 = vpop.f32.mrb[30].mxu1 }
 0x555   :  { %v1339_v47 = vmul.f32 0.17677669, %v1334_v46  ;;  %v4801_v48 = vpop.f32.mrb[31].mxu1  ;;  %v5912_v50 = vadd.f32 %v1338_v44, %v5897_v31 }
 0x557   :  { %v1342_v55 = vsel %vm682_vm2, %v5912_v50, -inf  ;;  %v5917_v59 = vadd.f32 %v1339_v47, %v5897_v31 }
 0x558   :  { %1343 = vmax.xlane.f32.xlu0 %v1342_v55 }
 0x559   :  { %v1345_v60 = vsel %vm682_vm2, %v5917_v59, -inf }
 0x55a   :  { %1346 = vmax.xlane.f32.xlu1 %v1345_v60  ;;  %v1457_v61 = vpop.f32.mrb[32].mxu1 }
 0x55b   :  { %v1464_v63 = vmul.f32 0.17677669, %v1457_v61  ;;  %v4812_v0 = vpop.f32.mrb[33].mxu1 }
 0x55c   :  { %v1460_v1 = vpop.f32.mrb[34].mxu1 }
 0x55d   :  { %v1465_v3 = vmul.f32 0.17677669, %v1460_v1  ;;  %v4813_v5 = vpop.f32.mrb[35].mxu1  ;;  %v5922_v6 = vadd.f32 %v1464_v63, %v5897_v31 }
 0x55f   :  { %v1468_v7 = vsel %vm682_vm2, %v5922_v6, -inf  ;;  %v5927_v8 = vadd.f32 %v1465_v3, %v5897_v31 }
 0x560   :  { %1469 = vmax.xlane.f32.xlu0 %v1468_v7 }
 0x561   :  { %v1471_v9 = vsel %vm682_vm2, %v5927_v8, -inf }
 0x562   :  { %1472 = vmax.xlane.f32.xlu1 %v1471_v9  ;;  %v1582_v10 = vpop.f32.mrb[36].mxu1 }
 0x563   :  { %v1589_v13 = vmul.f32 0.17677669, %v1582_v10  ;;  %v4824_v17 = vpop.f32.mrb[37].mxu1 }
 0x564   :  { %v1585_v20 = vpop.f32.mrb[38].mxu1 }
 0x565   :  { %v1590_v21 = vmul.f32 0.17677669, %v1585_v20  ;;  %v4825_v22 = vpop.f32.mrb[39].mxu1  ;;  %v5932_v23 = vadd.f32 %v1589_v13, %v5897_v31 }
 0x567   :  { %v1593_v24 = vsel %vm682_vm2, %v5932_v23, -inf  ;;  %v5937_v25 = vadd.f32 %v1590_v21, %v5897_v31 }
 0x568   :  { %1594 = vmax.xlane.f32.xlu0 %v1593_v24 }
 0x569   :  { %v1596_v26 = vsel %vm682_vm2, %v5937_v25, -inf }
 0x56a   :  { %1597 = vmax.xlane.f32.xlu1 %v1596_v26 }
 0x57b   :  { %956 = vrot.lane.b32.xlu1 %v5783_v56, %s5497_s4 }
 0x57e   :  { %831 = vrot.lane.b32.xlu0 %v5783_v56, %s5502_s30 }
 0x5c5   :  { %v809_v28 = vpop.xlane.xlu0 %808 }
 0x5c6   :  { %v813_v32 = vsub.f32 %v5868_v2, %v809_v28 }
 0x5c7   :  { %v812_v34 = vpop.xlane.xlu1 %811 }
 0x5c8   :  { %v815_v35 = vmul.f32 1.442695, %v813_v32  ;;  %v814_v36 = vsub.f32 %v5873_v4, %v812_v34 }
 0x5ca   :  { %5240 = vpow2.f32 %v815_v35  ;;  %v817_v37 = vmul.f32 1.442695, %v814_v36 }
 0x5cc   :  { %5242 = vpow2.f32 %v817_v37 }
 0x5cd   :  { %v935_v38 = vpop.xlane.xlu0 %934 }
 0x5ce   :  { %v939_v39 = vsub.f32 %v5878_v14, %v935_v38 }
 0x5d0   :  { %v941_v41 = vmul.f32 1.442695, %v939_v39 }
 0x5d1   :  { %v938_v57 = vpop.xlane.xlu0 %937 }
 0x5d2   :  { %5244 = vpow2.f32 %v941_v41  ;;  %v940_v43 = vsub.f32 %v5883_v19, %v938_v57 }
 0x5d4   :  { %v5949_v44 = vpop.eup %5240  ;;  %v943_v45 = vmul.f32 1.442695, %v940_v43 }
 0x5d5   :  { %v1060_v46 = vpop.xlane.xlu0 %1059  ;;  %v819_v2 = vsel %vm682_vm2, %v5949_v44, 0.0 }
 0x5d6   :  { %v5953_v47 = vpop.eup %5242  ;;  %5246 = vpow2.f32 %v943_v45  ;;  %v1064_v4 = vsub.f32 %v5888_v27, %v1060_v46  ;;  %820 = vadd.xlane.f32.xlu0 %v819_v2 }
 0x5d7   :  { %v1063_v48 = vpop.xlane.xlu1 %1062  ;;  %v822_v14 = vsel %vm682_vm2, %v5953_v47, 0.0 }
 0x5d8   :  { %v1066_v55 = vmul.f32 1.442695, %v1064_v4  ;;  %v1065_v19 = vsub.f32 %v5893_v29, %v1063_v48  ;;  %823 = vadd.xlane.f32.xlu1 %v822_v14 }
 0x5da   :  { %5248 = vpow2.f32 %v1066_v55  ;;  %v1068_v60 = vmul.f32 1.442695, %v1065_v19 }
 0x5dc   :  { %v5959_v61 = vpop.eup %5244  ;;  %5250 = vpow2.f32 %v1068_v60 }
 0x5dd   :  { %v1220_v63 = vpop.xlane.xlu0 %1219  ;;  %v945_v0 = vsel %vm682_vm2, %v5959_v61, 0.0 }
 0x5de   :  { %v1224_v27 = vsub.f32 %v5902_v40, %v1220_v63  ;;  %946 = vadd.xlane.f32.xlu0 %v945_v0 }
 0x5df   :  { %v1223_v1 = vpop.xlane.xlu1 %1222 }
 0x5e0   :  { %v5964_v3 = vpop.eup %5246  ;;  %v1226_v5 = vmul.f32 1.442695, %v1224_v27  ;;  %v1225_v7 = vsub.f32 %v5907_v42, %v1223_v1 }
 0x5e1   :  { %v948_v29 = vsel %vm682_vm2, %v5964_v3, 0.0 }
 0x5e2   :  { %5252 = vpow2.f32 %v1226_v5  ;;  %v1228_v9 = vmul.f32 1.442695, %v1225_v7  ;;  %949 = vadd.xlane.f32.xlu1 %v948_v29 }
 0x5e4   :  { %v5969_v10 = vpop.eup %5248  ;;  %5254 = vpow2.f32 %v1228_v9 }
 0x5e5   :  { %v1344_v13 = vpop.xlane.xlu0 %1343  ;;  %v1070_v40 = vsel %vm682_vm2, %v5969_v10, 0.0 }
 0x5e6   :  { %v5973_v17 = vpop.eup %5250  ;;  %v1348_v20 = vsub.f32 %v5912_v50, %v1344_v13  ;;  %1071 = vadd.xlane.f32.xlu0 %v1070_v40 }
 0x5e7   :  { %v1347_v21 = vpop.xlane.xlu1 %1346  ;;  %v1073_v42 = vsel %vm682_vm2, %v5973_v17, 0.0 }
 0x5e8   :  { %v1350_v22 = vmul.f32 1.442695, %v1348_v20  ;;  %v1349_v24 = vsub.f32 %v5917_v59, %v1347_v21  ;;  %1074 = vadd.xlane.f32.xlu1 %v1073_v42 }
 0x5ea   :  { %5256 = vpow2.f32 %v1350_v22  ;;  %v1352_v26 = vmul.f32 1.442695, %v1349_v24 }
 0x5ec   :  { %v5979_v28 = vpop.eup %5252  ;;  %5258 = vpow2.f32 %v1352_v26 }
 0x5ed   :  { %v1230_v32 = vsel %vm682_vm2, %v5979_v28, 0.0  ;;  %v1470_v59 = vpop.xlane.xlu0 %1469 }
 0x5ee   :  { %v5983_v34 = vpop.eup %5254  ;;  %1231 = vadd.xlane.f32.xlu0 %v1230_v32  ;;  %v1474_v63 = vsub.f32 %v5922_v6, %v1470_v59 }
 0x5ef   :  { %v1473_v50 = vpop.xlane.xlu1 %1472  ;;  %v1233_v35 = vsel %vm682_vm2, %v5983_v34, 0.0 }
 0x5f0   :  { %v1475_v36 = vsub.f32 %v5927_v8, %v1473_v50  ;;  %1234 = vadd.xlane.f32.xlu1 %v1233_v35  ;;  %v1476_v0 = vmul.f32 1.442695, %v1474_v63 }
 0x5f2   :  { %v1478_v37 = vmul.f32 1.442695, %v1475_v36 }
 0x5f4   :  { %v5988_v38 = vpop.eup %5256  ;;  %5260 = vpow2.f32 %v1478_v37 }
 0x5f5   :  { %v1595_v39 = vpop.xlane.xlu0 %1594  ;;  %v1354_v41 = vsel %vm682_vm2, %v5988_v38, 0.0 }
 0x5f6   :  { %v5992_v57 = vpop.eup %5258  ;;  %v1599_v43 = vsub.f32 %v5932_v23, %v1595_v39  ;;  %1355 = vadd.xlane.f32.xlu1 %v1354_v41 }
 0x5f7   :  { %v1598_v45 = vpop.xlane.xlu1 %1597  ;;  %v1357_v4 = vsel %vm682_vm2, %v5992_v57, 0.0 }
 0x5f8   :  { %v1601_v46 = vmul.f32 1.442695, %v1599_v43  ;;  %v1600_v2 = vsub.f32 %v5937_v25, %v1598_v45 }
 0x5f9   :  { %v832_v8 = vpop.permute.xlu0 %831 }
 0x5fa   :  { %5262 = vpow2.f32 %v1601_v46  ;;  %v1603_v48 = vmul.f32 1.442695, %v1600_v2  ;;  %4755 = vmatpush3.bf16.msra.mxu0 %v832_v8  ;;  %1358 = vadd.xlane.f32.xlu1 %v1357_v4 }
 0x5fb   :  { %4766 = vmatprep.subr.bf16.mxu0 %v5500_v62  ;;  %v957_v1 = vpop.permute.xlu1 %956 }
 0x5fc   :  { %5264 = vpow2.f32 %v1603_v48 }
 0x5fd   :  { %5266 = vpow2.f32 %v1476_v0 }
 0x5fe   :  { %v5999_v14 = vpop.eup %5260 }
 0x5ff   :  { %v1483_v23 = vsel %vm682_vm2, %v5999_v14, 0.0 }
 0x600   :  { %1484 = vadd.xlane.f32.xlu1 %v1483_v23 }
 0x604   :  { %v6003_v55 = vpop.eup %5262  ;;  %1081 = vrot.lane.b32.xlu0 %v5783_v56, %s5503_s0 }
 0x605   :  { %v1605_v25 = vsel %vm682_vm2, %v6003_v55, 0.0 }
 0x606   :  { %v6009_v19 = vpop.eup %5264  ;;  %1606 = vadd.xlane.f32.xlu1 %v1605_v25 }
 0x607   :  { %v1608_v60 = vsel %vm682_vm2, %v6009_v19, 0.0  ;;  %v6016_v27 = vpop.eup %5266 }
 0x608   :  { %v1480_v56 = vsel %vm682_vm2, %v6016_v27, 0.0 }
 0x60a   :  { %1609 = vadd.xlane.f32.xlu1 %v1608_v60 }
 0x61b   :  { %1366 = vrot.lane.b32.xlu1 %v5779_v52, %s5502_s30 }
 0x623   :  { %1481 = vadd.xlane.f32.xlu0 %v1480_v56 }
 0x639   :  { %1491 = vrot.lane.b32.xlu0 %v5779_v52, %s5497_s4 }
 0x63d   :  { %1616 = vrot.lane.b32.xlu0 %v5779_v52, %s5503_s0 }
 0x663   :  { %v821_v5 = vpop.xlane.xlu0 %820 }
 0x664   :  { %5268 = vrcp.f32 %v821_v5 }
 0x665   :  { %v824_v6 = vpop.xlane.xlu1 %823 }
 0x666   :  { %5270 = vrcp.f32 %v824_v6 }
 0x66b   :  { %v947_v7 = vpop.xlane.xlu0 %946 }
 0x66c   :  { %5272 = vrcp.f32 %v947_v7 }
 0x66e   :  { %v5269_v29 = vpop.eup %5268 }
 0x66f   :  { %v950_v9 = vpop.xlane.xlu1 %949  ;;  %v826_v40 = vmul.f32 %v5269_v29, %v5949_v44 }
 0x670   :  { %v5271_v13 = vpop.eup %5270  ;;  %5274 = vrcp.f32 %v950_v9 }
 0x671   :  { %v828_v20 = vmul.f32 %v5271_v13, %v5953_v47 }
 0x673   :  { %v829_v21 = vpack.c.bf16 %v828_v20, %v826_v40  ;;  %v1072_v42 = vpop.xlane.xlu0 %1071 }
 0x674   :  { %5276 = vrcp.f32 %v1072_v42 }
 0x675   :  { %4757 = vmatmul.mubr.msk.bf16.vlgmr.msra.gmra.mrb[8].mxu0 %vm682_vm2, %v829_v21  ;;  %v1075_v22 = vpop.xlane.xlu1 %1074 }
 0x676   :  { %4767 = vmatpush3.bf16.msra.mxu0 %v957_v1  ;;  %5278 = vrcp.f32 %v1075_v22  ;;  %4768 = vmatprep.mubr.msk.bf16.mxu0 %vm5501_vm0, %v5500_v62  ;;  %v5273_v24 = vpop.eup %5272 }
 0x677   :  { %4778 = vmatprep.subr.bf16.mxu0 %v5500_v62  ;;  %v952_v32 = vmul.f32 %v5273_v24, %v5959_v61 }
 0x67a   :  { %v5275_v26 = vpop.eup %5274 }
 0x67b   :  { %v954_v44 = vmul.f32 %v5275_v26, %v5964_v3  ;;  %v1232_v47 = vpop.xlane.xlu0 %1231 }
 0x67c   :  { %5280 = vrcp.f32 %v1232_v47 }
 0x67d   :  { %v1235_v50 = vpop.xlane.xlu1 %1234  ;;  %v955_v35 = vpack.c.bf16 %v954_v44, %v952_v32 }
 0x67e   :  { %5282 = vrcp.f32 %v1235_v50  ;;  %v5277_v36 = vpop.eup %5276 }
 0x67f   :  { %v1082_v59 = vpop.permute.xlu0 %1081  ;;  %4769 = vmatmul.mubr.msk.bf16.vlgmr.msra.gmra.mrb[12].mxu0 %vm682_vm2, %v955_v35  ;;  %v1077_v61 = vmul.f32 %v5277_v36, %v5969_v10 }
 0x680   :  { %v5279_v37 = vpop.eup %5278  ;;  %4779 = vmatpush3.bf16.msra.mxu0 %v1082_v59  ;;  %4780 = vmatprep.mubr.msk.bf16.mxu0 %vm5501_vm0, %v5500_v62 }
 0x681   :  { %v1079_v39 = vmul.f32 %v5279_v37, %v5973_v17  ;;  %4790 = vmatprep.subr.bf16.mxu0 %v5500_v62 }
 0x683   :  { %v1356_v3 = vpop.xlane.xlu1 %1355  ;;  %v1080_v41 = vpack.c.bf16 %v1079_v39, %v1077_v61  ;;  %v5096_v61 = vld [vmem:[%s6818_s6] sm:$0xff]  }
 0x684   :  { %4832 = vmatprep.subr.bf16.mxu1 %v5096_v61 }
 0x685   :  { %4833 = vmatpush3.bf16.msra.mxu1 %v5096_v61 }
 0x686   :  { %v5281_v43 = vpop.eup %5280 }
 0x687   :  { %4781 = vmatmul.mubr.msk.bf16.vlgmr.msra.gmra.mrb[16].mxu0 %vm682_vm2, %v1080_v41  ;;  %v1359_v2 = vpop.xlane.xlu1 %1358  ;;  %v1237_v17 = vmul.f32 %v5281_v43, %v5979_v28  ;;  %v5098_v41 = vld [vmem:[%s6818_s6 + $0x10] sm:$0xff]  }
 0x688   :  { %v5283_v45 = vpop.eup %5282  ;;  %4791 = vmatpush3.bf16.msra.mxu0 %v5779_v52  ;;  %4792 = vmatprep.mubr.msk.bf16.mxu0 %vm5501_vm0, %v5500_v62  ;;  %5284 = vrcp.f32 %v1359_v2  ;;  %v5099_v2 = vld [vmem:[%s6818_s6 + $0x18] sm:$0xff]  }
 0x689   :  { %v1239_v46 = vmul.f32 %v5283_v45, %v5983_v34  ;;  %4802 = vmatprep.subr.bf16.mxu0 %v5500_v62  ;;  %5286 = vrcp.f32 %v1356_v3  ;;  %v5097_v3 = vld [vmem:[%s6818_s6 + $0x8] sm:$0xff]  }
 0x68a   :  { %4834 = vmatprep.subr.bf16.mxu1 %v5097_v3 }
 0x68b   :  { %v1240_v10 = vpack.c.bf16 %v1239_v46, %v1237_v17  ;;  %4835 = vmatpush3.bf16.msra.mxu1 %v5097_v3 }
 0x68c   :  { %4836 = vmatprep.subr.bf16.mxu1 %v5098_v41 }
 0x68d   :  { %v1485_v8 = vpop.xlane.xlu1 %1484 }
 0x68e   :  { %5288 = vrcp.f32 %v1485_v8  ;;  %v5100_v8 = vld [vmem:[%s6818_s6 + $0x20] sm:$0xff]  }
 0x68f   :  { %4793 = vmatmul.mubr.msk.bf16.vlgmr.msra.gmra.mrb[20].mxu0 %vm682_vm2, %v1240_v10  ;;  %4837 = vmatpush3.bf16.msra.mxu1 %v5098_v41 }
 0x690   :  { %4804 = vmatprep.mubr.msk.bf16.mxu0 %vm5501_vm0, %v5500_v62  ;;  %4838 = vmatprep.subr.bf16.mxu1 %v5099_v2 }
 0x692   :  { %v5285_v4 = vpop.eup %5284 }
 0x693   :  { %v1607_v52 = vpop.xlane.xlu1 %1606  ;;  %v5287_v23 = vpop.eup %5286  ;;  %v1363_v34 = vmul.f32 %v5285_v4, %v5992_v57  ;;  %4839 = vmatpush3.bf16.msra.mxu1 %v5099_v2  ;;  %v5102_v4 = vld [vmem:[%s6818_s6 + $0x30] sm:$0xff]  }
 0x694   :  { %v1361_v25 = vmul.f32 %v5287_v23, %v5988_v38  ;;  %4840 = vmatprep.subr.bf16.mxu1 %v5100_v8  ;;  %v5103_v23 = vld [vmem:[%s6818_s6 + $0x38] sm:$0xff]  }
 0x696   :  { %v1364_v28 = vpack.c.bf16 %v1363_v34, %v1361_v25 }
 0x697   :  { %v1610_v48 = vpop.xlane.xlu1 %1609  ;;  %4841 = vmatpush3.bf16.msra.mxu1 %v5100_v8 }
 0x698   :  { %v5289_v38 = vpop.eup %5288 }
 0x699   :  { %v1489_v56 = vmul.f32 %v5289_v38, %v5999_v14 }
 0x69b   :  { %v1367_v60 = vpop.permute.xlu1 %1366 }
 0x69c   :  { %4803 = vmatpush3.bf16.msra.mxu0 %v1367_v60 }
 0x69d   :  { %4814 = vmatprep.subr.bf16.mxu0 %v5500_v62 }
 0x69f   :  { %4805 = vmatmul.mubr.msk.bf16.vlgmr.msra.gmra.mrb[24].mxu0 %vm682_vm2, %v1364_v28 }
 0x6a0   :  { %4816 = vmatprep.mubr.msk.bf16.mxu0 %vm5501_vm0, %v5500_v62 }
 0x6b0   :  { %v1482_v63 = vpop.xlane.xlu0 %1481 }
 0x6b1   :  { %5290 = vrcp.f32 %v1482_v63 }
 0x6b2   :  { %5292 = vrcp.f32 %v1610_v48 }
 0x6b3   :  { %5294 = vrcp.f32 %v1607_v52  ;;  %v5101_v52 = vld [vmem:[%s6818_s6 + $0x28] sm:$0xff]  }
 0x6b4   :  { %v1492_v0 = vpop.permute.xlu0 %1491  ;;  %4842 = vmatprep.subr.bf16.mxu1 %v5101_v52 }
 0x6b5   :  { %4815 = vmatpush3.bf16.msra.mxu0 %v1492_v0  ;;  %4843 = vmatpush3.bf16.msra.mxu1 %v5101_v52 }
 0x6b6   :  { %4826 = vmatprep.subr.bf16.mxu0 %v5500_v62  ;;  %4844 = vmatprep.subr.bf16.mxu1 %v5102_v4 }
 0x6b8   :  { %v1617_v7 = vpop.permute.xlu0 %1616 }
 0x6b9   :  { %4845 = vmatpush3.bf16.msra.mxu1 %v5102_v4 }
 0x6ba   :  { %4846 = vmatprep.subr.bf16.mxu1 %v5103_v23 }
 0x6bb   :  { %v5291_v57 = vpop.eup %5290 }
 0x6bc   :  { %v1487_v1 = vmul.f32 %v5291_v57, %v6016_v27  ;;  %v5293_v6 = vpop.eup %5292 }
 0x6bd   :  { %v5295_v29 = vpop.eup %5294  ;;  %v1614_v9 = vmul.f32 %v5293_v6, %v6009_v19  ;;  %4847 = vmatpush3.bf16.msra.mxu1 %v5103_v23 }
 0x6be   :  { %v1490_v5 = vpack.c.bf16 %v1489_v56, %v1487_v1  ;;  %v1612_v13 = vmul.f32 %v5295_v29, %v6003_v55 }
 0x6c0   :  { %4817 = vmatmul.mubr.msk.bf16.vlgmr.msra.gmra.mrb[28].mxu0 %vm682_vm2, %v1490_v5  ;;  %v1615_v40 = vpack.c.bf16 %v1614_v9, %v1612_v13 }
 0x6c1   :  { %4827 = vmatpush3.bf16.msra.mxu0 %v1617_v7  ;;  %4828 = vmatprep.mubr.msk.bf16.mxu0 %vm5501_vm0, %v5500_v62 }
 0x6c8   :  { %4829 = vmatmul.mubr.msk.bf16.vlgmr.msra.gmra.mrb[32].mxu0 %vm682_vm2, %v1615_v40 }
 0x6c9   :  { %1991 = vmatprep.mubr.bf16.mxu0 %v5499_v30 }
 0x748   :  { %v871_v14 = vpop.f32.mrb[8].mxu0 }
 0x749   :  { %v4758_v27 = vpop.f32.mrb[9].mxu0 }
 0x74a   :  { %v874_v20 = vpop.f32.mrb[10].mxu0 }
 0x74b   :  { %v5004_v21 = vpack.i.bf16 %v874_v20, %v871_v14  ;;  %v4759_v42 = vpop.f32.mrb[11].mxu0 }
 0x74d   :  { %5005 = vrot.lane.b32.xlu0 %v5004_v21, %s5503_s0 }
 0x752   :  { %v996_v22 = vpop.f32.mrb[12].mxu0 }
 0x753   :  { %v4770_v24 = vpop.f32.mrb[13].mxu0 }
 0x754   :  { %v999_v26 = vpop.f32.mrb[14].mxu0 }
 0x755   :  { %v5009_v32 = vpack.i.bf16 %v999_v26, %v996_v22  ;;  %v4771_v44 = vpop.f32.mrb[15].mxu0 }
 0x757   :  { %5010 = vrot.lane.b32.xlu1 %v5009_v32, %s5497_s4 }
 0x75a   :  { %v1121_v55 = vpop.f32.mrb[16].mxu0 }
 0x75b   :  { %v4782_v19 = vpop.f32.mrb[17].mxu0 }
 0x75c   :  { %v1124_v47 = vpop.f32.mrb[18].mxu0 }
 0x75d   :  { %v5014_v50 = vpack.i.bf16 %v1124_v47, %v1121_v55  ;;  %v4783_v35 = vpop.f32.mrb[19].mxu0 }
 0x75f   :  { %5015 = vrot.lane.b32.xlu1 %v5014_v50, %s5502_s30 }
 0x762   :  { %v6067_v36 = vpop.f32.mrb[20].mxu0 }
 0x763   :  { %v4794_v59 = vpop.f32.mrb[21].mxu0 }
 0x764   :  { %v6069_v37 = vpop.f32.mrb[22].mxu0 }
 0x765   :  { %v4795_v39 = vpop.f32.mrb[23].mxu0 }
 0x772   :  { %v1406_v43 = vpop.f32.mrb[24].mxu0 }
 0x773   :  { %v4806_v45 = vpop.f32.mrb[25].mxu0 }
 0x774   :  { %v1409_v46 = vpop.f32.mrb[26].mxu0 }
 0x775   :  { %v5019_v17 = vpack.i.bf16 %v1409_v46, %v1406_v43  ;;  %v4807_v10 = vpop.f32.mrb[27].mxu0  ;;  %v4421_v46 = vld [vmem:[%s6819_s7] ss:$0 sm:$0xff] }
 0x777   :  { %5020 = vrot.lane.b32.xlu0 %v5019_v17, %s5503_s0 }
 0x793   :  { %v1531_v48 = vpop.f32.mrb[28].mxu0 }
 0x794   :  { %v4818_v34 = vpop.f32.mrb[29].mxu0 }
 0x795   :  { %v1534_v25 = vpop.f32.mrb[30].mxu0 }
 0x796   :  { %v5024_v60 = vpack.i.bf16 %v1534_v25, %v1531_v48  ;;  %v4819_v28 = vpop.f32.mrb[31].mxu0  ;;  %v5104_v25 = vld [vmem:[%s6822_s10] ss:$8 sps:$4 sm:$0xff]  }
 0x798   :  { %5025 = vrot.lane.b32.xlu0 %v5024_v60, %s5497_s4  ;;  %v5106_v60 = vld [vmem:[%s6822_s10 + $0x4] ss:$8 sps:$4 sm:$0xff]  }
 0x799   :  { %1959 = vmatprep.subr.bf16.mxu0 %v5106_v60  ;;  %v5135_v60 = vld [vmem:[#allocation2 + $0x18] sm:$0xff]  }
 0x79a   :  { %1960 = vmatpush1.bf16.msra.mxu0 %v5104_v25  ;;  %v5134_v25 = vld [vmem:[#allocation2 + $0x58] sm:$0xff]  }
 0x79b   :  { %v1656_v63 = vpop.f32.mrb[32].mxu0 }
 0x79c   :  { %v4830_v0 = vpop.f32.mrb[33].mxu0 }
 0x79d   :  { %v1659_v38 = vpop.f32.mrb[34].mxu0 }
 0x79e   :  { %v5029_v57 = vpack.i.bf16 %v1659_v38, %v1656_v63  ;;  %v4831_v56 = vpop.f32.mrb[35].mxu0 }
 0x7a0   :  { %5030 = vrot.lane.b32.xlu1 %v5029_v57, %s5502_s30 }
 0x7bf   :  { %v5006_v1 = vpop.permute.xlu0 %5005 }
 0x7c0   :  { %v5008_v6 = vunpack.i.h.bf16 %v5006_v1  ;;  %v5007_v7 = vunpack.i.l.bf16 %v5006_v1 }
 0x7c2   :  { %v1153_v40 = vsel %vm626_vm1, %v5865_v51, %v5008_v6  ;;  %v1152_v14 = vsel %vm626_vm1, %v5863_v49, %v5007_v7 }
 0x7c9   :  { %v5011_v5 = vpop.permute.xlu1 %5010 }
 0x7ca   :  { %v5013_v29 = vunpack.i.h.bf16 %v5011_v5  ;;  %v5012_v9 = vunpack.i.l.bf16 %v5011_v5 }
 0x7cc   :  { %v1156_v21 = vsel %vm1154_vm3, %v1153_v40, %v5013_v29  ;;  %v1155_v42 = vsel %vm1154_vm3, %v1152_v14, %v5012_v9  ;;  %v5110_v40 = vld [vmem:[%s6822_s10 + $0x20] ss:$8 sps:$4 sm:$0xff]   ;;  %v5115_v14 = vld [vmem:[%s6822_s10 + $0x34] ss:$8 sps:$4 sm:$0xff]  }
 0x7d1   :  { %v5016_v13 = vpop.permute.xlu1 %5015 }
 0x7d2   :  { %v5018_v27 = vunpack.i.h.bf16 %v5016_v13  ;;  %v5017_v20 = vunpack.i.l.bf16 %v5016_v13  ;;  %v5112_v13 = vld [vmem:[%s6822_s10 + $0x24] ss:$8 sps:$4 sm:$0xff]  }
 0x7d4   :  { %v1158_v22 = vsel %vm1157_vm4, %v1155_v42, %v5017_v20  ;;  %v1159_v24 = vsel %vm1157_vm4, %v1156_v21, %v5018_v27  ;;  %v5113_v27 = vld [vmem:[%s6822_s10 + $0x30] ss:$8 sps:$4 sm:$0xff]   ;;  %v5116_v20 = vld [vmem:[%s6822_s10 + $0x40] ss:$8 sps:$4 sm:$0xff]   ;;  %v5121_v21 = vld [vmem:[%s6822_s10 + $0x54] ss:$8 sps:$4 sm:$0xff]  }
 0x7d5   :  { %v1693_v26 = vpack.c.bf16 %v1159_v24, %v1158_v22  ;;  %v5119_v42 = vld [vmem:[%s6822_s10 + $0x50] ss:$8 sps:$4 sm:$0xff]   ;;  %v5124_v22 = vld [vmem:[%s6822_s10 + $0x64] ss:$8 sps:$4 sm:$0xff]   ;;  %v5122_v24 = vld [vmem:[%s6822_s10 + $0x60] ss:$8 sps:$4 sm:$0xff]  }
 0x7d7   :  { %4848 = vmatprep.mubr.bf16.mxu1 %v1693_v26  ;;  %v5127_v26 = vld [vmem:[%s6822_s10 + $0x74] ss:$8 sps:$4 sm:$0xff]  }
 0x7e9   :  { %v5021_v32 = vpop.permute.xlu0 %5020 }
 0x7ea   :  { %v5023_v55 = vunpack.i.h.bf16 %v5021_v32  ;;  %v5022_v19 = vunpack.i.l.bf16 %v5021_v32  ;;  %v5125_v32 = vld [vmem:[%s6822_s10 + $0x70] ss:$8 sps:$4 sm:$0xff]  }
 0x7ec   :  { %v1688_v49 = vsel %vm626_vm1, %v6069_v37, %v5023_v55  ;;  %v1687_v35 = vsel %vm626_vm1, %v6067_v36, %v5022_v19 }
 0x80a   :  { %v5026_v44 = vpop.permute.xlu0 %5025 }
 0x80b   :  { %v5028_v51 = vunpack.i.h.bf16 %v5026_v44  ;;  %v5027_v47 = vunpack.i.l.bf16 %v5026_v44 }
 0x80d   :  { %v1690_v61 = vsel %vm1154_vm3, %v1688_v49, %v5028_v51  ;;  %v1689_v3 = vsel %vm1154_vm3, %v1687_v35, %v5027_v47 }
 0x812   :  { %v5031_v50 = vpop.permute.xlu1 %5030 }
 0x813   :  { %v5033_v59 = vunpack.i.h.bf16 %v5031_v50  ;;  %v5032_v39 = vunpack.i.l.bf16 %v5031_v50 }
 0x815   :  { %v1692_v41 = vsel %vm1157_vm4, %v1690_v61, %v5033_v59  ;;  %v1691_v43 = vsel %vm1157_vm4, %v1689_v3, %v5032_v39 }
 0x816   :  { %v1694_v45 = vpack.c.bf16 %v1692_v41, %v1691_v43  ;;  %v4430_v41 = vld [vmem:[%s6820_s8] ss:$0 sm:$0xff] }
 0x818   :  { %4849 = vmatmul.mubr.bf16.vlgmr.msra.gmra.mrb[40].mxu1 %v1694_v45 }
 0x8eb   :  { %v4850_v37 = vpop.f32.mrb[40].mxu1 }
 0x8ec   :  { %v1792_v2 = vadd.f32 %v4850_v37, %v4421_v46  ;;  %v1783_v17 = vpop.f32.mrb[41].mxu1  ;;  %v4431_v37 = vld [vmem:[%s6821_s9] ss:$0 sm:$0xff] }
 0x8ed   :  { %v1784_v36 = vadd.f32 %v4421_v46, %v1783_v17  ;;  %v4851_v10 = vpop.f32.mrb[42].mxu1 }
 0x8ee   :  { %v1786_v8 = vpop.f32.mrb[43].mxu1  ;;  %v1795_v48 = vadd.f32 %v4851_v10, %v4421_v46  ;;  %v1800_v9 = vadd.f32 %v1792_v2, %v5740_v11  ;;  %v5118_v11 = vld [vmem:[%s6822_s10 + $0x44] ss:$8 sps:$4 sm:$0xff]  }
 0x8ef   :  { %v1787_v52 = vadd.f32 %v4421_v46, %v1786_v8  ;;  %v1798_v4 = vadd.f32 %v1784_v36, %v5712_v53  ;;  %v5109_v53 = vld [vmem:[%s6822_s10 + $0x14] ss:$8 sps:$4 sm:$0xff]   ;;  %v5128_v8 = vld [vmem:[#allocation2 + $0x40] sm:$0xff]  }
 0x8f0   :  { %v1801_v34 = vadd.f32 %v1795_v48, %v5742_v12  ;;  %1961 = vmatprep.subr.bf16.mxu0 %v5109_v53  ;;  %4606 = vmatprep.subr.bf16.mxu1 %v5128_v8  ;;  %v5131_v48 = vld [vmem:[#allocation2 + $0x8] sm:$0xff]   ;;  %v5136_v53 = vld [vmem:[#allocation2 + $0x60] sm:$0xff]  }
 0x8f1   :  { %1802 = vadd.xlane.f32.xlu0 %v1798_v4  ;;  %v1799_v23 = vadd.f32 %v1787_v52, %v5714_v54  ;;  %v5107_v54 = vld [vmem:[%s6822_s10 + $0x10] ss:$8 sps:$4 sm:$0xff]   ;;  %v5129_v52 = vld [vmem:[#allocation2] sm:$0xff]  }
 0x8f2   :  { %1962 = vmatpush1.bf16.msra.mxu0 %v5107_v54  ;;  %4607 = vmatpush3.bf16.msra.mxu1 %v5129_v52  ;;  %v5137_v54 = vld [vmem:[#allocation2 + $0x20] sm:$0xff]  }
 0x8f3   :  { %1804 = vadd.xlane.f32.xlu1 %v1799_v23  ;;  %1963 = vmatprep.subr.bf16.mxu0 %v5112_v13 }
 0x8f6   :  { %1964 = vmatpush1.bf16.msra.mxu0 %v5110_v40 }
 0x8f7   :  { %1808 = vadd.xlane.f32.xlu1 %v1801_v34  ;;  %1965 = vmatprep.subr.bf16.mxu0 %v5115_v14 }
 0x8fa   :  { %1966 = vmatpush1.bf16.msra.mxu0 %v5113_v27 }
 0x8fb   :  { %1967 = vmatprep.subr.bf16.mxu0 %v5118_v11 }
 0x8fe   :  { %1968 = vmatpush1.bf16.msra.mxu0 %v5116_v20 }
 0x8ff   :  { %1969 = vmatprep.subr.bf16.mxu0 %v5121_v21 }
 0x902   :  { %1970 = vmatpush1.bf16.msra.mxu0 %v5119_v42 }
 0x903   :  { %1971 = vmatprep.subr.bf16.mxu0 %v5124_v22 }
 0x906   :  { %1972 = vmatpush1.bf16.msra.mxu0 %v5122_v24  ;;  %v149_v24 = vld [vmem:[%s6823_s11] sm:$0x3] }
 0x907   :  { %1973 = vmatprep.subr.bf16.mxu0 %v5127_v26  ;;  %v1876_v26 = vrot.slane %v149_v24, %v5759_v18 }
 0x90a   :  { %1974 = vmatpush1.bf16.msra.mxu0 %v5125_v32 }
 0x97e   :  { %v1803_v12 = vpop.xlane.xlu0 %1802 }
 0x97f   :  { %v1810_v28 = vmul.f32 0.0078125, %v1803_v12  ;;  %v5138_v12 = vld [vmem:[#allocation2 + $0x68] sm:$0xff]  }
 0x980   :  { %v1805_v63 = vpop.xlane.xlu1 %1804 }
 0x981   :  { %v1814_v0 = vsub.f32 %v1798_v4, %v1810_v28  ;;  %v1811_v38 = vmul.f32 0.0078125, %v1805_v63  ;;  %v5130_v4 = vld [vmem:[#allocation2 + $0x48] sm:$0xff]   ;;  %v5140_v63 = vld [vmem:[#allocation2 + $0x70] sm:$0xff]  }
 0x982   :  { %4608 = vmatprep.subr.bf16.mxu1 %v5130_v4  ;;  %v5139_v28 = vld [vmem:[#allocation2 + $0x28] sm:$0xff]  }
 0x983   :  { %v1815_v57 = vsub.f32 %v1799_v23, %v1811_v38  ;;  %v1818_v56 = vmul.f32 %v1814_v0, %v1814_v0  ;;  %4609 = vmatpush3.bf16.msra.mxu1 %v5131_v48  ;;  %v5132_v23 = vld [vmem:[#allocation2 + $0x50] sm:$0xff]   ;;  %v5142_v38 = vld [vmem:[#allocation2 + $0x78] sm:$0xff]  }
 0x984   :  { %v1809_v1 = vpop.xlane.xlu1 %1808  ;;  %4610 = vmatprep.subr.bf16.mxu1 %v5132_v23 }
 0x985   :  { %v1813_v5 = vmul.f32 0.0078125, %v1809_v1  ;;  %1822 = vadd.xlane.f32.xlu0 %v1818_v56  ;;  %v1819_v7 = vmul.f32 %v1815_v57, %v1815_v57 }
 0x987   :  { %v6132_v6 = vsub.f32 %v1801_v34, %v1813_v5  ;;  %v5133_v34 = vld [vmem:[#allocation2 + $0x10] sm:$0xff]  }
 0x988   :  { %4611 = vmatpush3.bf16.msra.mxu1 %v5133_v34 }
 0x989   :  { %1824 = vadd.xlane.f32.xlu0 %v1819_v7  ;;  %v1821_v29 = vmul.f32 %v6132_v6, %v6132_v6  ;;  %4612 = vmatprep.subr.bf16.mxu1 %v5134_v25 }
 0x98b   :  { %1828 = vadd.xlane.f32.xlu1 %v1821_v29 }
 0x98c   :  { %4613 = vmatpush3.bf16.msra.mxu1 %v5135_v60 }
 0x98d   :  { %1806 = vadd.xlane.f32.xlu0 %v1800_v9  ;;  %4614 = vmatprep.subr.bf16.mxu1 %v5136_v53 }
 0x990   :  { %4615 = vmatpush3.bf16.msra.mxu1 %v5137_v54 }
 0x991   :  { %4616 = vmatprep.subr.bf16.mxu1 %v5138_v12 }
 0x994   :  { %4617 = vmatpush3.bf16.msra.mxu1 %v5139_v28 }
 0x995   :  { %4618 = vmatprep.subr.bf16.mxu1 %v5140_v63 }
 0xa12   :  { %v1823_v44 = vpop.xlane.xlu0 %1822 }
 0xa13   :  { %v1830_v55 = vmul.f32 0.0078125, %v1823_v44 }
 0xa15   :  { %v1834_v19 = vadd.f32 1e-12, %v1830_v55 }
 0xa16   :  { %v1825_v51 = vpop.xlane.xlu0 %1824 }
 0xa17   :  { %5296 = vrsqrt.f32 %v1834_v19  ;;  %v1831_v47 = vmul.f32 0.0078125, %v1825_v51 }
 0xa18   :  { %v1829_v56 = vpop.xlane.xlu1 %1828 }
 0xa19   :  { %v1835_v50 = vadd.f32 1e-12, %v1831_v47  ;;  %v1833_v1 = vmul.f32 0.0078125, %v1829_v56 }
 0xa1a   :  { %v1807_v49 = vpop.xlane.xlu0 %1806 }
 0xa1b   :  { %5298 = vrsqrt.f32 %v1835_v50  ;;  %v1812_v35 = vmul.f32 0.0078125, %v1807_v49  ;;  %v1837_v5 = vadd.f32 1e-12, %v1833_v1 }
 0xa1d   :  { %v1816_v59 = vsub.f32 %v1800_v9, %v1812_v35  ;;  %5300 = vrsqrt.f32 %v1837_v5 }
 0xa1f   :  { %v1820_v39 = vmul.f32 %v1816_v59, %v1816_v59 }
 0xa21   :  { %v5297_v61 = vpop.eup %5296  ;;  %1826 = vadd.xlane.f32.xlu0 %v1820_v39 }
 0xa22   :  { %v1842_v3 = vmul.f32 %v5297_v61, %v1814_v0  ;;  %v5141_v0 = vld [vmem:[#allocation2 + $0x30] sm:$0xff]  }
 0xa23   :  { %4619 = vmatpush3.bf16.msra.mxu1 %v5141_v0 }
 0xa24   :  { %v1852_v46 = vmul.f32 %v4430_v41, %v1842_v3  ;;  %4620 = vmatprep.subr.bf16.mxu1 %v5142_v38 }
 0xa25   :  { %v5299_v43 = vpop.eup %5298 }
 0xa26   :  { %v1843_v45 = vmul.f32 %v5299_v43, %v1815_v57  ;;  %v6179_v17 = vadd.f32 %v4431_v37, %v1852_v46  ;;  %v5143_v57 = vld [vmem:[#allocation2 + $0x38] sm:$0xff]  }
 0xa27   :  { %4621 = vmatpush3.bf16.msra.mxu1 %v5143_v57  ;;  %v5301_v13 = vpop.eup %5300 }
 0xa28   :  { %v1853_v2 = vmul.f32 %v4430_v41, %v1843_v45  ;;  %v1845_v40 = vmul.f32 %v5301_v13, %v6132_v6  ;;  %v1872_v6 = vrot.slane %v149_v24, %v5753_v16 }
 0xa2a   :  { %v6181_v36 = vadd.f32 %v4431_v37, %v1853_v2  ;;  %v1855_v11 = vmul.f32 %v4430_v41, %v1845_v40 }
 0xa2c   :  { %v1866_v10 = vpack.c.bf16 %v6181_v36, %v6179_v17  ;;  %v6189_v42 = vadd.f32 %v4431_v37, %v1855_v11 }
 0xa2e   :  { %1992 = vmatmul.mubr.bf16.vlgmr.msra.gmra.mrb[36].mxu0 %v1866_v10 }
 0xa2f   :  { %2001 = vmatprep.mubr.bf16.mxu0 %v5499_v30 }
 0xaae   :  { %v1827_v7 = vpop.xlane.xlu0 %1826 }
 0xaaf   :  { %v1832_v29 = vmul.f32 0.0078125, %v1827_v7 }
 0xab1   :  { %v1836_v9 = vadd.f32 1e-12, %v1832_v29 }
 0xab3   :  { %5302 = vrsqrt.f32 %v1836_v9 }
 0xabd   :  { %v5303_v14 = vpop.eup %5302 }
 0xabe   :  { %v1844_v27 = vmul.f32 %v5303_v14, %v1816_v59 }
 0xac0   :  { %v1854_v20 = vmul.f32 %v4430_v41, %v1844_v27 }
 0xac2   :  { %v6187_v21 = vadd.f32 %v4431_v37, %v1854_v20 }
 0xac4   :  { %v1867_v22 = vpack.c.bf16 %v6189_v42, %v6187_v21 }
 0xac6   :  { %2002 = vmatmul.mubr.bf16.gmra.mrb[40].mxu0 %v1867_v22 }
 0xac7   :  { %2485 = vmatprep.mubr.bf16.mxu0 %v5499_v30 }
 0xb01   :  { %v1993_v32 = vpop.f32.mrb[36].mxu0 }
 0xb02   :  { %v1994_v44 = vadd.f32 %v1993_v32, %v1872_v6  ;;  %v1995_v55 = vpop.f32.mrb[37].mxu0 }
 0xb03   :  { %v1996_v19 = vadd.f32 %v1995_v55, %v1876_v26  ;;  %v1997_v51 = vpop.f32.mrb[38].mxu0 }
 0xb04   :  { %v2020_v47 = vmul.f32 0.044715, %v1994_v44  ;;  %v1998_v50 = vadd.f32 %v1997_v51, %v1872_v6  ;;  %v1999_v49 = vpop.f32.mrb[39].mxu0  ;;  %v2012_v38 = vmul.f32 0.5, %v1994_v44 }
 0xb05   :  { %v2021_v35 = vmul.f32 0.044715, %v1996_v19  ;;  %v2000_v59 = vadd.f32 %v1999_v49, %v1876_v26  ;;  %v2013_v1 = vmul.f32 0.5, %v1996_v19 }
 0xb06   :  { %v2028_v39 = vmul.f32 %v2020_v47, %v1994_v44  ;;  %v2022_v61 = vmul.f32 0.044715, %v1998_v50  ;;  %v2014_v57 = vmul.f32 0.5, %v1998_v50 }
 0xb07   :  { %v2029_v3 = vmul.f32 %v2021_v35, %v1996_v19  ;;  %v2023_v41 = vmul.f32 0.044715, %v2000_v59  ;;  %v2015_v5 = vmul.f32 0.5, %v2000_v59 }
 0xb08   :  { %v2036_v43 = vmul.f32 %v2028_v39, %v1994_v44  ;;  %v2030_v45 = vmul.f32 %v2022_v61, %v1998_v50 }
 0xb09   :  { %v2037_v46 = vmul.f32 %v2029_v3, %v1996_v19  ;;  %v2031_v37 = vmul.f32 %v2023_v41, %v2000_v59 }
 0xb0a   :  { %v2044_v2 = vadd.f32 %v2036_v43, %v1994_v44  ;;  %v2038_v10 = vmul.f32 %v2030_v45, %v1998_v50 }
 0xb0b   :  { %v2039_v8 = vmul.f32 %v2031_v37, %v2000_v59  ;;  %v2045_v52 = vadd.f32 %v2037_v46, %v1996_v19 }
 0xb0c   :  { %v2052_v4 = vmul.f32 0.7978846, %v2044_v2  ;;  %v2046_v48 = vadd.f32 %v2038_v10, %v1998_v50 }
 0xb0d   :  { %v2047_v23 = vadd.f32 %v2039_v8, %v2000_v59  ;;  %v2053_v34 = vmul.f32 0.7978846, %v2045_v52 }
 0xb0e   :  { %5304 = vtanh.f32 %v2052_v4  ;;  %v2054_v25 = vmul.f32 0.7978846, %v2046_v48 }
 0xb0f   :  { %v2055_v60 = vmul.f32 0.7978846, %v2047_v23  ;;  %5306 = vtanh.f32 %v2053_v34 }
 0xb10   :  { %5308 = vtanh.f32 %v2054_v25 }
 0xb11   :  { %5310 = vtanh.f32 %v2055_v60 }
 0xb18   :  { %v5305_v53 = vpop.eup %5304 }
 0xb19   :  { %v5307_v54 = vpop.eup %5306  ;;  %v2068_v12 = vadd.f32 1.0, %v5305_v53 }
 0xb1a   :  { %v5309_v28 = vpop.eup %5308  ;;  %v2069_v63 = vadd.f32 1.0, %v5307_v54 }
 0xb1b   :  { %v5311_v0 = vpop.eup %5310  ;;  %v2070_v56 = vadd.f32 1.0, %v5309_v28  ;;  %v2076_v29 = vmul.f32 %v2068_v12, %v2012_v38 }
 0xb1c   :  { %v2071_v7 = vadd.f32 1.0, %v5311_v0  ;;  %v2077_v13 = vmul.f32 %v2069_v63, %v2013_v1 }
 0xb1d   :  { %v2078_v9 = vmul.f32 %v2070_v56, %v2014_v57 }
 0xb1e   :  { %v2079_v40 = vmul.f32 %v2071_v7, %v2015_v5 }
 0xb1f   :  { %v2084_v14 = vpack.c.bf16 %v2078_v9, %v2076_v29  ;;  %v4448_v9 = vld [vmem:[%s6825_s13] ss:$0 sm:$0xff] }
 0xb20   :  { %v2085_v27 = vpack.c.bf16 %v2079_v40, %v2077_v13 }
 0xb22   :  { %2222 = vmatprep.mubr.bf16.mxu1 %v2085_v27 }
 0xb23   :  { %2223 = vmatmul.mubr.bf16.vlgmr.msra.gmra.mrb[44].mxu1 %v2084_v14 }
 0xb99   :  { %v2003_v11 = vpop.f32.mrb[40].mxu0 }
 0xb9a   :  { %v2004_v20 = vadd.f32 %v2003_v11, %v1872_v6  ;;  %v2005_v22 = vpop.f32.mrb[41].mxu0 }
 0xb9b   :  { %v2006_v24 = vadd.f32 %v2005_v22, %v1876_v26  ;;  %v2007_v32 = vpop.f32.mrb[42].mxu0 }
 0xb9c   :  { %v2024_v55 = vmul.f32 0.044715, %v2004_v20  ;;  %v2008_v44 = vadd.f32 %v2007_v32, %v1872_v6  ;;  %v2009_v51 = vpop.f32.mrb[43].mxu0  ;;  %v2016_v53 = vmul.f32 0.5, %v2004_v20 }
 0xb9d   :  { %v2025_v47 = vmul.f32 0.044715, %v2006_v24  ;;  %v2010_v19 = vadd.f32 %v2009_v51, %v1876_v26  ;;  %v2017_v28 = vmul.f32 0.5, %v2006_v24  ;;  %v5149_v51 = vld [vmem:[%s6841_s12 + $0xdc] ss:$12 sps:$4 sm:$0xff]  }
 0xb9e   :  { %v2032_v50 = vmul.f32 %v2024_v55, %v2004_v20  ;;  %v2026_v49 = vmul.f32 0.044715, %v2008_v44  ;;  %v2018_v54 = vmul.f32 0.5, %v2008_v44  ;;  %v5144_v55 = vld [vmem:[%s6841_s12 + $0xc0] ss:$12 sps:$4 sm:$0xff]  }
 0xb9f   :  { %v2033_v35 = vmul.f32 %v2025_v47, %v2006_v24  ;;  %v2027_v59 = vmul.f32 0.044715, %v2010_v19  ;;  %v2019_v63 = vmul.f32 0.5, %v2010_v19 }
 0xba0   :  { %v2040_v39 = vmul.f32 %v2032_v50, %v2004_v20  ;;  %v2034_v61 = vmul.f32 %v2026_v49, %v2008_v44 }
 0xba1   :  { %v2041_v3 = vmul.f32 %v2033_v35, %v2006_v24  ;;  %v2035_v41 = vmul.f32 %v2027_v59, %v2010_v19 }
 0xba2   :  { %v2042_v43 = vmul.f32 %v2034_v61, %v2008_v44  ;;  %v2048_v45 = vadd.f32 %v2040_v39, %v2004_v20 }
 0xba3   :  { %v2043_v46 = vmul.f32 %v2035_v41, %v2010_v19  ;;  %v2049_v37 = vadd.f32 %v2041_v3, %v2006_v24 }
 0xba4   :  { %v2050_v2 = vadd.f32 %v2042_v43, %v2008_v44  ;;  %v2056_v10 = vmul.f32 0.7978846, %v2048_v45  ;;  %v5146_v44 = vld [vmem:[%s6841_s12 + $0xc4] ss:$12 sps:$4 sm:$0xff]  }
 0xba5   :  { %v2051_v8 = vadd.f32 %v2043_v46, %v2010_v19  ;;  %v2057_v52 = vmul.f32 0.7978846, %v2049_v37  ;;  %2453 = vmatprep.subr.bf16.mxu0 %v5146_v44 }
 0xba6   :  { %v2058_v6 = vmul.f32 0.7978846, %v2050_v2  ;;  %5312 = vtanh.f32 %v2056_v10  ;;  %2454 = vmatpush1.bf16.msra.mxu0 %v5144_v55  ;;  %v4466_v55 = vld [vmem:[%s6827_s15] ss:$0 sm:$0xff] }
 0xba7   :  { %v2059_v4 = vmul.f32 0.7978846, %v2051_v8  ;;  %5314 = vtanh.f32 %v2057_v52  ;;  %2455 = vmatprep.subr.bf16.mxu0 %v5149_v51  ;;  %v5152_v52 = vld [vmem:[%s6841_s12 + $0xf4] ss:$12 sps:$4 sm:$0xff]  }
 0xba8   :  { %5316 = vtanh.f32 %v2058_v6  ;;  %v5150_v6 = vld [vmem:[%s6841_s12 + $0xf0] ss:$12 sps:$4 sm:$0xff]  }
 0xba9   :  { %5318 = vtanh.f32 %v2059_v4  ;;  %v5155_v4 = vld [vmem:[%s6841_s12 + $0x10c] ss:$12 sps:$4 sm:$0xff]  }
 0xbb0   :  { %v5313_v26 = vpop.eup %5312 }
 0xbb1   :  { %v5315_v48 = vpop.eup %5314  ;;  %v2072_v23 = vadd.f32 1.0, %v5313_v26  ;;  %v5156_v26 = vld [vmem:[%s6841_s12 + $0x120] ss:$12 sps:$4 sm:$0xff]  }
 0xbb2   :  { %v5317_v34 = vpop.eup %5316  ;;  %v2073_v25 = vadd.f32 1.0, %v5315_v48  ;;  %v5161_v48 = vld [vmem:[%s6841_s12 + $0x13c] ss:$12 sps:$4 sm:$0xff]  }
 0xbb3   :  { %v5319_v60 = vpop.eup %5318  ;;  %v2074_v12 = vadd.f32 1.0, %v5317_v34  ;;  %v2080_v38 = vmul.f32 %v2072_v23, %v2016_v53  ;;  %v5159_v23 = vld [vmem:[%s6841_s12 + $0x138] ss:$12 sps:$4 sm:$0xff]   ;;  %v5164_v34 = vld [vmem:[%s6841_s12 + $0x154] ss:$12 sps:$4 sm:$0xff]  }
 0xbb4   :  { %v2075_v0 = vadd.f32 1.0, %v5319_v60  ;;  %v2081_v56 = vmul.f32 %v2073_v25, %v2017_v28  ;;  %v5162_v25 = vld [vmem:[%s6841_s12 + $0x150] ss:$12 sps:$4 sm:$0xff]   ;;  %v5165_v60 = vld [vmem:[%s6841_s12 + $0x168] ss:$12 sps:$4 sm:$0xff]  }
 0xbb5   :  { %v2082_v57 = vmul.f32 %v2074_v12, %v2018_v54  ;;  %v5167_v53 = vld [vmem:[%s6841_s12 + $0x16c] ss:$12 sps:$4 sm:$0xff]   ;;  %v5168_v54 = vld [vmem:[%s6841_s12 + $0xc8] ss:$12 sps:$4 sm:$0xff]  }
 0xbb6   :  { %v2083_v1 = vmul.f32 %v2075_v0, %v2019_v63  ;;  %v5169_v12 = vld [vmem:[%s6841_s12 + $0xe0] ss:$12 sps:$4 sm:$0xff]   ;;  %4852 = vmatprep.subr.bf16.mxu1 %v5168_v54 }
 0xbb7   :  { %v2086_v5 = vpack.c.bf16 %v2082_v57, %v2080_v38  ;;  %4853 = vmatpush3.bf16.msra.mxu1 %v5168_v54 }
 0xbb8   :  { %v2087_v7 = vpack.c.bf16 %v2083_v1, %v2081_v56  ;;  %4854 = vmatprep.subr.bf16.mxu1 %v5169_v12 }
 0xbba   :  { %2230 = vmatprep.mubr.bf16.mxu1 %v2087_v7 }
 0xbbb   :  { %2231 = vmatmul.mubr.bf16.gmra.mrb[48].mxu1 %v2086_v5 }
 0xbbc   :  { %4855 = vmatpush3.bf16.msra.mxu1 %v5169_v12 }
 0xbf6   :  { %v4622_v29 = vpop.f32.mrb[44].mxu1 }
 0xbf7   :  { %v4623_v13 = vpop.f32.mrb[45].mxu1 }
 0xbf8   :  { %v4624_v40 = vadd.f32 %v4623_v13, %v4622_v29  ;;  %v4625_v14 = vpop.f32.mrb[46].mxu1 }
 0xbf9   :  { %v4626_v27 = vpop.f32.mrb[47].mxu1 }
 0xbfa   :  { %v2225_v11 = vadd.f32 %v4624_v40, %v4448_v9  ;;  %v4627_v20 = vadd.f32 %v4626_v27, %v4625_v14 }
 0xbfc   :  { %v2228_v22 = vadd.f32 %v4627_v20, %v4448_v9  ;;  %v2239_v24 = vadd.f32 %v2225_v11, %v6179_v17  ;;  %v5147_v17 = vld [vmem:[%s6841_s12 + $0xd8] ss:$12 sps:$4 sm:$0xff]   ;;  %v4465_v11 = vld [vmem:[%s6826_s14] ss:$0 sm:$0xff] }
 0xbfd   :  { %2456 = vmatpush1.bf16.msra.mxu0 %v5147_v17 }
 0xbfe   :  { %2243 = vadd.xlane.f32.xlu0 %v2239_v24  ;;  %v2240_v32 = vadd.f32 %v2228_v22, %v6181_v36  ;;  %2457 = vmatprep.subr.bf16.mxu0 %v5152_v52 }
 0xc00   :  { %2245 = vadd.xlane.f32.xlu1 %v2240_v32 }
 0xc01   :  { %2458 = vmatpush1.bf16.msra.mxu0 %v5150_v6 }
 0xc02   :  { %2459 = vmatprep.subr.bf16.mxu0 %v5155_v4 }
 0xc8b   :  { %v2244_v36 = vpop.xlane.xlu0 %2243 }
 0xc8c   :  { %v2251_v47 = vmul.f32 0.0078125, %v2244_v36 }
 0xc8d   :  { %v2246_v19 = vpop.xlane.xlu1 %2245 }
 0xc8e   :  { %v6216_v50 = vsub.f32 %v2239_v24, %v2251_v47  ;;  %v2252_v49 = vmul.f32 0.0078125, %v2246_v19  ;;  %v4628_v35 = vpop.f32.mrb[48].mxu1  ;;  %v5170_v47 = vld [vmem:[%s6841_s12 + $0xf8] ss:$12 sps:$4 sm:$0xff]   ;;  %v5171_v19 = vld [vmem:[%s6841_s12 + $0x110] ss:$12 sps:$4 sm:$0xff]  }
 0xc8f   :  { %v4629_v59 = vpop.f32.mrb[49].mxu1  ;;  %4856 = vmatprep.subr.bf16.mxu1 %v5170_v47 }
 0xc90   :  { %v6218_v39 = vsub.f32 %v2240_v32, %v2252_v49  ;;  %v4630_v61 = vadd.f32 %v4629_v59, %v4628_v35  ;;  %v4631_v3 = vpop.f32.mrb[50].mxu1  ;;  %v2259_v41 = vmul.f32 %v6216_v50, %v6216_v50  ;;  %4857 = vmatpush3.bf16.msra.mxu1 %v5170_v47  ;;  %v5173_v49 = vld [vmem:[%s6841_s12 + $0x140] ss:$12 sps:$4 sm:$0xff]   ;;  %v5174_v35 = vld [vmem:[%s6841_s12 + $0x158] ss:$12 sps:$4 sm:$0xff]  }
 0xc91   :  { %v4632_v43 = vpop.f32.mrb[51].mxu1  ;;  %4858 = vmatprep.subr.bf16.mxu1 %v5171_v19  ;;  %v5175_v59 = vld [vmem:[%s6841_s12 + $0x170] ss:$12 sps:$4 sm:$0xff]  }
 0xc92   :  { %v2233_v45 = vadd.f32 %v4630_v61, %v4448_v9  ;;  %v4633_v46 = vadd.f32 %v4632_v43, %v4631_v3  ;;  %2263 = vadd.xlane.f32.xlu0 %v2259_v41  ;;  %v2260_v37 = vmul.f32 %v6218_v39, %v6218_v39 }
 0xc94   :  { %v2236_v2 = vadd.f32 %v4633_v46, %v4448_v9  ;;  %2265 = vadd.xlane.f32.xlu1 %v2260_v37  ;;  %v2241_v10 = vadd.f32 %v2233_v45, %v6187_v21  ;;  %v5153_v21 = vld [vmem:[%s6841_s12 + $0x108] ss:$12 sps:$4 sm:$0xff]   ;;  %4859 = vmatpush3.bf16.msra.mxu1 %v5171_v19 }
 0xc95   :  { %2460 = vmatpush1.bf16.msra.mxu0 %v5153_v21 }
 0xc96   :  { %2247 = vadd.xlane.f32.xlu0 %v2241_v10  ;;  %v2242_v8 = vadd.f32 %v2236_v2, %v6189_v42  ;;  %v5158_v42 = vld [vmem:[%s6841_s12 + $0x124] ss:$12 sps:$4 sm:$0xff]  }
 0xc97   :  { %2461 = vmatprep.subr.bf16.mxu0 %v5158_v42  ;;  %v4339_v42 = vld [vmem:[%s6817_s5 + $0x3] sm:$0x7] }
 0xc98   :  { %2249 = vadd.xlane.f32.xlu1 %v2242_v8 }
 0xc99   :  { %2462 = vmatpush1.bf16.msra.mxu0 %v5156_v26  ;;  %v2313_v26 = vrot.slane %v4339_v42, %v5753_v16 }
 0xc9a   :  { %2463 = vmatprep.subr.bf16.mxu0 %v5161_v48 }
 0xc9d   :  { %2464 = vmatpush1.bf16.msra.mxu0 %v5159_v23  ;;  %v2317_v23 = vrot.slane %v4339_v42, %v5759_v18 }
 0xc9e   :  { %2465 = vmatprep.subr.bf16.mxu0 %v5164_v34 }
 0xca1   :  { %2466 = vmatpush1.bf16.msra.mxu0 %v5162_v25 }
 0xca2   :  { %2467 = vmatprep.subr.bf16.mxu0 %v5167_v53 }
 0xca5   :  { %2468 = vmatpush1.bf16.msra.mxu0 %v5165_v60 }
 0xca6   :  { %4872 = vmatprep.subr.bf16.mxu0 %v5500_v62 }
 0xd1f   :  { %v2264_v28 = vpop.xlane.xlu0 %2263 }
 0xd20   :  { %v2271_v63 = vmul.f32 0.0078125, %v2264_v28 }
 0xd21   :  { %v2266_v0 = vpop.xlane.xlu1 %2265 }
 0xd22   :  { %v2275_v38 = vadd.f32 1e-12, %v2271_v63  ;;  %v2272_v57 = vmul.f32 0.0078125, %v2266_v0 }
 0xd23   :  { %v2248_v56 = vpop.xlane.xlu0 %2247 }
 0xd24   :  { %5320 = vrsqrt.f32 %v2275_v38  ;;  %v2276_v1 = vadd.f32 1e-12, %v2272_v57  ;;  %v2253_v5 = vmul.f32 0.0078125, %v2248_v56  ;;  %v2321_v57 = vrot.slane %v4339_v42, %v388_v33 }
 0xd25   :  { %v2250_v7 = vpop.xlane.xlu1 %2249 }
 0xd26   :  { %5322 = vrsqrt.f32 %v2276_v1  ;;  %v2257_v29 = vsub.f32 %v2241_v10, %v2253_v5  ;;  %v2254_v9 = vmul.f32 0.0078125, %v2250_v7 }
 0xd28   :  { %v2258_v13 = vsub.f32 %v2242_v8, %v2254_v9  ;;  %v2261_v40 = vmul.f32 %v2257_v29, %v2257_v29 }
 0xd2a   :  { %2267 = vadd.xlane.f32.xlu0 %v2261_v40  ;;  %v2262_v14 = vmul.f32 %v2258_v13, %v2258_v13 }
 0xd2c   :  { %2269 = vadd.xlane.f32.xlu1 %v2262_v14 }
 0xd2e   :  { %v5321_v27 = vpop.eup %5320 }
 0xd2f   :  { %v2283_v20 = vmul.f32 %v5321_v27, %v6216_v50  ;;  %v5172_v50 = vld [vmem:[%s6841_s12 + $0x128] ss:$12 sps:$4 sm:$0xff]  }
 0xd30   :  { %v5323_v22 = vpop.eup %5322  ;;  %4860 = vmatprep.subr.bf16.mxu1 %v5172_v50 }
 0xd31   :  { %v2293_v24 = vmul.f32 %v4465_v11, %v2283_v20  ;;  %v2284_v32 = vmul.f32 %v5323_v22, %v6218_v39  ;;  %4861 = vmatpush3.bf16.msra.mxu1 %v5172_v50 }
 0xd32   :  { %4862 = vmatprep.subr.bf16.mxu1 %v5173_v49 }
 0xd33   :  { %v2294_v44 = vmul.f32 %v4465_v11, %v2284_v32  ;;  %v6277_v51 = vadd.f32 %v4466_v55, %v2293_v24 }
 0xd35   :  { %v6279_v17 = vadd.f32 %v4466_v55, %v2294_v44  ;;  %4863 = vmatpush3.bf16.msra.mxu1 %v5173_v49 }
 0xd36   :  { %4864 = vmatprep.subr.bf16.mxu1 %v5174_v35 }
 0xd37   :  { %v2307_v36 = vpack.c.bf16 %v6279_v17, %v6277_v51 }
 0xd39   :  { %2486 = vmatmul.mubr.bf16.vlgmr.msra.gmra.mrb[44].mxu0 %v2307_v36  ;;  %4868 = vmatprep.mubr.bf16.mxu1 %v2307_v36 }
 0xd3a   :  { %2495 = vmatprep.mubr.bf16.mxu0 %v5499_v30  ;;  %4865 = vmatpush3.bf16.msra.mxu1 %v5174_v35 }
 0xd3b   :  { %4866 = vmatprep.subr.bf16.mxu1 %v5175_v59 }
 0xd3e   :  { %4867 = vmatpush3.bf16.msra.mxu1 %v5175_v59 }
 0xd3f   :  { %4890 = vmatprep.subr.bf16.mxu1 %v5500_v62 }
 0xdb7   :  { %v2268_v39 = vpop.xlane.xlu0 %2267 }
 0xdb8   :  { %v2273_v61 = vmul.f32 0.0078125, %v2268_v39 }
 0xdb9   :  { %v2270_v3 = vpop.xlane.xlu1 %2269 }
 0xdba   :  { %v2277_v41 = vadd.f32 1e-12, %v2273_v61  ;;  %v2274_v43 = vmul.f32 0.0078125, %v2270_v3 }
 0xdbc   :  { %5324 = vrsqrt.f32 %v2277_v41  ;;  %v2278_v45 = vadd.f32 1e-12, %v2274_v43 }
 0xdbe   :  { %5326 = vrsqrt.f32 %v2278_v45 }
 0xdc6   :  { %v5325_v46 = vpop.eup %5324 }
 0xdc7   :  { %v2285_v37 = vmul.f32 %v5325_v46, %v2257_v29 }
 0xdc8   :  { %v5327_v2 = vpop.eup %5326 }
 0xdc9   :  { %v2286_v10 = vmul.f32 %v5327_v2, %v2258_v13  ;;  %v2295_v8 = vmul.f32 %v4465_v11, %v2285_v37 }
 0xdcb   :  { %v2296_v52 = vmul.f32 %v4465_v11, %v2286_v10  ;;  %v6303_v6 = vadd.f32 %v4466_v55, %v2295_v8 }
 0xdcd   :  { %v6305_v4 = vadd.f32 %v4466_v55, %v2296_v52 }
 0xdcf   :  { %v2308_v21 = vpack.c.bf16 %v6305_v4, %v6303_v6 }
 0xdd1   :  { %2496 = vmatmul.mubr.bf16.gmra.mrb[48].mxu0 %v2308_v21  ;;  %4869 = vmatmul.mubr.bf16.vlgmr.msra.gmra.mrb[52].mxu1 %v2308_v21 }
 0xdd2   :  { %4874 = vmatprep.mubr.msk.bf16.mxu0 %vm5501_vm0, %v5500_v62  ;;  %4892 = vmatprep.mubr.msk.bf16.mxu1 %vm5501_vm0, %v5500_v62 }
 0xe0c   :  { %v2487_v48 = vpop.f32.mrb[44].mxu0 }
 0xe0d   :  { %v2489_v34 = vpop.f32.mrb[45].mxu0  ;;  %v2488_v60 = vadd.f32 %v2487_v48, %v2313_v26 }
 0xe0e   :  { %v2491_v25 = vpop.f32.mrb[46].mxu0  ;;  %v2490_v12 = vadd.f32 %v2489_v34, %v2317_v23 }
 0xe0f   :  { %v2492_v53 = vadd.f32 %v2491_v25, %v2313_v26  ;;  %v2493_v54 = vpop.f32.mrb[47].mxu0 }
 0xe10   :  { %v2494_v28 = vadd.f32 %v2493_v54, %v2317_v23 }
 0xe11   :  { %v2555_v63 = vpack.c.bf16 %v2492_v53, %v2488_v60 }
 0xe12   :  { %v2556_v0 = vpack.c.bf16 %v2494_v28, %v2490_v12 }
 0xe14   :  { %v2562_v38 = vsel %vm626_vm1, %v2556_v0, 0 }
 0xe15   :  { %4873 = vmatpush3.bf16.xpose.msra.mxu0 %v2562_v38 }
 0xe16   :  { %4878 = vmatprep.subr.bf16.mxu0 %v5500_v62 }
 0xe1c   :  { %4875 = vmatmul.mubr.msk.bf16.vlgmr.msra.gmra.mrb[52].mxu0 %vm626_vm1, %v2555_v63 }
 0xe1d   :  { %4880 = vmatprep.mubr.msk.bf16.mxu0 %vm5501_vm0, %v5500_v62 }
 0xea4   :  { %v2497_v56 = vpop.f32.mrb[48].mxu0  ;;  %v4870_v1 = vpop.f32.mrb[52].mxu1 }
 0xea5   :  { %v2549_v5 = vadd.f32 %v4870_v1, %v2321_v57  ;;  %v2499_v7 = vpop.f32.mrb[49].mxu0  ;;  %v2540_v29 = vpop.f32.mrb[53].mxu1  ;;  %v2498_v40 = vadd.f32 %v2497_v56, %v2313_v26 }
 0xea6   :  { %v2501_v9 = vpop.f32.mrb[50].mxu0  ;;  %v4871_v13 = vpop.f32.mrb[54].mxu1  ;;  %v2500_v22 = vadd.f32 %v2499_v7, %v2317_v23  ;;  %v2541_v24 = vadd.f32 %v2540_v29, %v2321_v57 }
 0xea7   :  { %v2502_v14 = vadd.f32 %v2501_v9, %v2313_v26  ;;  %v2552_v27 = vadd.f32 %v4871_v13, %v2321_v57  ;;  %v2503_v11 = vpop.f32.mrb[51].mxu0  ;;  %v2543_v20 = vpop.f32.mrb[55].mxu1 }
 0xea8   :  { %v2504_v32 = vadd.f32 %v2503_v11, %v2317_v23  ;;  %v2544_v55 = vadd.f32 %v2543_v20, %v2321_v57 }
 0xea9   :  { %v6325_v44 = vpack.c.bf16 %v2502_v14, %v2498_v40  ;;  %v6327_v15 = vpack.c.bf16 %v2552_v27, %v2549_v5 }
 0xeaa   :  { %v6329_v33 = vpack.c.bf16 %v2504_v32, %v2500_v22  ;;  %v6331_v36 = vpack.c.bf16 %v2544_v55, %v2541_v24 }
 0xeac   :  { %4879 = vmatpush3.bf16.msra.mxu0 %v6331_v36  ;;  %v3091_v5 = vsel %vm626_vm1, %v6329_v33, 0 }
 0xead   :  { %4884 = vmatprep.subr.bf16.mxu0 %v5500_v62 }
 0xeef   :  { %v2598_v47 = vpop.f32.mrb[52].mxu0 }
 0xef0   :  { %v2605_v19 = vmul.f32 0.17677669, %v2598_v47  ;;  %v4876_v50 = vpop.f32.mrb[53].mxu0 }
 0xef1   :  { %v2601_v49 = vpop.f32.mrb[54].mxu0 }
 0xef2   :  { %v2606_v35 = vmul.f32 0.17677669, %v2601_v49  ;;  %v4877_v59 = vpop.f32.mrb[55].mxu0  ;;  %v2607_v39 = vadd.f32 %v2605_v19, %v5794_v58 }
 0xef4   :  { %v2609_v61 = vsel %vm682_vm2, %v2607_v39, -inf  ;;  %v2608_v3 = vadd.f32 %v2606_v35, %v5794_v58 }
 0xef5   :  { %2610 = vmax.xlane.f32.xlu0 %v2609_v61 }
 0xef6   :  { %v2612_v41 = vsel %vm682_vm2, %v2608_v3, -inf }
 0xef7   :  { %2613 = vmax.xlane.f32.xlu1 %v2612_v41 }
 0xf82   :  { %v2611_v43 = vpop.xlane.xlu0 %2610 }
 0xf83   :  { %v2615_v45 = vsub.f32 %v2607_v39, %v2611_v43 }
 0xf84   :  { %v2614_v46 = vpop.xlane.xlu1 %2613 }
 0xf85   :  { %v2617_v37 = vmul.f32 1.442695, %v2615_v45  ;;  %v2616_v2 = vsub.f32 %v2608_v3, %v2614_v46 }
 0xf87   :  { %5328 = vpow2.f32 %v2617_v37  ;;  %v2619_v10 = vmul.f32 1.442695, %v2616_v2 }
 0xf89   :  { %5330 = vpow2.f32 %v2619_v10 }
 0xf91   :  { %v5329_v8 = vpop.eup %5328 }
 0xf92   :  { %v2621_v52 = vsel %vm682_vm2, %v5329_v8, 0.0 }
 0xf93   :  { %v5331_v21 = vpop.eup %5330  ;;  %2622 = vadd.xlane.f32.xlu0 %v2621_v52 }
 0xf94   :  { %v2624_v42 = vsel %vm682_vm2, %v5331_v21, 0.0 }
 0xf95   :  { %2625 = vadd.xlane.f32.xlu1 %v2624_v42 }
 0xfa6   :  { %2677 = vrot.lane.b32.xlu1 %v2555_v63, %s5502_s30 }
 0xfa9   :  { %2680 = vrot.lane.b32.xlu0 %v2556_v0, %s5502_s30 }
 0xfaa   :  { %2806 = vrot.lane.b32.xlu1 %v2556_v0, %s5497_s4 }
 0xfad   :  { %2931 = vrot.lane.b32.xlu0 %v2556_v0, %s5503_s0 }
 0xfae   :  { %2804 = vrot.lane.b32.xlu1 %v2555_v63, %s5497_s4 }
 0xfb1   :  { %3209 = vrot.lane.b32.xlu0 %v6329_v33, %s5502_s30 }
 0xfb2   :  { %2929 = vrot.lane.b32.xlu1 %v2555_v63, %s5503_s0 }
 0xfb5   :  { %3335 = vrot.lane.b32.xlu0 %v6329_v33, %s5497_s4 }
 0xfb6   :  { %3206 = vrot.lane.b32.xlu1 %v6325_v44, %s5502_s30 }
 0xfb9   :  { %3460 = vrot.lane.b32.xlu0 %v6329_v33, %s5503_s0 }
 0xfba   :  { %3333 = vrot.lane.b32.xlu1 %v6325_v44, %s5497_s4 }
 0xfbe   :  { %3458 = vrot.lane.b32.xlu1 %v6325_v44, %s5503_s0 }
0x1020   :  { %v2623_v26 = vpop.xlane.xlu0 %2622 }
0x1021   :  { %5332 = vrcp.f32 %v2623_v26 }
0x1022   :  { %v2626_v48 = vpop.xlane.xlu1 %2625 }
0x1023   :  { %5334 = vrcp.f32 %v2626_v48 }
0x1024   :  { %v2681_v53 = vpop.permute.xlu0 %2680 }
0x1025   :  { %v2686_v28 = vsel %vm626_vm1, %v2681_v53, 0 }
0x1026   :  { %v2678_v12 = vpop.permute.xlu1 %2677 }
0x1028   :  { %v2932_v38 = vpop.permute.xlu0 %2931 }
0x1029   :  { %v2937_v56 = vsel %vm626_vm1, %v2932_v38, 0 }
0x102a   :  { %v2807_v63 = vpop.permute.xlu1 %2806 }
0x102b   :  { %v5333_v23 = vpop.eup %5332  ;;  %v2812_v0 = vsel %vm626_vm1, %v2807_v63, 0 }
0x102c   :  { %v2628_v25 = vmul.f32 %v5333_v23, %v5329_v8  ;;  %v3210_v7 = vpop.permute.xlu0 %3209 }
0x102d   :  { %v5335_v34 = vpop.eup %5334  ;;  %v3215_v29 = vsel %vm626_vm1, %v3210_v7, 0 }
0x102e   :  { %v2630_v60 = vmul.f32 %v5335_v34, %v5331_v21  ;;  %v2805_v57 = vpop.permute.xlu1 %2804 }
0x1030   :  { %v2631_v54 = vpack.c.bf16 %v2630_v60, %v2628_v25  ;;  %v3336_v9 = vpop.permute.xlu0 %3335 }
0x1031   :  { %v3341_v40 = vsel %vm626_vm1, %v3336_v9, 0 }
0x1032   :  { %4881 = vmatmul.mubr.msk.bf16.vlgmr.msra.gmra.mrb[56].mxu0 %vm682_vm2, %v2631_v54  ;;  %v2930_v1 = vpop.permute.xlu1 %2929 }
0x1033   :  { %4885 = vmatpush3.bf16.xpose.msra.mxu0 %v2686_v28  ;;  %4886 = vmatprep.mubr.msk.bf16.mxu0 %vm5501_vm0, %v5500_v62 }
0x1034   :  { %4896 = vmatprep.subr.bf16.mxu0 %v5500_v62  ;;  %v3461_v14 = vpop.permute.xlu0 %3460 }
0x1035   :  { %v3466_v11 = vsel %vm626_vm1, %v3461_v14, 0 }
0x1036   :  { %v3207_v13 = vpop.permute.xlu1 %3206 }
0x103a   :  { %4887 = vmatmul.mubr.msk.bf16.vlgmr.msra.gmra.mrb[60].mxu0 %vm626_vm1, %v2678_v12  ;;  %v3334_v27 = vpop.permute.xlu1 %3333 }
0x103b   :  { %4897 = vmatpush3.bf16.xpose.msra.mxu0 %v2812_v0  ;;  %4898 = vmatprep.mubr.msk.bf16.mxu0 %vm5501_vm0, %v5500_v62 }
0x103c   :  { %4908 = vmatprep.subr.bf16.mxu0 %v5500_v62 }
0x103e   :  { %v3459_v20 = vpop.permute.xlu1 %3458 }
0x1042   :  { %4899 = vmatmul.mubr.msk.bf16.vlgmr.msra.gmra.mrb[64].mxu0 %vm626_vm1, %v2805_v57 }
0x1043   :  { %4909 = vmatpush3.bf16.xpose.msra.mxu0 %v2937_v56  ;;  %4910 = vmatprep.mubr.msk.bf16.mxu0 %vm5501_vm0, %v5500_v62 }
0x1044   :  { %4920 = vmatprep.subr.bf16.mxu0 %v5500_v62 }
0x104a   :  { %4911 = vmatmul.mubr.msk.bf16.vlgmr.msra.gmra.mrb[68].mxu0 %vm626_vm1, %v2930_v1 }
0x104b   :  { %4921 = vmatpush3.bf16.xpose.msra.mxu0 %v3091_v5  ;;  %4922 = vmatprep.mubr.msk.bf16.mxu0 %vm5501_vm0, %v5500_v62 }
0x104c   :  { %4932 = vmatprep.subr.bf16.mxu0 %v5500_v62 }
0x1052   :  { %4923 = vmatmul.mubr.msk.bf16.vlgmr.msra.gmra.mrb[72].mxu0 %vm626_vm1, %v6325_v44 }
0x1053   :  { %4933 = vmatpush3.bf16.xpose.msra.mxu0 %v3215_v29  ;;  %4934 = vmatprep.mubr.msk.bf16.mxu0 %vm5501_vm0, %v5500_v62 }
0x1054   :  { %4944 = vmatprep.subr.bf16.mxu0 %v5500_v62 }
0x105a   :  { %4935 = vmatmul.mubr.msk.bf16.vlgmr.msra.gmra.mrb[76].mxu0 %vm626_vm1, %v3207_v13 }
0x105b   :  { %4945 = vmatpush3.bf16.xpose.msra.mxu0 %v3341_v40  ;;  %4946 = vmatprep.mubr.msk.bf16.mxu0 %vm5501_vm0, %v5500_v62 }
0x105c   :  { %4956 = vmatprep.subr.bf16.mxu0 %v5500_v62 }
0x1062   :  { %4947 = vmatmul.mubr.msk.bf16.vlgmr.msra.gmra.mrb[80].mxu0 %vm626_vm1, %v3334_v27 }
0x1063   :  { %4957 = vmatpush3.bf16.xpose.msra.mxu0 %v3466_v11  ;;  %4958 = vmatprep.mubr.msk.bf16.mxu0 %vm5501_vm0, %v5500_v62 }
0x106a   :  { %4959 = vmatmul.mubr.msk.bf16.vlgmr.msra.gmra.mrb[84].mxu0 %vm626_vm1, %v3459_v20 }
0x1105   :  { %v6396_v22 = vpop.f32.mrb[56].mxu0 }
0x1106   :  { %v4882_v24 = vpop.f32.mrb[57].mxu0 }
0x1107   :  { %v6398_v32 = vpop.f32.mrb[58].mxu0 }
0x1108   :  { %v4883_v55 = vpop.f32.mrb[59].mxu0 }
0x110d   :  { %v2722_v44 = vpop.f32.mrb[60].mxu0 }
0x110e   :  { %v2729_v33 = vmul.f32 0.17677669, %v2722_v44  ;;  %v4888_v47 = vpop.f32.mrb[61].mxu0 }
0x110f   :  { %v2725_v19 = vpop.f32.mrb[62].mxu0 }
0x1110   :  { %v2730_v50 = vmul.f32 0.17677669, %v2725_v19  ;;  %v4889_v49 = vpop.f32.mrb[63].mxu0  ;;  %v6401_v35 = vadd.f32 %v2729_v33, %v5794_v58 }
0x1112   :  { %v6404_v59 = vadd.f32 %v2730_v50, %v5794_v58  ;;  %v2733_v39 = vsel %vm682_vm2, %v6401_v35, -inf }
0x1113   :  { %2734 = vmax.xlane.f32.xlu0 %v2733_v39 }
0x1114   :  { %v2736_v61 = vsel %vm682_vm2, %v6404_v59, -inf }
0x1115   :  { %v2848_v3 = vpop.f32.mrb[64].mxu0  ;;  %2737 = vmax.xlane.f32.xlu1 %v2736_v61 }
0x1116   :  { %v2855_v41 = vmul.f32 0.17677669, %v2848_v3  ;;  %v4900_v43 = vpop.f32.mrb[65].mxu0 }
0x1117   :  { %v2851_v45 = vpop.f32.mrb[66].mxu0 }
0x1118   :  { %v2856_v46 = vmul.f32 0.17677669, %v2851_v45  ;;  %v4901_v37 = vpop.f32.mrb[67].mxu0  ;;  %v6411_v2 = vadd.f32 %v2855_v41, %v5794_v58 }
0x111a   :  { %v6414_v10 = vadd.f32 %v2856_v46, %v5794_v58  ;;  %v2859_v8 = vsel %vm682_vm2, %v6411_v2, -inf }
0x111b   :  { %2860 = vmax.xlane.f32.xlu0 %v2859_v8 }
0x111c   :  { %v2862_v26 = vsel %vm682_vm2, %v6414_v10, -inf }
0x111d   :  { %v2973_v52 = vpop.f32.mrb[68].mxu0 }
0x111e   :  { %v2980_v21 = vmul.f32 0.17677669, %v2973_v52  ;;  %v4912_v42 = vpop.f32.mrb[69].mxu0 }
0x111f   :  { %v2976_v48 = vpop.f32.mrb[70].mxu0  ;;  %2863 = vmax.xlane.f32.xlu0 %v2862_v26 }
0x1120   :  { %v6421_v23 = vadd.f32 %v2980_v21, %v5794_v58  ;;  %v2981_v34 = vmul.f32 0.17677669, %v2976_v48  ;;  %v4913_v25 = vpop.f32.mrb[71].mxu0 }
0x1122   :  { %v6424_v60 = vadd.f32 %v2981_v34, %v5794_v58  ;;  %v2984_v53 = vsel %vm682_vm2, %v6421_v23, -inf }
0x1123   :  { %2985 = vmax.xlane.f32.xlu0 %v2984_v53 }
0x1124   :  { %v2987_v54 = vsel %vm682_vm2, %v6424_v60, -inf }
0x1125   :  { %2988 = vmax.xlane.f32.xlu1 %v2987_v54  ;;  %v3127_v12 = vpop.f32.mrb[72].mxu0 }
0x1126   :  { %v3134_v28 = vmul.f32 0.17677669, %v3127_v12  ;;  %v4924_v63 = vpop.f32.mrb[73].mxu0 }
0x1127   :  { %v3130_v0 = vpop.f32.mrb[74].mxu0 }
0x1128   :  { %v6431_v38 = vadd.f32 %v3134_v28, %v5897_v31  ;;  %v3135_v57 = vmul.f32 0.17677669, %v3130_v0  ;;  %v4925_v56 = vpop.f32.mrb[75].mxu0 }
0x112a   :  { %v6434_v58 = vadd.f32 %v3135_v57, %v5897_v31  ;;  %v3138_v1 = vsel %vm682_vm2, %v6431_v38, -inf }
0x112b   :  { %3139 = vmax.xlane.f32.xlu0 %v3138_v1 }
0x112c   :  { %v3141_v5 = vsel %vm682_vm2, %v6434_v58, -inf }
0x112d   :  { %3142 = vmax.xlane.f32.xlu1 %v3141_v5  ;;  %v3251_v7 = vpop.f32.mrb[76].mxu0 }
0x112e   :  { %v3258_v29 = vmul.f32 0.17677669, %v3251_v7  ;;  %v4936_v9 = vpop.f32.mrb[77].mxu0 }
0x112f   :  { %v3254_v13 = vpop.f32.mrb[78].mxu0 }
0x1130   :  { %v6441_v40 = vadd.f32 %v3258_v29, %v5897_v31  ;;  %v3259_v14 = vmul.f32 0.17677669, %v3254_v13  ;;  %v4937_v27 = vpop.f32.mrb[79].mxu0 }
0x1132   :  { %v6444_v11 = vadd.f32 %v3259_v14, %v5897_v31  ;;  %v3262_v20 = vsel %vm682_vm2, %v6441_v40, -inf }
0x1133   :  { %3263 = vmax.xlane.f32.xlu0 %v3262_v20 }
0x1134   :  { %v3265_v24 = vsel %vm682_vm2, %v6444_v11, -inf }
0x1135   :  { %3266 = vmax.xlane.f32.xlu1 %v3265_v24  ;;  %v3377_v55 = vpop.f32.mrb[80].mxu0 }
0x1136   :  { %v3384_v44 = vmul.f32 0.17677669, %v3377_v55  ;;  %v4948_v33 = vpop.f32.mrb[81].mxu0 }
0x1137   :  { %v3380_v47 = vpop.f32.mrb[82].mxu0 }
0x1138   :  { %v6451_v19 = vadd.f32 %v3384_v44, %v5897_v31  ;;  %v3385_v50 = vmul.f32 0.17677669, %v3380_v47  ;;  %v4949_v49 = vpop.f32.mrb[83].mxu0 }
0x113a   :  { %v6454_v39 = vadd.f32 %v3385_v50, %v5897_v31  ;;  %v3388_v61 = vsel %vm682_vm2, %v6451_v19, -inf }
0x113b   :  { %3389 = vmax.xlane.f32.xlu0 %v3388_v61 }
0x113c   :  { %v3391_v3 = vsel %vm682_vm2, %v6454_v39, -inf }
0x113d   :  { %3392 = vmax.xlane.f32.xlu1 %v3391_v3  ;;  %v3502_v41 = vpop.f32.mrb[84].mxu0 }
0x113e   :  { %v3509_v43 = vmul.f32 0.17677669, %v3502_v41  ;;  %v4960_v45 = vpop.f32.mrb[85].mxu0 }
0x113f   :  { %v3505_v46 = vpop.f32.mrb[86].mxu0 }
0x1140   :  { %v6461_v37 = vadd.f32 %v3509_v43, %v5897_v31  ;;  %v3510_v8 = vmul.f32 0.17677669, %v3505_v46  ;;  %v4961_v52 = vpop.f32.mrb[87].mxu0 }
0x1142   :  { %v6464_v21 = vadd.f32 %v3510_v8, %v5897_v31  ;;  %v3513_v42 = vsel %vm682_vm2, %v6461_v37, -inf }
0x1143   :  { %3514 = vmax.xlane.f32.xlu0 %v3513_v42 }
0x1144   :  { %v3516_v26 = vsel %vm682_vm2, %v6464_v21, -inf }
0x1145   :  { %3517 = vmax.xlane.f32.xlu1 %v3516_v26 }
0x1156   :  { %2882 = vrot.lane.b32.xlu1 %v6331_v36, %s5497_s4 }
0x1159   :  { %2757 = vrot.lane.b32.xlu0 %v6331_v36, %s5502_s30 }
0x11a0   :  { %v2735_v48 = vpop.xlane.xlu0 %2734 }
0x11a1   :  { %v2739_v34 = vsub.f32 %v6401_v35, %v2735_v48 }
0x11a2   :  { %v2738_v25 = vpop.xlane.xlu1 %2737 }
0x11a3   :  { %v2741_v31 = vmul.f32 1.442695, %v2739_v34  ;;  %v2740_v53 = vsub.f32 %v6404_v59, %v2738_v25 }
0x11a5   :  { %5336 = vpow2.f32 %v2741_v31  ;;  %v2743_v54 = vmul.f32 1.442695, %v2740_v53 }
0x11a7   :  { %5338 = vpow2.f32 %v2743_v54 }
0x11a8   :  { %v2861_v12 = vpop.xlane.xlu0 %2860 }
0x11a9   :  { %v2865_v28 = vsub.f32 %v6411_v2, %v2861_v12 }
0x11ab   :  { %v2867_v63 = vmul.f32 1.442695, %v2865_v28 }
0x11ac   :  { %v2864_v0 = vpop.xlane.xlu0 %2863 }
0x11ad   :  { %5340 = vpow2.f32 %v2867_v63  ;;  %v2866_v57 = vsub.f32 %v6414_v10, %v2864_v0 }
0x11af   :  { %v6478_v56 = vpop.eup %5336  ;;  %v2869_v1 = vmul.f32 1.442695, %v2866_v57 }
0x11b0   :  { %v2986_v5 = vpop.xlane.xlu0 %2985  ;;  %v2745_v35 = vsel %vm682_vm2, %v6478_v56, 0.0 }
0x11b1   :  { %v6482_v7 = vpop.eup %5338  ;;  %5342 = vpow2.f32 %v2869_v1  ;;  %v2990_v59 = vsub.f32 %v6421_v23, %v2986_v5  ;;  %2746 = vadd.xlane.f32.xlu0 %v2745_v35 }
0x11b2   :  { %v2989_v29 = vpop.xlane.xlu1 %2988  ;;  %v2748_v2 = vsel %vm682_vm2, %v6482_v7, 0.0 }
0x11b3   :  { %v2992_v9 = vmul.f32 1.442695, %v2990_v59  ;;  %v2991_v10 = vsub.f32 %v6424_v60, %v2989_v29  ;;  %2749 = vadd.xlane.f32.xlu1 %v2748_v2 }
0x11b5   :  { %5344 = vpow2.f32 %v2992_v9  ;;  %v2994_v13 = vmul.f32 1.442695, %v2991_v10 }
0x11b7   :  { %v6488_v14 = vpop.eup %5340  ;;  %5346 = vpow2.f32 %v2994_v13 }
0x11b8   :  { %v3140_v27 = vpop.xlane.xlu0 %3139  ;;  %v2871_v20 = vsel %vm682_vm2, %v6488_v14, 0.0 }
0x11b9   :  { %v3144_v23 = vsub.f32 %v6431_v38, %v3140_v27  ;;  %2872 = vadd.xlane.f32.xlu0 %v2871_v20 }
0x11ba   :  { %v3143_v24 = vpop.xlane.xlu1 %3142 }
0x11bb   :  { %v6493_v55 = vpop.eup %5342  ;;  %v3146_v44 = vmul.f32 1.442695, %v3144_v23  ;;  %v3145_v33 = vsub.f32 %v6434_v58, %v3143_v24 }
0x11bc   :  { %v2874_v60 = vsel %vm682_vm2, %v6493_v55, 0.0 }
0x11bd   :  { %5348 = vpow2.f32 %v3146_v44  ;;  %v3148_v47 = vmul.f32 1.442695, %v3145_v33  ;;  %2875 = vadd.xlane.f32.xlu1 %v2874_v60 }
0x11bf   :  { %v6498_v50 = vpop.eup %5344  ;;  %5350 = vpow2.f32 %v3148_v47 }
0x11c0   :  { %v3264_v49 = vpop.xlane.xlu0 %3263  ;;  %v2996_v38 = vsel %vm682_vm2, %v6498_v50, 0.0 }
0x11c1   :  { %v6502_v61 = vpop.eup %5346  ;;  %v3268_v3 = vsub.f32 %v6441_v40, %v3264_v49  ;;  %2997 = vadd.xlane.f32.xlu0 %v2996_v38 }
0x11c2   :  { %v3267_v41 = vpop.xlane.xlu1 %3266  ;;  %v2999_v58 = vsel %vm682_vm2, %v6502_v61, 0.0 }
0x11c3   :  { %v3270_v43 = vmul.f32 1.442695, %v3268_v3  ;;  %v3269_v45 = vsub.f32 %v6444_v11, %v3267_v41  ;;  %3000 = vadd.xlane.f32.xlu1 %v2999_v58 }
0x11c5   :  { %5352 = vpow2.f32 %v3270_v43  ;;  %v3272_v46 = vmul.f32 1.442695, %v3269_v45 }
0x11c7   :  { %v6508_v8 = vpop.eup %5348  ;;  %5354 = vpow2.f32 %v3272_v46 }
0x11c8   :  { %v3150_v52 = vsel %vm682_vm2, %v6508_v8, 0.0  ;;  %v3390_v11 = vpop.xlane.xlu0 %3389 }
0x11c9   :  { %v6512_v42 = vpop.eup %5350  ;;  %3151 = vadd.xlane.f32.xlu0 %v3150_v52  ;;  %v3394_v2 = vsub.f32 %v6451_v19, %v3390_v11 }
0x11ca   :  { %v3393_v40 = vpop.xlane.xlu1 %3392  ;;  %v3153_v26 = vsel %vm682_vm2, %v6512_v42, 0.0 }
0x11cb   :  { %v3395_v48 = vsub.f32 %v6454_v39, %v3393_v40  ;;  %3154 = vadd.xlane.f32.xlu1 %v3153_v26  ;;  %v3396_v9 = vmul.f32 1.442695, %v3394_v2 }
0x11cd   :  { %v3398_v34 = vmul.f32 1.442695, %v3395_v48 }
0x11cf   :  { %v6517_v25 = vpop.eup %5352  ;;  %5356 = vpow2.f32 %v3398_v34 }
0x11d0   :  { %v3515_v31 = vpop.xlane.xlu0 %3514  ;;  %v3274_v53 = vsel %vm682_vm2, %v6517_v25, 0.0 }
0x11d1   :  { %v6521_v54 = vpop.eup %5354  ;;  %v3519_v12 = vsub.f32 %v6461_v37, %v3515_v31  ;;  %3275 = vadd.xlane.f32.xlu1 %v3274_v53 }
0x11d2   :  { %v3518_v28 = vpop.xlane.xlu1 %3517  ;;  %v3277_v57 = vsel %vm682_vm2, %v6521_v54, 0.0 }
0x11d3   :  { %v3521_v63 = vmul.f32 1.442695, %v3519_v12  ;;  %v3520_v0 = vsub.f32 %v6464_v21, %v3518_v28 }
0x11d4   :  { %v2758_v39 = vpop.permute.xlu0 %2757 }
0x11d5   :  { %5358 = vpow2.f32 %v3521_v63  ;;  %v3523_v1 = vmul.f32 1.442695, %v3520_v0  ;;  %4891 = vmatpush3.bf16.msra.mxu1 %v2758_v39  ;;  %3278 = vadd.xlane.f32.xlu1 %v3277_v57 }
0x11d6   :  { %4902 = vmatprep.subr.bf16.mxu1 %v5500_v62  ;;  %v2883_v13 = vpop.permute.xlu1 %2882 }
0x11d7   :  { %5360 = vpow2.f32 %v3523_v1 }
0x11d8   :  { %5362 = vpow2.f32 %v3396_v9 }
0x11d9   :  { %v6528_v5 = vpop.eup %5356 }
0x11da   :  { %v3403_v37 = vsel %vm682_vm2, %v6528_v5, 0.0 }
0x11db   :  { %3404 = vadd.xlane.f32.xlu1 %v3403_v37 }
0x11df   :  { %v6532_v35 = vpop.eup %5358  ;;  %3007 = vrot.lane.b32.xlu0 %v6331_v36, %s5503_s0 }
0x11e0   :  { %v3525_v21 = vsel %vm682_vm2, %v6532_v35, 0.0 }
0x11e1   :  { %v6538_v59 = vpop.eup %5360  ;;  %3526 = vadd.xlane.f32.xlu1 %v3525_v21 }
0x11e2   :  { %v3528_v29 = vsel %vm682_vm2, %v6538_v59, 0.0  ;;  %v6545_v10 = vpop.eup %5362 }
0x11e3   :  { %v3400_v36 = vsel %vm682_vm2, %v6545_v10, 0.0 }
0x11e5   :  { %3529 = vadd.xlane.f32.xlu1 %v3528_v29 }
0x11f6   :  { %3286 = vrot.lane.b32.xlu1 %v6327_v15, %s5502_s30 }
0x11fe   :  { %3401 = vadd.xlane.f32.xlu0 %v3400_v36 }
0x1214   :  { %3411 = vrot.lane.b32.xlu0 %v6327_v15, %s5497_s4 }
0x1218   :  { %3536 = vrot.lane.b32.xlu0 %v6327_v15, %s5503_s0 }
0x123e   :  { %v2747_v27 = vpop.xlane.xlu0 %2746 }
0x123f   :  { %5364 = vrcp.f32 %v2747_v27 }
0x1240   :  { %v2750_v19 = vpop.xlane.xlu1 %2749 }
0x1241   :  { %5366 = vrcp.f32 %v2750_v19 }
0x1246   :  { %v2873_v20 = vpop.xlane.xlu0 %2872 }
0x1247   :  { %5368 = vrcp.f32 %v2873_v20 }
0x1249   :  { %v5365_v23 = vpop.eup %5364 }
0x124a   :  { %v2876_v24 = vpop.xlane.xlu1 %2875  ;;  %v2752_v33 = vmul.f32 %v5365_v23, %v6478_v56 }
0x124b   :  { %v5367_v44 = vpop.eup %5366  ;;  %5370 = vrcp.f32 %v2876_v24 }
0x124c   :  { %v2754_v60 = vmul.f32 %v5367_v44, %v6482_v7 }
0x124e   :  { %v2998_v47 = vpop.xlane.xlu0 %2997  ;;  %v2755_v49 = vpack.c.bf16 %v2754_v60, %v2752_v33 }
0x124f   :  { %5372 = vrcp.f32 %v2998_v47 }
0x1250   :  { %4893 = vmatmul.mubr.msk.bf16.vlgmr.msra.gmra.mrb[56].mxu1 %vm682_vm2, %v2755_v49  ;;  %v3001_v38 = vpop.xlane.xlu1 %3000 }
0x1251   :  { %4903 = vmatpush3.bf16.msra.mxu1 %v2883_v13  ;;  %5374 = vrcp.f32 %v3001_v38  ;;  %4904 = vmatprep.mubr.msk.bf16.mxu1 %vm5501_vm0, %v5500_v62  ;;  %v5369_v3 = vpop.eup %5368 }
0x1252   :  { %4914 = vmatprep.subr.bf16.mxu1 %v5500_v62  ;;  %v2878_v58 = vmul.f32 %v5369_v3, %v6488_v14 }
0x1255   :  { %v5371_v41 = vpop.eup %5370 }
0x1256   :  { %v2880_v56 = vmul.f32 %v5371_v41, %v6493_v55  ;;  %v3152_v7 = vpop.xlane.xlu0 %3151 }
0x1257   :  { %5376 = vrcp.f32 %v3152_v7 }
0x1258   :  { %v3155_v43 = vpop.xlane.xlu1 %3154  ;;  %v2881_v45 = vpack.c.bf16 %v2880_v56, %v2878_v58 }
0x1259   :  { %5378 = vrcp.f32 %v3155_v43  ;;  %v5373_v46 = vpop.eup %5372 }
0x125a   :  { %v3008_v52 = vpop.permute.xlu0 %3007  ;;  %4905 = vmatmul.mubr.msk.bf16.vlgmr.msra.gmra.mrb[60].mxu1 %vm682_vm2, %v2881_v45  ;;  %v3003_v14 = vmul.f32 %v5373_v46, %v6498_v50  ;;  %v5176_v46 = vld [vmem:[%s6818_s6 + $0x40] sm:$0xff]  }
0x125b   :  { %v5375_v40 = vpop.eup %5374  ;;  %4915 = vmatpush3.bf16.msra.mxu1 %v3008_v52  ;;  %4916 = vmatprep.mubr.msk.bf16.mxu1 %vm5501_vm0, %v5500_v62  ;;  %v5177_v52 = vld [vmem:[%s6818_s6 + $0x48] sm:$0xff]  }
0x125c   :  { %v3005_v26 = vmul.f32 %v5375_v40, %v6502_v61  ;;  %4926 = vmatprep.subr.bf16.mxu1 %v5500_v62  ;;  %4968 = vmatprep.subr.bf16.mxu0 %v5176_v46  ;;  %v5178_v40 = vld [vmem:[%s6818_s6 + $0x50] sm:$0xff]  }
0x125d   :  { %4969 = vmatpush3.bf16.msra.mxu0 %v5176_v46 }
0x125e   :  { %v3276_v55 = vpop.xlane.xlu1 %3275  ;;  %v3006_v48 = vpack.c.bf16 %v3005_v26, %v3003_v14  ;;  %4970 = vmatprep.subr.bf16.mxu0 %v5177_v52 }
0x1261   :  { %v5377_v11 = vpop.eup %5376  ;;  %4971 = vmatpush3.bf16.msra.mxu0 %v5177_v52  ;;  %v4507_v52 = vld [vmem:[%s6819_s7 + $0x1] ss:$0 sm:$0xff] }
0x1262   :  { %4917 = vmatmul.mubr.msk.bf16.vlgmr.msra.gmra.mrb[64].mxu1 %vm682_vm2, %v3006_v48  ;;  %v3279_v53 = vpop.xlane.xlu1 %3278  ;;  %v3157_v61 = vmul.f32 %v5377_v11, %v6508_v8  ;;  %4972 = vmatprep.subr.bf16.mxu0 %v5178_v40  ;;  %v5179_v48 = vld [vmem:[%s6818_s6 + $0x58] sm:$0xff]  }
0x1263   :  { %v5379_v34 = vpop.eup %5378  ;;  %4927 = vmatpush3.bf16.msra.mxu1 %v6327_v15  ;;  %4928 = vmatprep.mubr.msk.bf16.mxu1 %vm5501_vm0, %v5500_v62  ;;  %5380 = vrcp.f32 %v3279_v53  ;;  %v5181_v53 = vld [vmem:[%s6818_s6 + $0x68] sm:$0xff]  }
0x1264   :  { %v3159_v31 = vmul.f32 %v5379_v34, %v6512_v42  ;;  %4938 = vmatprep.subr.bf16.mxu1 %v5500_v62  ;;  %5382 = vrcp.f32 %v3276_v55 }
0x1265   :  { %4973 = vmatpush3.bf16.msra.mxu0 %v5178_v40 }
0x1266   :  { %v3160_v50 = vpack.c.bf16 %v3159_v31, %v3157_v61  ;;  %4974 = vmatprep.subr.bf16.mxu0 %v5179_v48  ;;  %v5180_v31 = vld [vmem:[%s6818_s6 + $0x60] sm:$0xff]   ;;  %v5182_v61 = vld [vmem:[%s6818_s6 + $0x70] sm:$0xff]  }
0x1268   :  { %v3405_v12 = vpop.xlane.xlu1 %3404 }
0x1269   :  { %5384 = vrcp.f32 %v3405_v12  ;;  %4975 = vmatpush3.bf16.msra.mxu0 %v5179_v48  ;;  %v5183_v12 = vld [vmem:[%s6818_s6 + $0x78] sm:$0xff]  }
0x126a   :  { %4929 = vmatmul.mubr.msk.bf16.vlgmr.msra.gmra.mrb[68].mxu1 %vm682_vm2, %v3160_v50  ;;  %4976 = vmatprep.subr.bf16.mxu0 %v5180_v31 }
0x126b   :  { %4940 = vmatprep.mubr.msk.bf16.mxu1 %vm5501_vm0, %v5500_v62 }
0x126d   :  { %v5381_v28 = vpop.eup %5380  ;;  %4977 = vmatpush3.bf16.msra.mxu0 %v5180_v31 }
0x126e   :  { %v3527_v15 = vpop.xlane.xlu1 %3526  ;;  %v5383_v0 = vpop.eup %5382  ;;  %v3283_v42 = vmul.f32 %v5381_v28, %v6521_v54  ;;  %4978 = vmatprep.subr.bf16.mxu0 %v5181_v53 }
0x126f   :  { %v3281_v39 = vmul.f32 %v5383_v0, %v6517_v25 }
0x1271   :  { %v3284_v8 = vpack.c.bf16 %v3283_v42, %v3281_v39  ;;  %4979 = vmatpush3.bf16.msra.mxu0 %v5181_v53 }
0x1272   :  { %v3530_v63 = vpop.xlane.xlu1 %3529  ;;  %4980 = vmatprep.subr.bf16.mxu0 %v5182_v61 }
0x1273   :  { %v5385_v25 = vpop.eup %5384 }
0x1274   :  { %v3409_v21 = vmul.f32 %v5385_v25, %v6528_v5 }
0x1275   :  { %4981 = vmatpush3.bf16.msra.mxu0 %v5182_v61 }
0x1276   :  { %v3287_v57 = vpop.permute.xlu1 %3286  ;;  %4982 = vmatprep.subr.bf16.mxu0 %v5183_v12 }
0x1277   :  { %4939 = vmatpush3.bf16.msra.mxu1 %v3287_v57 }
0x1278   :  { %4950 = vmatprep.subr.bf16.mxu1 %v5500_v62 }
0x1279   :  { %4983 = vmatpush3.bf16.msra.mxu0 %v5183_v12 }
0x127a   :  { %4941 = vmatmul.mubr.msk.bf16.vlgmr.msra.gmra.mrb[72].mxu1 %vm682_vm2, %v3284_v8 }
0x127b   :  { %4952 = vmatprep.mubr.msk.bf16.mxu1 %vm5501_vm0, %v5500_v62 }
0x128b   :  { %v3402_v1 = vpop.xlane.xlu0 %3401 }
0x128c   :  { %5386 = vrcp.f32 %v3402_v1 }
0x128d   :  { %5388 = vrcp.f32 %v3530_v63 }
0x128e   :  { %5390 = vrcp.f32 %v3527_v15 }
0x128f   :  { %v3412_v37 = vpop.permute.xlu0 %3411 }
0x1290   :  { %4951 = vmatpush3.bf16.msra.mxu1 %v3412_v37 }
0x1291   :  { %4962 = vmatprep.subr.bf16.mxu1 %v5500_v62 }
0x1293   :  { %v3537_v36 = vpop.permute.xlu0 %3536 }
0x1296   :  { %v5387_v54 = vpop.eup %5386 }
0x1297   :  { %v3407_v29 = vmul.f32 %v5387_v54, %v6545_v10  ;;  %v5389_v9 = vpop.eup %5388 }
0x1298   :  { %v5391_v13 = vpop.eup %5390  ;;  %v3534_v27 = vmul.f32 %v5389_v9, %v6538_v59 }
0x1299   :  { %v3410_v2 = vpack.c.bf16 %v3409_v21, %v3407_v29  ;;  %v3532_v19 = vmul.f32 %v5391_v13, %v6532_v35 }
0x129b   :  { %4953 = vmatmul.mubr.msk.bf16.vlgmr.msra.gmra.mrb[76].mxu1 %vm682_vm2, %v3410_v2  ;;  %v3535_v20 = vpack.c.bf16 %v3534_v27, %v3532_v19 }
0x129c   :  { %4963 = vmatpush3.bf16.msra.mxu1 %v3537_v36  ;;  %4964 = vmatprep.mubr.msk.bf16.mxu1 %vm5501_vm0, %v5500_v62 }
0x12a3   :  { %4965 = vmatmul.mubr.msk.bf16.vlgmr.msra.gmra.mrb[80].mxu1 %vm682_vm2, %v3535_v20 }
0x12a4   :  { %3911 = vmatprep.mubr.bf16.mxu1 %v5499_v30 }
0x1323   :  { %v2797_v5 = vpop.f32.mrb[56].mxu1 }
0x1324   :  { %v4894_v10 = vpop.f32.mrb[57].mxu1 }
0x1325   :  { %v2800_v23 = vpop.f32.mrb[58].mxu1 }
0x1326   :  { %v5034_v24 = vpack.i.bf16 %v2800_v23, %v2797_v5  ;;  %v4895_v44 = vpop.f32.mrb[59].mxu1 }
0x1328   :  { %5035 = vrot.lane.b32.xlu0 %v5034_v24, %s5503_s0 }
0x132d   :  { %v2922_v33 = vpop.f32.mrb[60].mxu1 }
0x132e   :  { %v4906_v60 = vpop.f32.mrb[61].mxu1 }
0x132f   :  { %v2925_v47 = vpop.f32.mrb[62].mxu1 }
0x1330   :  { %v5039_v49 = vpack.i.bf16 %v2925_v47, %v2922_v33  ;;  %v4907_v38 = vpop.f32.mrb[63].mxu1 }
0x1332   :  { %5040 = vrot.lane.b32.xlu1 %v5039_v49, %s5497_s4 }
0x1335   :  { %v3047_v35 = vpop.f32.mrb[64].mxu1 }
0x1336   :  { %v4918_v59 = vpop.f32.mrb[65].mxu1 }
0x1337   :  { %v3050_v3 = vpop.f32.mrb[66].mxu1 }
0x1338   :  { %v5044_v41 = vpack.i.bf16 %v3050_v3, %v3047_v35  ;;  %v4919_v58 = vpop.f32.mrb[67].mxu1 }
0x133a   :  { %5045 = vrot.lane.b32.xlu1 %v5044_v41, %s5502_s30 }
0x133d   :  { %v6596_v56 = vpop.f32.mrb[68].mxu1 }
0x133e   :  { %v4930_v7 = vpop.f32.mrb[69].mxu1 }
0x133f   :  { %v6598_v43 = vpop.f32.mrb[70].mxu1 }
0x1340   :  { %v4931_v45 = vpop.f32.mrb[71].mxu1 }
0x134d   :  { %v3326_v26 = vpop.f32.mrb[72].mxu1 }
0x134e   :  { %v4942_v14 = vpop.f32.mrb[73].mxu1 }
0x134f   :  { %v3329_v55 = vpop.f32.mrb[74].mxu1 }
0x1350   :  { %v5049_v11 = vpack.i.bf16 %v3329_v55, %v3326_v26  ;;  %v4943_v34 = vpop.f32.mrb[75].mxu1 }
0x1352   :  { %5050 = vrot.lane.b32.xlu0 %v5049_v11, %s5503_s0 }
0x136e   :  { %v3451_v50 = vpop.f32.mrb[76].mxu1 }
0x136f   :  { %v4954_v15 = vpop.f32.mrb[77].mxu1 }
0x1370   :  { %v3454_v28 = vpop.f32.mrb[78].mxu1 }
0x1371   :  { %v5054_v63 = vpack.i.bf16 %v3454_v28, %v3451_v50  ;;  %v4955_v0 = vpop.f32.mrb[79].mxu1  ;;  %v5184_v50 = vld [vmem:[%s6822_s10 + $0x80] ss:$8 sps:$4 sm:$0xff]  }
0x1373   :  { %5055 = vrot.lane.b32.xlu0 %v5054_v63, %s5497_s4 }
0x1376   :  { %v3576_v42 = vpop.f32.mrb[80].mxu1 }
0x1377   :  { %v4966_v39 = vpop.f32.mrb[81].mxu1 }
0x1378   :  { %v3579_v57 = vpop.f32.mrb[82].mxu1 }
0x1379   :  { %v5059_v8 = vpack.i.bf16 %v3579_v57, %v3576_v42  ;;  %v4967_v1 = vpop.f32.mrb[83].mxu1 }
0x137b   :  { %5060 = vrot.lane.b32.xlu1 %v5059_v8, %s5502_s30 }
0x139a   :  { %v5036_v37 = vpop.permute.xlu0 %5035 }
0x139b   :  { %v5038_v54 = vunpack.i.h.bf16 %v5036_v37  ;;  %v5037_v21 = vunpack.i.l.bf16 %v5036_v37 }
0x139d   :  { %v3079_v36 = vsel %vm626_vm1, %v6398_v32, %v5038_v54  ;;  %v3078_v13 = vsel %vm626_vm1, %v6396_v22, %v5037_v21 }
0x13a4   :  { %v5041_v25 = vpop.permute.xlu1 %5040 }
0x13a5   :  { %v5043_v29 = vunpack.i.h.bf16 %v5041_v25  ;;  %v5042_v2 = vunpack.i.l.bf16 %v5041_v25 }
0x13a7   :  { %v3081_v20 = vsel %vm1154_vm3, %v3079_v36, %v5043_v29  ;;  %v3080_v5 = vsel %vm1154_vm3, %v3078_v13, %v5042_v2  ;;  %v5192_v2 = vld [vmem:[%s6822_s10 + $0xa4] ss:$8 sps:$4 sm:$0xff]   ;;  %v5195_v36 = vld [vmem:[%s6822_s10 + $0xb4] ss:$8 sps:$4 sm:$0xff]   ;;  %v5193_v13 = vld [vmem:[%s6822_s10 + $0xb0] ss:$8 sps:$4 sm:$0xff]  }
0x13ac   :  { %v5046_v9 = vpop.permute.xlu1 %5045 }
0x13ad   :  { %v5048_v27 = vunpack.i.h.bf16 %v5046_v9  ;;  %v5047_v19 = vunpack.i.l.bf16 %v5046_v9  ;;  %v5190_v9 = vld [vmem:[%s6822_s10 + $0xa0] ss:$8 sps:$4 sm:$0xff]  }
0x13af   :  { %v3082_v10 = vsel %vm1157_vm4, %v3080_v5, %v5047_v19  ;;  %v3083_v23 = vsel %vm1157_vm4, %v3081_v20, %v5048_v27  ;;  %v5198_v27 = vld [vmem:[%s6822_s10 + $0xc4] ss:$8 sps:$4 sm:$0xff]   ;;  %v5196_v19 = vld [vmem:[%s6822_s10 + $0xc0] ss:$8 sps:$4 sm:$0xff]   ;;  %v5201_v20 = vld [vmem:[%s6822_s10 + $0xd4] ss:$8 sps:$4 sm:$0xff]  }
0x13b0   :  { %v3613_v24 = vpack.c.bf16 %v3083_v23, %v3082_v10  ;;  %v5199_v5 = vld [vmem:[%s6822_s10 + $0xd0] ss:$8 sps:$4 sm:$0xff]   ;;  %v5204_v10 = vld [vmem:[%s6822_s10 + $0xe4] ss:$8 sps:$4 sm:$0xff]   ;;  %v5202_v23 = vld [vmem:[%s6822_s10 + $0xe0] ss:$8 sps:$4 sm:$0xff]  }
0x13b2   :  { %4984 = vmatprep.mubr.bf16.mxu0 %v3613_v24  ;;  %v5207_v24 = vld [vmem:[%s6822_s10 + $0xf4] ss:$8 sps:$4 sm:$0xff]  }
0x13c4   :  { %v5051_v44 = vpop.permute.xlu0 %5050 }
0x13c5   :  { %v5053_v60 = vunpack.i.h.bf16 %v5051_v44  ;;  %v5052_v47 = vunpack.i.l.bf16 %v5051_v44  ;;  %v5205_v44 = vld [vmem:[%s6822_s10 + $0xf0] ss:$8 sps:$4 sm:$0xff]  }
0x13c7   :  { %v3608_v22 = vsel %vm626_vm1, %v6598_v43, %v5053_v60  ;;  %v3607_v35 = vsel %vm626_vm1, %v6596_v56, %v5052_v47 }
0x13e5   :  { %v5056_v33 = vpop.permute.xlu0 %5055 }
0x13e6   :  { %v5058_v32 = vunpack.i.h.bf16 %v5056_v33  ;;  %v5057_v49 = vunpack.i.l.bf16 %v5056_v33 }
0x13e8   :  { %v3610_v41 = vsel %vm1154_vm3, %v3608_v22, %v5058_v32  ;;  %v3609_v58 = vsel %vm1154_vm3, %v3607_v35, %v5057_v49 }
0x13ed   :  { %v5061_v38 = vpop.permute.xlu1 %5060 }
0x13ee   :  { %v5063_v59 = vunpack.i.h.bf16 %v5061_v38  ;;  %v5062_v3 = vunpack.i.l.bf16 %v5061_v38 }
0x13f0   :  { %v3612_v7 = vsel %vm1157_vm4, %v3610_v41, %v5063_v59  ;;  %v3611_v45 = vsel %vm1157_vm4, %v3609_v58, %v5062_v3 }
0x13f1   :  { %v3614_v46 = vpack.c.bf16 %v3612_v7, %v3611_v45  ;;  %v4516_v45 = vld [vmem:[%s6820_s8 + $0x1] ss:$0 sm:$0xff] }
0x13f3   :  { %4985 = vmatmul.mubr.bf16.vlgmr.msra.gmra.mrb[88].mxu0 %v3614_v46 }
0x14c6   :  { %v4986_v43 = vpop.f32.mrb[88].mxu0 }
0x14c7   :  { %v3703_v40 = vpop.f32.mrb[89].mxu0  ;;  %v3712_v55 = vadd.f32 %v4986_v43, %v4507_v52 }
0x14c8   :  { %v3704_v26 = vadd.f32 %v4507_v52, %v3703_v40  ;;  %v4987_v56 = vpop.f32.mrb[90].mxu0 }
0x14c9   :  { %v3706_v14 = vpop.f32.mrb[91].mxu0  ;;  %v3720_v31 = vadd.f32 %v3712_v55, %v6303_v6  ;;  %v3715_v53 = vadd.f32 %v4987_v56, %v4507_v52  ;;  %v5187_v6 = vld [vmem:[%s6822_s10 + $0x90] ss:$8 sps:$4 sm:$0xff]   ;;  %v4517_v56 = vld [vmem:[%s6821_s9 + $0x1] ss:$0 sm:$0xff] }
0x14ca   :  { %v3718_v48 = vadd.f32 %v3704_v26, %v6277_v51  ;;  %v3707_v11 = vadd.f32 %v4507_v52, %v3706_v14  ;;  %v5186_v51 = vld [vmem:[%s6822_s10 + $0x84] ss:$8 sps:$4 sm:$0xff]  }
0x14cb   :  { %v3721_v61 = vadd.f32 %v3715_v53, %v6305_v4  ;;  %3879 = vmatprep.subr.bf16.mxu1 %v5186_v51 }
0x14cc   :  { %v3719_v34 = vadd.f32 %v3707_v11, %v6279_v17  ;;  %3722 = vadd.xlane.f32.xlu0 %v3718_v48  ;;  %v5189_v17 = vld [vmem:[%s6822_s10 + $0x94] ss:$8 sps:$4 sm:$0xff]   ;;  %3880 = vmatpush1.bf16.msra.mxu1 %v5184_v50 }
0x14cd   :  { %3881 = vmatprep.subr.bf16.mxu1 %v5189_v17 }
0x14ce   :  { %3724 = vadd.xlane.f32.xlu1 %v3719_v34 }
0x14d0   :  { %3726 = vadd.xlane.f32.xlu0 %v3720_v31  ;;  %3882 = vmatpush1.bf16.msra.mxu1 %v5187_v6 }
0x14d1   :  { %3883 = vmatprep.subr.bf16.mxu1 %v5192_v2 }
0x14d4   :  { %3728 = vadd.xlane.f32.xlu0 %v3721_v61  ;;  %3884 = vmatpush1.bf16.msra.mxu1 %v5190_v9 }
0x14d5   :  { %3885 = vmatprep.subr.bf16.mxu1 %v5195_v36 }
0x14d8   :  { %3886 = vmatpush1.bf16.msra.mxu1 %v5193_v13 }
0x14d9   :  { %3887 = vmatprep.subr.bf16.mxu1 %v5198_v27 }
0x14dc   :  { %3888 = vmatpush1.bf16.msra.mxu1 %v5196_v19 }
0x14dd   :  { %3889 = vmatprep.subr.bf16.mxu1 %v5201_v20 }
0x14e0   :  { %3890 = vmatpush1.bf16.msra.mxu1 %v5199_v5 }
0x14e1   :  { %3891 = vmatprep.subr.bf16.mxu1 %v5204_v10 }
0x14e4   :  { %3892 = vmatpush1.bf16.msra.mxu1 %v5202_v23 }
0x14e5   :  { %3893 = vmatprep.subr.bf16.mxu1 %v5207_v24 }
0x14e8   :  { %3894 = vmatpush1.bf16.msra.mxu1 %v5205_v44 }
0x14e9   :  { %4988 = vmatprep.subr.bf16.mxu1 %v5500_v62 }
0x1559   :  { %v3723_v4 = vpop.xlane.xlu0 %3722 }
0x155a   :  { %v3730_v12 = vmul.f32 0.0078125, %v3723_v4  ;;  %v5208_v4 = vld [vmem:[#allocation2 + $0xc0] sm:$0xff]  }
0x155b   :  { %v3725_v15 = vpop.xlane.xlu1 %3724  ;;  %4686 = vmatprep.subr.bf16.mxu0 %v5208_v4 }
0x155c   :  { %v3734_v28 = vsub.f32 %v3718_v48, %v3730_v12  ;;  %v3731_v63 = vmul.f32 0.0078125, %v3725_v15  ;;  %v5209_v12 = vld [vmem:[#allocation2 + $0x80] sm:$0xff]   ;;  %v5210_v15 = vld [vmem:[#allocation2 + $0xc8] sm:$0xff]  }
0x155d   :  { %v3727_v0 = vpop.xlane.xlu0 %3726  ;;  %4687 = vmatpush3.bf16.msra.mxu0 %v5209_v12 }
0x155e   :  { %v3735_v42 = vsub.f32 %v3719_v34, %v3731_v63  ;;  %v3732_v39 = vmul.f32 0.0078125, %v3727_v0  ;;  %v3738_v57 = vmul.f32 %v3734_v28, %v3734_v28  ;;  %4688 = vmatprep.subr.bf16.mxu0 %v5210_v15  ;;  %v5212_v63 = vld [vmem:[#allocation2 + $0xd0] sm:$0xff]  }
0x155f   :  { %v5213_v0 = vld [vmem:[#allocation2 + $0x90] sm:$0xff]  }
0x1560   :  { %v6662_v8 = vsub.f32 %v3720_v31, %v3732_v39  ;;  %3742 = vadd.xlane.f32.xlu0 %v3738_v57  ;;  %v3739_v1 = vmul.f32 %v3735_v42, %v3735_v42  ;;  %v5216_v39 = vld [vmem:[#allocation2 + $0xe0] sm:$0xff]  }
0x1561   :  { %v3729_v37 = vpop.xlane.xlu0 %3728  ;;  %v5217_v57 = vld [vmem:[#allocation2 + $0xa0] sm:$0xff]  }
0x1562   :  { %v3733_v25 = vmul.f32 0.0078125, %v3729_v37  ;;  %3744 = vadd.xlane.f32.xlu1 %v3739_v1  ;;  %v3740_v54 = vmul.f32 %v6662_v8, %v6662_v8  ;;  %v5220_v1 = vld [vmem:[#allocation2 + $0xf0] sm:$0xff]  }
0x1563   :  { %v5221_v37 = vld [vmem:[#allocation2 + $0xb0] sm:$0xff]  }
0x1564   :  { %v3737_v21 = vsub.f32 %v3721_v61, %v3733_v25  ;;  %3746 = vadd.xlane.f32.xlu0 %v3740_v54  ;;  %v5222_v25 = vld [vmem:[#allocation2 + $0xf8] sm:$0xff]  }
0x1565   :  { %v5223_v54 = vld [vmem:[#allocation2 + $0xb8] sm:$0xff]  }
0x1566   :  { %v3741_v29 = vmul.f32 %v3737_v21, %v3737_v21 }
0x1568   :  { %3748 = vadd.xlane.f32.xlu1 %v3741_v29 }
0x15ed   :  { %v3743_v33 = vpop.xlane.xlu0 %3742 }
0x15ee   :  { %v3750_v60 = vmul.f32 0.0078125, %v3743_v33 }
0x15ef   :  { %v3745_v47 = vpop.xlane.xlu1 %3744 }
0x15f0   :  { %v3754_v32 = vadd.f32 1e-12, %v3750_v60  ;;  %v3751_v49 = vmul.f32 0.0078125, %v3745_v47 }
0x15f1   :  { %v3747_v38 = vpop.xlane.xlu0 %3746 }
0x15f2   :  { %5392 = vrsqrt.f32 %v3754_v32  ;;  %v3755_v22 = vadd.f32 1e-12, %v3751_v49  ;;  %v3752_v35 = vmul.f32 0.0078125, %v3747_v38 }
0x15f4   :  { %5394 = vrsqrt.f32 %v3755_v22  ;;  %v3756_v59 = vadd.f32 1e-12, %v3752_v35 }
0x15f5   :  { %v3749_v3 = vpop.xlane.xlu1 %3748 }
0x15f6   :  { %5396 = vrsqrt.f32 %v3756_v59  ;;  %v3753_v41 = vmul.f32 0.0078125, %v3749_v3 }
0x15f8   :  { %v3757_v58 = vadd.f32 1e-12, %v3753_v41 }
0x15fa   :  { %5398 = vrsqrt.f32 %v3757_v58 }
0x15fc   :  { %v5393_v7 = vpop.eup %5392 }
0x15fd   :  { %v3762_v46 = vmul.f32 %v5393_v7, %v3734_v28  ;;  %v5211_v28 = vld [vmem:[#allocation2 + $0x88] sm:$0xff]  }
0x15fe   :  { %v5395_v52 = vpop.eup %5394  ;;  %4689 = vmatpush3.bf16.msra.mxu0 %v5211_v28 }
0x15ff   :  { %v3763_v43 = vmul.f32 %v5395_v52, %v3735_v42  ;;  %v3772_v40 = vmul.f32 %v4516_v45, %v3762_v46  ;;  %4690 = vmatprep.subr.bf16.mxu0 %v5212_v63  ;;  %v5215_v42 = vld [vmem:[#allocation2 + $0x98] sm:$0xff]  }
0x1600   :  { %v5397_v26 = vpop.eup %5396 }
0x1601   :  { %v3773_v14 = vmul.f32 %v4516_v45, %v3763_v43  ;;  %v6709_v55 = vadd.f32 %v4517_v56, %v3772_v40  ;;  %v3764_v11 = vmul.f32 %v5397_v26, %v6662_v8  ;;  %v5218_v8 = vld [vmem:[#allocation2 + $0xe8] sm:$0xff]  }
0x1602   :  { %4691 = vmatpush3.bf16.msra.mxu0 %v5213_v0 }
0x1603   :  { %v3783_v48 = vadd.f32 %v4517_v56, %v3773_v14  ;;  %v3774_v61 = vmul.f32 %v4516_v45, %v3764_v11 }
0x1604   :  { %v5399_v34 = vpop.eup %5398 }
0x1605   :  { %v3786_v31 = vpack.c.bf16 %v3783_v48, %v6709_v55  ;;  %v3765_v53 = vmul.f32 %v5399_v34, %v3737_v21  ;;  %v6714_v17 = vadd.f32 %v4517_v56, %v3774_v61  ;;  %v4375_v21 = vld [vmem:[%s6823_s11 + $0x2] sm:$0x3] }
0x1606   :  { %v3792_v29 = vrot.slane %v4375_v21, %v5753_v16  ;;  %v3796_v2 = vrot.slane %v4375_v21, %v5759_v18 }
0x1607   :  { %3912 = vmatmul.mubr.bf16.vlgmr.msra.gmra.mrb[84].mxu1 %v3786_v31  ;;  %v3775_v50 = vmul.f32 %v4516_v45, %v3765_v53 }
0x1608   :  { %3921 = vmatprep.mubr.bf16.mxu1 %v5499_v30  ;;  %v5214_v30 = vld [vmem:[#allocation2 + $0xd8] sm:$0xff]  }
0x1609   :  { %v3785_v51 = vadd.f32 %v4517_v56, %v3775_v50  ;;  %4692 = vmatprep.subr.bf16.mxu0 %v5214_v30 }
0x160a   :  { %4693 = vmatpush3.bf16.msra.mxu0 %v5215_v42 }
0x160b   :  { %v3787_v6 = vpack.c.bf16 %v3785_v51, %v6714_v17  ;;  %4694 = vmatprep.subr.bf16.mxu0 %v5216_v39 }
0x160e   :  { %4695 = vmatpush3.bf16.msra.mxu0 %v5217_v57 }
0x160f   :  { %3922 = vmatmul.mubr.bf16.gmra.mrb[88].mxu1 %v3787_v6  ;;  %4696 = vmatprep.subr.bf16.mxu0 %v5218_v8 }
0x1610   :  { %4990 = vmatprep.mubr.msk.bf16.mxu1 %vm5501_vm0, %v5500_v62  ;;  %v5219_v62 = vld [vmem:[#allocation2 + $0xa8] sm:$0xff]  }
0x1612   :  { %4697 = vmatpush3.bf16.msra.mxu0 %v5219_v62 }
0x1613   :  { %4698 = vmatprep.subr.bf16.mxu0 %v5220_v1 }
0x1616   :  { %4699 = vmatpush3.bf16.msra.mxu0 %v5221_v37 }
0x1617   :  { %4700 = vmatprep.subr.bf16.mxu0 %v5222_v25 }
0x161a   :  { %4701 = vmatpush3.bf16.msra.mxu0 %v5223_v54 }
0x16da   :  { %v3913_v9 = vpop.f32.mrb[84].mxu1 }
0x16db   :  { %v6724_v36 = vadd.f32 %v3913_v9, %v3792_v29  ;;  %v3915_v13 = vpop.f32.mrb[85].mxu1 }
0x16dc   :  { %v6726_v27 = vadd.f32 %v3915_v13, %v3796_v2  ;;  %v3917_v19 = vpop.f32.mrb[86].mxu1 }
0x16dd   :  { %v3940_v20 = vmul.f32 0.044715, %v6724_v36  ;;  %v6729_v5 = vadd.f32 %v3917_v19, %v3792_v29  ;;  %v3919_v10 = vpop.f32.mrb[87].mxu1  ;;  %v3932_v9 = vmul.f32 0.5, %v6724_v36 }
0x16de   :  { %v3941_v23 = vmul.f32 0.044715, %v6726_v27  ;;  %v6732_v24 = vadd.f32 %v3919_v10, %v3796_v2 }
0x16df   :  { %v3948_v16 = vmul.f32 %v3940_v20, %v6724_v36  ;;  %v3942_v18 = vmul.f32 0.044715, %v6729_v5  ;;  %v3934_v13 = vmul.f32 0.5, %v6729_v5  ;;  %v3933_v20 = vmul.f32 0.5, %v6726_v27 }
0x16e0   :  { %v3949_v44 = vmul.f32 %v3941_v23, %v6726_v27  ;;  %v3943_v33 = vmul.f32 0.044715, %v6732_v24  ;;  %v3935_v10 = vmul.f32 0.5, %v6732_v24 }
0x16e1   :  { %v3956_v60 = vmul.f32 %v3948_v16, %v6724_v36  ;;  %v3950_v47 = vmul.f32 %v3942_v18, %v6729_v5 }
0x16e2   :  { %v3957_v32 = vmul.f32 %v3949_v44, %v6726_v27  ;;  %v3951_v49 = vmul.f32 %v3943_v33, %v6732_v24  ;;  %v3923_v38 = vpop.f32.mrb[88].mxu1 }
0x16e3   :  { %v3964_v22 = vadd.f32 %v3956_v60, %v6724_v36  ;;  %v3958_v35 = vmul.f32 %v3950_v47, %v6729_v5  ;;  %v6744_v59 = vadd.f32 %v3923_v38, %v3792_v29  ;;  %v3925_v3 = vpop.f32.mrb[89].mxu1 }
0x16e4   :  { %v3959_v41 = vmul.f32 %v3951_v49, %v6732_v24  ;;  %v6747_v58 = vadd.f32 %v3925_v3, %v3796_v2  ;;  %v3927_v7 = vpop.f32.mrb[90].mxu1  ;;  %v3965_v45 = vadd.f32 %v3957_v32, %v6726_v27 }
0x16e5   :  { %v3972_v46 = vmul.f32 0.7978846, %v3964_v22  ;;  %v3966_v52 = vadd.f32 %v3958_v35, %v6729_v5  ;;  %v3944_v43 = vmul.f32 0.044715, %v6744_v59  ;;  %v3928_v40 = vadd.f32 %v3927_v7, %v3792_v29  ;;  %v3929_v26 = vpop.f32.mrb[91].mxu1 }
0x16e6   :  { %v3945_v56 = vmul.f32 0.044715, %v6747_v58  ;;  %v3930_v14 = vadd.f32 %v3929_v26, %v3796_v2  ;;  %v3967_v48 = vadd.f32 %v3959_v41, %v6732_v24  ;;  %v3973_v11 = vmul.f32 0.7978846, %v3965_v45 }
0x16e7   :  { %5400 = vtanh.f32 %v3972_v46  ;;  %v3974_v34 = vmul.f32 0.7978846, %v3966_v52  ;;  %v3952_v31 = vmul.f32 %v3944_v43, %v6744_v59  ;;  %v3946_v53 = vmul.f32 0.044715, %v3928_v40 }
0x16e8   :  { %v3953_v61 = vmul.f32 %v3945_v56, %v6747_v58  ;;  %v3947_v50 = vmul.f32 0.044715, %v3930_v14  ;;  %v3975_v51 = vmul.f32 0.7978846, %v3967_v48  ;;  %5402 = vtanh.f32 %v3973_v11  ;;  %v4534_v11 = vld [vmem:[%s6825_s13 + $0x1] ss:$0 sm:$0xff] }
0x16e9   :  { %5404 = vtanh.f32 %v3974_v34  ;;  %v3960_v6 = vmul.f32 %v3952_v31, %v6744_v59  ;;  %v3954_v4 = vmul.f32 %v3946_v53, %v3928_v40  ;;  %v3936_v5 = vmul.f32 0.5, %v6744_v59 }
0x16ea   :  { %v3961_v12 = vmul.f32 %v3953_v61, %v6747_v58  ;;  %v3955_v15 = vmul.f32 %v3947_v50, %v3930_v14  ;;  %5406 = vtanh.f32 %v3975_v51  ;;  %v3938_v27 = vmul.f32 0.5, %v3928_v40 }
0x16eb   :  { %v3962_v28 = vmul.f32 %v3954_v4, %v3928_v40  ;;  %v3968_v63 = vadd.f32 %v3960_v6, %v6744_v59  ;;  %v3937_v24 = vmul.f32 0.5, %v6747_v58  ;;  %v3939_v41 = vmul.f32 0.5, %v3930_v14 }
0x16ec   :  { %v3963_v0 = vmul.f32 %v3955_v15, %v3930_v14  ;;  %v3969_v30 = vadd.f32 %v3961_v12, %v6747_v58 }
0x16ed   :  { %v3970_v42 = vadd.f32 %v3962_v28, %v3928_v40  ;;  %v3976_v39 = vmul.f32 0.7978846, %v3968_v63 }
0x16ee   :  { %v3971_v57 = vadd.f32 %v3963_v0, %v3930_v14  ;;  %v3977_v8 = vmul.f32 0.7978846, %v3969_v30 }
0x16ef   :  { %v3978_v62 = vmul.f32 0.7978846, %v3970_v42  ;;  %5408 = vtanh.f32 %v3976_v39 }
0x16f0   :  { %v3979_v1 = vmul.f32 0.7978846, %v3971_v57  ;;  %5410 = vtanh.f32 %v3977_v8 }
0x16f1   :  { %v5401_v37 = vpop.eup %5400  ;;  %5412 = vtanh.f32 %v3978_v62 }
0x16f2   :  { %v5403_v25 = vpop.eup %5402  ;;  %v3988_v54 = vadd.f32 1.0, %v5401_v37  ;;  %5414 = vtanh.f32 %v3979_v1 }
0x16f3   :  { %v5405_v21 = vpop.eup %5404  ;;  %v3989_v29 = vadd.f32 1.0, %v5403_v25 }
0x16f4   :  { %v5407_v2 = vpop.eup %5406  ;;  %v3990_v19 = vadd.f32 1.0, %v5405_v21  ;;  %v3996_v16 = vmul.f32 %v3988_v54, %v3932_v9 }
0x16f5   :  { %v3991_v23 = vadd.f32 1.0, %v5407_v2  ;;  %v3997_v44 = vmul.f32 %v3989_v29, %v3933_v20  ;;  %v4551_v2 = vld [vmem:[%s6826_s14 + $0x1] ss:$0 sm:$0xff] }
0x16f6   :  { %v3998_v18 = vmul.f32 %v3990_v19, %v3934_v13  ;;  %v4552_v20 = vld [vmem:[%s6827_s15 + $0x1] ss:$0 sm:$0xff] }
0x16f7   :  { %v3999_v33 = vmul.f32 %v3991_v23, %v3935_v10 }
0x16f8   :  { %v4004_v60 = vpack.c.bf16 %v3998_v18, %v3996_v16 }
0x16f9   :  { %v5409_v47 = vpop.eup %5408  ;;  %v4005_v32 = vpack.c.bf16 %v3999_v33, %v3997_v44  ;;  %v4553_v33 = vld [vmem:[%s6829_s17] ss:$0 sm:$0xff]  ;;  %s5504_s17 = smov [#allocation5]  }
0x16fa   :  { %v5411_v49 = vpop.eup %5410  ;;  %v3992_v38 = vadd.f32 1.0, %v5409_v47  ;;  %s4284_s23 = sshll.u32 %s5504_s17, 4  ;;  %s4285_s23 = int_to_ptr.vmem [resolvable:$true] %s4284_s23 }
0x16fb   :  { %v5413_v22 = vpop.eup %5412  ;;  %4142 = vmatprep.mubr.bf16.mxu0 %v4005_v32  ;;  %v3993_v36 = vadd.f32 1.0, %v5411_v49  ;;  %s5446_s3 = scalar_lea.vmem %s4285_s23, 32  ;;  %p5451_p9 = scmp.lt.s32.totalorder %s4285_s23, %s4285_s23 }
0x16fc   :  { %v5415_v35 = vpop.eup %5414  ;;  %4143 = vmatmul.mubr.bf16.vlgmr.msra.gmra.mrb[92].mxu0 %v4004_v60  ;;  %v3994_v3 = vadd.f32 1.0, %v5413_v22  ;;  %v4000_v45 = vmul.f32 %v3992_v38, %v3936_v5  ;;  %p5447_p8 = scmp.ne.s32.totalorder %s4285_s23, %s5446_s3  ;;  %p5452_p10 = scmp.lt.s32.totalorder %s5446_s3, %s5446_s3 }
0x16fd   :  { %v3995_v7 = vadd.f32 1.0, %v5415_v35  ;;  %v4001_v52 = vmul.f32 %v3993_v36, %v3937_v24 }
0x16fe   :  { %v4002_v46 = vmul.f32 %v3994_v3, %v3938_v27  ;;  %v4251_v3 = vld [vmem:[%s6830_s18] sm:$0x3]  ;;  %p5453_p11 = por %p5452_p10, %p5451_p9 }
0x16ff   :  { %v4003_v43 = vmul.f32 %v3995_v7, %v3939_v41 }
0x1700   :  { %v4006_v26 = vpack.c.bf16 %v4002_v46, %v4000_v45  ;;  %p5454_p12 = pnand %p5453_p11, %p5447_p8 }
0x1701   :  { %v4007_v56 = vpack.c.bf16 %v4003_v43, %v4001_v52 }
0x1703   :  { %4149 = vmatprep.mubr.bf16.mxu0 %v4007_v56 }
0x1704   :  { %4150 = vmatmul.mubr.bf16.gmra.mrb[96].mxu0 %v4006_v26 }
0x17cf   :  { %v4702_v48 = vpop.f32.mrb[92].mxu0 }
0x17d0   :  { %v4703_v59 = vpop.f32.mrb[93].mxu0 }
0x17d1   :  { %v4704_v40 = vadd.f32 %v4703_v59, %v4702_v48  ;;  %v4705_v34 = vpop.f32.mrb[94].mxu0 }
0x17d2   :  { %v4706_v31 = vpop.f32.mrb[95].mxu0 }
0x17d3   :  { %v4145_v58 = vadd.f32 %v4704_v40, %v4534_v11 }
0x17d5   :  { %v4157_v14 = vadd.f32 %v4145_v58, %v6709_v55  ;;  %v308_v55 = vld [vmem:[%s6828_s16] sm:$0x3] }
0x17d6   :  { %4989 = vmatpush3.bf16.xpose.msra.mxu1 %v308_v55 }
0x17d7   :  { %4159 = vadd.xlane.f32.xlu1 %v4157_v14  ;;  %v4708_v53 = vpop.f32.mrb[96].mxu0 }
0x17d8   :  { %v4709_v61 = vpop.f32.mrb[97].mxu0 }
0x17d9   :  { %v4710_v50 = vadd.f32 %v4709_v61, %v4708_v53  ;;  %v4711_v51 = vpop.f32.mrb[98].mxu0 }
0x17da   :  { %v4712_v6 = vpop.f32.mrb[99].mxu0 }
0x17db   :  { %v4152_v4 = vadd.f32 %v4710_v50, %v4534_v11 }
0x17dd   :  { %v4158_v12 = vadd.f32 %v4152_v4, %v6714_v17 }
0x17df   :  { %4161 = vadd.xlane.f32.xlu0 %v4158_v12 }
0x1864   :  { %v4160_v15 = vpop.xlane.xlu1 %4159 }
0x1865   :  { %v4163_v28 = vmul.f32 0.0078125, %v4160_v15 }
0x1867   :  { %v4165_v63 = vsub.f32 %v4157_v14, %v4163_v28 }
0x1869   :  { %v4167_v0 = vmul.f32 %v4165_v63, %v4165_v63 }
0x186b   :  { %4169 = vadd.xlane.f32.xlu1 %v4167_v0 }
0x186c   :  { %v4162_v30 = vpop.xlane.xlu0 %4161 }
0x186d   :  { %v4164_v42 = vmul.f32 0.0078125, %v4162_v30 }
0x186f   :  { %v4166_v39 = vsub.f32 %v4158_v12, %v4164_v42 }
0x1871   :  { %v4168_v57 = vmul.f32 %v4166_v39, %v4166_v39 }
0x1873   :  { %4171 = vadd.xlane.f32.xlu0 %v4168_v57 }
0x18f8   :  { %v4170_v8 = vpop.xlane.xlu1 %4169 }
0x18f9   :  { %v4173_v62 = vmul.f32 0.0078125, %v4170_v8 }
0x18fb   :  { %v4175_v1 = vadd.f32 1e-12, %v4173_v62 }
0x18fd   :  { %5416 = vrsqrt.f32 %v4175_v1 }
0x1900   :  { %v4172_v17 = vpop.xlane.xlu0 %4171 }
0x1901   :  { %v4174_v37 = vmul.f32 0.0078125, %v4172_v17 }
0x1903   :  { %v4176_v25 = vadd.f32 1e-12, %v4174_v37 }
0x1905   :  { %5418 = vrsqrt.f32 %v4176_v25 }
0x1907   :  { %v5417_v54 = vpop.eup %5416 }
0x1908   :  { %v4179_v21 = vmul.f32 %v5417_v54, %v4165_v63 }
0x190a   :  { %v4187_v13 = vmul.f32 %v4551_v2, %v4179_v21 }
0x190c   :  { %v4195_v23 = vadd.f32 %v4552_v20, %v4187_v13 }
0x190f   :  { %v5419_v29 = vpop.eup %5418 }
0x1910   :  { %v4180_v9 = vmul.f32 %v5419_v29, %v4166_v39 }
0x1912   :  { %v4188_v19 = vmul.f32 %v4551_v2, %v4180_v9 }
0x1914   :  { %v4196_v10 = vadd.f32 %v4552_v20, %v4188_v19 }
0x1916   :  { %v4198_v16 = vrot.slane %v4196_v10, 7 }
0x1918   :  { %v4201_v18 = vsel %vm4200_vm5, %v4195_v23, %v4198_v16 }
0x1919   :  { %v4202_v44 = vpack.c.bf16 %v4201_v18, %v4201_v18 }
0x191b   :  { %4991 = vmatmul.mubr.bf16.vlgmr.msra.gmra.mrb[92].mxu1 %v4202_v44 }
0x19ee   :  { %v4243_v60 = vpop.f32.mrb[92].mxu1 }
0x19ef   :  { %v4244_v47 = vadd.f32 %v4553_v33, %v4243_v60  ;;  %v4992_v32 = vpop.f32.mrb[93].mxu1 }
0x19f0   :  { %v4246_v49 = vpop.f32.mrb[94].mxu1 }
0x19f1   :  { %v4255_v38 = vand.u32 2147483647, %v4244_v47  ;;  %v4993_v22 = vpop.f32.mrb[95].mxu1  ;;  %4250 = vst.msk [vmem:[#allocation5] sm:$0x3] %vm4249_vm6, %v4244_v47  ;;  %v4252_v24 = vmax.f32 %v4244_v47, 0.0  ;;  %v4253_v41 = vmul.f32 %v4251_v3, %v4244_v47 }
0x19f3   :  { %v4256_v36 = vsub.f32 0.0, %v4255_v38  ;;  %v4254_v45 = vsub.f32 %v4252_v24, %v4253_v41 }
0x19f5   :  { %v4257_v35 = vmul.f32 1.442695, %v4256_v36 }
0x19f7   :  { %5420 = vpow2.f32 %v4257_v35 }
0x1a01   :  { %v5421_v5 = vpop.eup %5420 }
0x1a02   :  { %v4259_v27 = vadd.f32 1.0, %v5421_v5 }
0x1a04   :  { %5422 = vlog2.f32 %v4259_v27 }
0x1a0e   :  { %v5423_v7 = vpop.eup %5422 }
0x1a0f   :  { %v4261_v46 = vmul.f32 0.6931472, %v5423_v7 }
0x1a11   :  { %v4262_v52 = vadd.f32 %v4261_v46, %v4254_v45 }
0x1a13   :  { %v4263_v43 = vsel %vm4249_vm6, %v4262_v52, 0.0 }
0x1a14   :  { %4264 = vadd.xlane.f32.xlu0 %v4263_v43 }
0x1a15   :  { %5457 = shalt.err (!%p5454_p12)
}
0x1a16   :  { %s5458_s27 = scalar_lea.hbm %s6831_s19, 32 }
0x1a17   :  { %p5459_p13 = scmp.ne.s32.totalorder %s6831_s19, %s5458_s27  ;;  %p5462_p0 = scmp.lt.u32.totalorder %s5458_s27, %s6831_s19 }
0x1a19   :  { %p5464_p1 = pnand %p5462_p0, %p5459_p13 }
0x1a1b   :  { %5467 = shalt.err (!%p5464_p1)
}
0x1a1c   :  { %4287 = dma.vmem_to_hbm [thread:$0]  %s4285_s23, 32, %s6831_s19, [#allocation4]   ;;  %vm4266_vm7 = vcmask 1041408   ;;  %vm4276_vm8 = vcmask 0  }
0x1a1d   :  { %s5505_s12 = smov [#allocation6]  }
0x1a1e   :  { %s4294_s24 = sshll.u32 %s5505_s12, 4  ;;  %s4295_s24 = int_to_ptr.vmem [resolvable:$true] %s4294_s24 }
0x1a1f   :  { %s5468_s0 = scalar_lea.vmem %s4295_s24, 16  ;;  %s5472_s8 = scalar_lea.vmem %s4295_s24, 32 }
0x1a20   :  { %p5469_p2 = scmp.ne.s32.totalorder %s4295_s24, %s5468_s0  ;;  %p5473_p3 = scmp.lt.s32.totalorder %s4295_s24, %s4295_s24 }
0x1a21   :  { %p5474_p4 = scmp.lt.s32.totalorder %s5472_s8, %s5468_s0 }
0x1a23   :  { %p5475_p5 = por %p5474_p4, %p5473_p3 }
0x1a25   :  { %p5476_p6 = pnand %p5475_p5, %p5469_p2 }
0x1aa1   :  { %v4265_v26 = vpop.xlane.xlu0 %4264 }
0x1aa2   :  { %v4267_v56 = vsel %vm4266_vm7, %v4265_v26, 0.0 }
0x1aa3   :  { %v4268_v48 = vrot.slane %v4267_v56, 4 }
0x1aa5   :  { %v4269_v11 = vadd.f32 %v4268_v48, %v4267_v56 }
0x1aa7   :  { %v4270_v59 = vrot.slane %v4269_v11, 2 }
0x1aa9   :  { %v4271_v40 = vadd.f32 %v4270_v59, %v4269_v11 }
0x1aab   :  { %v4272_v34 = vrot.slane %v4271_v40, 1 }
0x1aad   :  { %v4273_v31 = vadd.f32 %v4272_v34, %v4271_v40 }
0x1aaf   :  { %v4275_v58 = vmul.f32 0.125, %v4273_v31 }
0x1ab1   :  { %4277 = vst.msk [vmem:[#allocation6] sm:$0x1] %vm4276_vm8, %v4275_v58 }
0x1ab2   :  { %5479 = shalt.err (!%p5476_p6)
}
0x1ab3   :  { %s5480_s11 = scalar_lea.hbm %s6832_s20, 16 }
0x1ab4   :  { %p5481_p7 = scmp.ne.s32.totalorder %s6832_s20, %s5480_s11  ;;  %p5484_p8 = scmp.lt.u32.totalorder %s5480_s11, %s6832_s20 }
0x1ab6   :  { %p5486_p9 = pnand %p5484_p8, %p5481_p7 }
0x1ab8   :  { %5489 = shalt.err (!%p5486_p9)
}
0x1ab9   :  { %4297 = dma.vmem_to_hbm [thread:$0]  %s4295_s24, 16, %s6832_s20, [#allocation7]  }
0x1aba   :  { %5492 = dma.done.wait [#allocation4], 32  }
0x1abb   :  { %5493 = vsyncadd [#allocation4], 4294967264 }
0x1abc   :  { %5494 = dma.done.wait [#allocation7], 16  }
0x1abd   :  { %5495 = vsyncadd [#allocation7], 4294967280 }
0x1abe   :  { %4304 = vsyncpa [#allocation3], 1 }
0x1abf   :  { %4305 = vsyncpa [#allocation4], 1 }
0x1ac0   :  { %4306 = vsyncpa [#allocation7], 1 }

</bundles_post_ra>
